<compile_context>
chip_gen: v6e
topology: v6e:2x2x1
jax: 0.10.0
libtpu: 0.0.40
codegen_flags: <defaults>
</compile_context>

<pallas_src>
import functools

import jax
import jax.numpy as jnp
from jax.experimental import pallas as pl
from jax.experimental.pallas import tpu as pltpu

# ----------------------------- neuron constants -----------------------------
DT = 1e-3
TAU_MEM_INV = 100.0
TAU_SYN_INV = 200.0
V_TH = 1.0
V_LEAK = 0.0
V_RESET = 0.0
DT_TAU_MEM = DT * TAU_MEM_INV   # 0.1
DT_TAU_SYN = DT * TAU_SYN_INV   # 0.2


# ------------------ fused conv3x3 + bias + LIF + maxpool kernel ---------------
def _fused_conv_lif_pool_kernel(x_ref, band_ref, bias_ref, poolw_ref, poolh_ref,
                                o_ref, xstage, v_ref, i_ref, *, H, WCin):
    """One (batch, timestep) grid point: conv3x3 + bias + LIF + 2x2 maxpool.

    x_ref:    (1, 1, H, W*Cin)        bf16 frame, lanes = (w, ci)
    band_ref: (3, W*Cin, W*Cout)      bf16 banded conv weights (one per ky)
    bias_ref: (1, W*Cout)             f32 bias tiled along W
    poolw_ref:(W*Cout, (W/2)*Cout)    bf16 0/1 W-pair pooling matrix
    poolh_ref:(H/2, H)                bf16 0/1 H-pair pooling matrix
    o_ref:    (1, 1, H/2, (W/2)*Cout) bf16 pooled spikes
    xstage:   (H+2, W*Cin) bf16 scratch — frame with 1-row zero halo
    v_ref, i_ref: (H, W*Cout) f32 scratch — LIF state carried over the time axis
    """
    t = pl.program_id(1)

    # Stage the frame with a one-row zero halo (replaces the XLA-side jnp.pad).
    zero_row = jnp.zeros((1, WCin), jnp.bfloat16)
    xstage[0:1, :] = zero_row
    xstage[1:H + 1, :] = x_ref[0, 0, :, :]
    xstage[H + 1:H + 2, :] = zero_row

    # Reset LIF state at the first timestep of each batch sample (time is the
    # innermost, "arbitrary" grid axis, so this correctly isolates batches).
    @pl.when(t == 0)
    def _():
        v_ref[...] = jnp.zeros_like(v_ref)
        i_ref[...] = jnp.zeros_like(i_ref)

    # conv3x3(pad=1) + bias as three MXU matmuls (one per kernel row ky).
    # The banded RHS folds the three kx taps and the zero padding along W, so
    # no per-tap window slices/relayouts are materialised; K = W*Cin >= 64.
    z = jnp.dot(xstage[0:H, :], band_ref[0], preferred_element_type=jnp.float32)
    z = z + jnp.dot(xstage[1:H + 1, :], band_ref[1],
                    preferred_element_type=jnp.float32)
    z = z + jnp.dot(xstage[2:H + 2, :], band_ref[2],
                    preferred_element_type=jnp.float32)
    z = z + bias_ref[...]

    # norse LIFCell update (default parameters), lane-dense f32 state in VMEM.
    v = v_ref[...]
    i = i_ref[...]
    v_dec = v + DT_TAU_MEM * ((V_LEAK - v) + i)
    i_dec = i * (1.0 - DT_TAU_SYN)
    spike = (v_dec - V_TH > 0.0).astype(jnp.float32)     # heaviside(0) = 0
    v_ref[...] = (1.0 - spike) * v_dec + spike * V_RESET
    i_ref[...] = i_dec + z

    # Fused 2x2 maxpool: spikes are 0/1 so max == (sum > 0).  The 2x2 sum is
    # two tiny matmuls on the otherwise idle MXU, then a threshold; the store
    # is lane-dense ((W/2)*Cout = 128/256 lanes) and 4x smaller than unpooled.
    sp = spike.astype(jnp.bfloat16)
    wsum = jnp.dot(sp, poolw_ref[...], preferred_element_type=jnp.float32)
    psum = jnp.dot(poolh_ref[...], wsum.astype(jnp.bfloat16),
                   preferred_element_type=jnp.float32)
    o_ref[0, 0, :, :] = (psum > 0.5).astype(o_ref.dtype)


# ------------------------- constant operand builders --------------------------
def _conv_band(w, W):
    """(3,3,Cin,Cout) HWIO conv weights -> (3, W*Cin, W*Cout) banded matmul RHS.

    band[ky, wi*Cin + ci, wo*Cout + co] = w[ky, wi - wo + 1, ci, co] for
    |wi - wo| <= 1 (zero otherwise): folds the kx taps and the zero padding
    along W into one matmul per kernel row ky.
    """
    Cin, Cout = w.shape[2], w.shape[3]
    wi = jnp.arange(W)[:, None]
    wo = jnp.arange(W)[None, :]
    kx = wi - wo + 1                                    # kernel x-index per (wi, wo)
    valid = (kx >= 0) & (kx <= 2)
    taps = w[:, jnp.clip(kx, 0, 2)]                     # (3, W, W, Cin, Cout)
    taps = jnp.where(valid[None, :, :, None, None], taps, 0.0)
    band = jnp.transpose(taps, (0, 1, 3, 2, 4)).reshape(3, W * Cin, W * Cout)
    return band.astype(jnp.bfloat16)


def _pool_w_matrix(W, Cout):
    """(W*Cout, (W//2)*Cout) 0/1 matrix summing adjacent W pairs per channel."""
    k = jnp.arange(W * Cout)
    n = jnp.arange((W // 2) * Cout)
    hit = ((k[:, None] // Cout) // 2 == n[None, :] // Cout) & \
          (k[:, None] % Cout == n[None, :] % Cout)
    return hit.astype(jnp.bfloat16)


def _pool_h_matrix(H):
    """(H//2, H) 0/1 matrix summing adjacent row pairs."""
    return (jnp.arange(H)[None, :] // 2 ==
            jnp.arange(H // 2)[:, None]).astype(jnp.bfloat16)


# ----------------------------- SpikeDownSampleBlk ----------------------------
def spike_down_sample_block(x, w, b):
    """Fused conv3x3(pad=1) + LIFCell over time + 2x2 maxpool.

    x: (T, B, H, W*Cin) bf16, lane-dense channel-last (lanes = (w, ci)).
    w: (3, 3, Cin, Cout) f32 HWIO; b: (Cout,) f32.
    Returns pooled spikes (T, B, H//2, (W//2)*Cout) bf16 (values 0/1) — the
    exact input layout of the next block.
    """
    T, B, H, WCin = x.shape
    Cin, Cout = w.shape[2], w.shape[3]
    W = WCin // Cin
    assert W * Cin == WCin and H % 2 == 0 and W % 2 == 0, (H, W, Cin)
    WCout = W * Cout

    band = _conv_band(w, W)                                 # (3, W*Cin, W*Cout)
    bias = jnp.tile(b.astype(jnp.float32), W).reshape(1, WCout)
    poolw = _pool_w_matrix(W, Cout)                         # (W*Cout, (W//2)*Cout)
    poolh = _pool_h_matrix(H)                               # (H//2, H)

    kernel = functools.partial(_fused_conv_lif_pool_kernel, H=H, WCin=WCin)
    return pl.pallas_call(
        kernel,
        out_shape=jax.ShapeDtypeStruct((T, B, H // 2, WCout // 2), jnp.bfloat16),
        grid=(B, T),
        in_specs=[
            pl.BlockSpec((1, 1, H, WCin), lambda bi, ti: (ti, bi, 0, 0)),
            pl.BlockSpec((3, WCin, WCout), lambda bi, ti: (0, 0, 0)),
            pl.BlockSpec((1, WCout), lambda bi, ti: (0, 0)),
            pl.BlockSpec((WCout, WCout // 2), lambda bi, ti: (0, 0)),
            pl.BlockSpec((H // 2, H), lambda bi, ti: (0, 0)),
        ],
        out_specs=pl.BlockSpec((1, 1, H // 2, WCout // 2),
                               lambda bi, ti: (ti, bi, 0, 0)),
        scratch_shapes=[
            pltpu.VMEM((H + 2, WCin), jnp.bfloat16),   # frame + 1-row zero halo
            pltpu.VMEM((H, WCout), jnp.float32),       # membrane potential v
            pltpu.VMEM((H, WCout), jnp.float32),       # synaptic current i
        ],
        compiler_params=pltpu.CompilerParams(
            dimension_semantics=("parallel", "arbitrary")),
    )(x, band, bias, poolw, poolh)


# --------------------------------- SpikeCNN ----------------------------------
def spike_cnn_forward(params, x_nchw):
    """SpikeCNN: x (T, B, 2, H, W) f32 -> (features (T, B, 64, H/8, W/8) f32, states).

    `states` mirrors norse.SequentialState's per-module state list; each
    SpikeDownSampleBlk discards its LIFCell state after its internal time loop,
    so every entry is None.
    """
    T, B, C0, H, W = x_nchw.shape
    x = jnp.transpose(x_nchw, (0, 1, 3, 4, 2))             # NHWC
    x = x.reshape(T, B, H, W * C0).astype(jnp.bfloat16)     # lane-dense (w, c)
    h, wsp = H, W
    for blk in params["cnn"]:
        x = spike_down_sample_block(x, blk["w"], blk["b"])
        h //= 2
        wsp //= 2
    cout = params["cnn"][-1]["w"].shape[-1]
    y = x.reshape(T, B, h, wsp, cout)
    y = jnp.transpose(y, (0, 1, 4, 2, 3)).astype(jnp.float32)   # NCHW f32
    # TODO(synk): norse.SequentialState bookkeeping — plain nn.Module children
    # carry no exposed state, so the state list is all None.
    states = [None for _ in params["cnn"]]
    return y, states


# ------------------------------ parameter init --------------------------------
def init_params(key):
    num_filters = [2, 8, 32, 64]
    params = {"cnn": []}
    for i in range(len(num_filters) - 1):
        key, k1, k2 = jax.random.split(key, 3)
        cin, cout = num_filters[i], num_filters[i + 1]
        scale = (9 * cin) ** -0.5
        w = jax.random.normal(k1, (3, 3, cin, cout), jnp.float32) * scale
        b = jax.random.uniform(k2, (cout,), jnp.float32, -scale, scale)
        params["cnn"].append({"w": w, "b": b})
    return params


# ----------------------------------- main -------------------------------------
if __name__ == "__main__":
    key = jax.random.PRNGKey(0)
    pkey, xkey = jax.random.split(key)
    params = init_params(pkey)

    # Small but consistent shapes: ts=3, batch=2, in_channels=2, H=W=32
    # (spatial /8 through the three SpikeDownSampleBlk blocks -> 4x4).
    T, B, H, W = 3, 2, 32, 32
    X = jax.random.normal(xkey, (T, B, 2, H, W), jnp.float32)

    fwd = jax.jit(spike_cnn_forward)
    Y, states = fwd(params, X)
    jax.block_until_ready(Y)

    assert Y.shape == (T, B, 64, H // 8, W // 8), Y.shape
    assert bool(jnp.all(jnp.isfinite(Y)))
    assert bool(jnp.all((Y == 0.0) | (Y == 1.0)))          # spikes are binary
    assert len(states) == 3 and all(s is None for s in states)

    print("KERNEL_OK")
</pallas_src>

<mosaic_0001>
module attributes {stable_mosaic.version = 11 : i64} {
  func.func @_fused_conv_lif_pool_kernel(%arg0: i32, %arg1: i32, %arg2: memref<1x1x32x64xbf16, #tpu.memory_space<vmem>>, %arg3: memref<3x64x256xbf16, #tpu.memory_space<vmem>>, %arg4: memref<1x256xf32, #tpu.memory_space<vmem>>, %arg5: memref<256x128xbf16, #tpu.memory_space<vmem>>, %arg6: memref<16x32xbf16, #tpu.memory_space<vmem>>, %arg7: memref<1x1x16x128xbf16, #tpu.memory_space<vmem>>, %arg8: memref<34x64xbf16, #tpu.memory_space<vmem>>, %arg9: memref<32x256xf32, #tpu.memory_space<vmem>>, %arg10: memref<32x256xf32, #tpu.memory_space<vmem>>) attributes {dimension_semantics = [#tpu.dimension_semantics<parallel>, #tpu.dimension_semantics<arbitrary>], iteration_bounds = array<i64: 2, 3>, scalar_prefetch = 0 : i64, scratch_operands = 3 : i64, tpu.core_type = #tpu.core_type<tc>, window_params = [{transform_indices = @transform_0, window_bounds = array<i64: 1, 1, 32, 64>}, {pipeline_mode = #tpu.pipeline_mode<synchronous>, transform_indices = @transform_1, window_bounds = array<i64: 3, 64, 256>}, {pipeline_mode = #tpu.pipeline_mode<synchronous>, transform_indices = @transform_2, window_bounds = array<i64: 1, 256>}, {pipeline_mode = #tpu.pipeline_mode<synchronous>, transform_indices = @transform_3, window_bounds = array<i64: 256, 128>}, {pipeline_mode = #tpu.pipeline_mode<synchronous>, transform_indices = @transform_4, window_bounds = array<i64: 16, 32>}, {transform_indices = @transform_5, window_bounds = array<i64: 1, 1, 16, 128>}]} {
    %cst = arith.constant 0.000000e+00 : bf16
    %0 = vector.broadcast %cst : bf16 to vector<1x64xbf16>
    %c0 = arith.constant 0 : index
    %c0_0 = arith.constant 0 : index
    %1 = vector.load %arg8[%c0, %c0_0] : memref<34x64xbf16, #tpu.memory_space<vmem>>, vector<1x64xbf16>
    tpu.vector_store %arg8[%c0, %c0_0], %0 {strides = array<i32>} : memref<34x64xbf16, #tpu.memory_space<vmem>>, vector<1x64xbf16>,
    %c0_1 = arith.constant 0 : index
    %c0_2 = arith.constant 0 : index
    %c0_3 = arith.constant 0 : index
    %c0_4 = arith.constant 0 : index
    %2 = vector.load %arg2[%c0_1, %c0_2, %c0_3, %c0_4] : memref<1x1x32x64xbf16, #tpu.memory_space<vmem>>, vector<1x1x32x64xbf16>
    %3 = vector.shape_cast %2 : vector<1x1x32x64xbf16> to vector<32x64xbf16>
    %c1 = arith.constant 1 : index
    %c0_5 = arith.constant 0 : index
    %4 = vector.load %arg8[%c1, %c0_5] : memref<34x64xbf16, #tpu.memory_space<vmem>>, vector<32x64xbf16>
    tpu.vector_store %arg8[%c1, %c0_5], %3 {strides = array<i32>} : memref<34x64xbf16, #tpu.memory_space<vmem>>, vector<32x64xbf16>,
    %c33 = arith.constant 33 : index
    %c0_6 = arith.constant 0 : index
    %5 = vector.load %arg8[%c33, %c0_6] : memref<34x64xbf16, #tpu.memory_space<vmem>>, vector<1x64xbf16>
    tpu.vector_store %arg8[%c33, %c0_6], %0 {strides = array<i32>} : memref<34x64xbf16, #tpu.memory_space<vmem>>, vector<1x64xbf16>,
    %c0_i32 = arith.constant 0 : i32
    %6 = arith.cmpi eq, %arg1, %c0_i32 : i32
    %7 = arith.extui %6 : i1 to i32
    %c0_i32_7 = arith.constant 0 : i32
    %8 = arith.cmpi ne, %7, %c0_i32_7 : i32
    scf.if %8 {
      %cst_53 = arith.constant 0.000000e+00 : f32
      %65 = vector.broadcast %cst_53 : f32 to vector<32x256xf32>
      %c0_54 = arith.constant 0 : index
      %c0_55 = arith.constant 0 : index
      %66 = vector.load %arg9[%c0_54, %c0_55] : memref<32x256xf32, #tpu.memory_space<vmem>>, vector<32x256xf32>
      tpu.vector_store %arg9[%c0_54, %c0_55], %65 {strides = array<i32>} : memref<32x256xf32, #tpu.memory_space<vmem>>, vector<32x256xf32>,
      %cst_56 = arith.constant 0.000000e+00 : f32
      %67 = vector.broadcast %cst_56 : f32 to vector<32x256xf32>
      %c0_57 = arith.constant 0 : index
      %c0_58 = arith.constant 0 : index
      %68 = vector.load %arg10[%c0_57, %c0_58] : memref<32x256xf32, #tpu.memory_space<vmem>>, vector<32x256xf32>
      tpu.vector_store %arg10[%c0_57, %c0_58], %67 {strides = array<i32>} : memref<32x256xf32, #tpu.memory_space<vmem>>, vector<32x256xf32>,
    } else {
    }
    %c0_8 = arith.constant 0 : index
    %c0_9 = arith.constant 0 : index
    %9 = vector.load %arg8[%c0_8, %c0_9] : memref<34x64xbf16, #tpu.memory_space<vmem>>, vector<32x64xbf16>
    %c0_10 = arith.constant 0 : index
    %c0_11 = arith.constant 0 : index
    %c0_12 = arith.constant 0 : index
    %10 = vector.load %arg3[%c0_10, %c0_11, %c0_12] : memref<3x64x256xbf16, #tpu.memory_space<vmem>>, vector<1x64x256xbf16>
    %11 = vector.shape_cast %10 : vector<1x64x256xbf16> to vector<64x256xbf16>
    %cst_13 = arith.constant dense<0.000000e+00> : vector<32x256xf32>
    %12 = tpu.matmul %9, %11, %cst_13 {dimension_numbers = #tpu.dot_dimension_numbers<[1], [0], [0], [1], [0, 0, 1, 1], [], []>} : vector<32x64xbf16>, vector<64x256xbf16>, vector<32x256xf32> -> vector<32x256xf32>
    %c1_14 = arith.constant 1 : index
    %c0_15 = arith.constant 0 : index
    %13 = vector.load %arg8[%c1_14, %c0_15] : memref<34x64xbf16, #tpu.memory_space<vmem>>, vector<32x64xbf16>
    %c1_16 = arith.constant 1 : index
    %c0_17 = arith.constant 0 : index
    %c0_18 = arith.constant 0 : index
    %14 = vector.load %arg3[%c1_16, %c0_17, %c0_18] : memref<3x64x256xbf16, #tpu.memory_space<vmem>>, vector<1x64x256xbf16>
    %15 = vector.shape_cast %14 : vector<1x64x256xbf16> to vector<64x256xbf16>
    %cst_19 = arith.constant dense<0.000000e+00> : vector<32x256xf32>
    %16 = tpu.matmul %13, %15, %cst_19 {dimension_numbers = #tpu.dot_dimension_numbers<[1], [0], [0], [1], [0, 0, 1, 1], [], []>} : vector<32x64xbf16>, vector<64x256xbf16>, vector<32x256xf32> -> vector<32x256xf32>
    %17 = arith.addf %12, %16 : vector<32x256xf32>
    %c2 = arith.constant 2 : index
    %c0_20 = arith.constant 0 : index
    %18 = vector.load %arg8[%c2, %c0_20] : memref<34x64xbf16, #tpu.memory_space<vmem>>, vector<32x64xbf16>
    %c2_21 = arith.constant 2 : index
    %c0_22 = arith.constant 0 : index
    %c0_23 = arith.constant 0 : index
    %19 = vector.load %arg3[%c2_21, %c0_22, %c0_23] : memref<3x64x256xbf16, #tpu.memory_space<vmem>>, vector<1x64x256xbf16>
    %20 = vector.shape_cast %19 : vector<1x64x256xbf16> to vector<64x256xbf16>
    %cst_24 = arith.constant dense<0.000000e+00> : vector<32x256xf32>
    %21 = tpu.matmul %18, %20, %cst_24 {dimension_numbers = #tpu.dot_dimension_numbers<[1], [0], [0], [1], [0, 0, 1, 1], [], []>} : vector<32x64xbf16>, vector<64x256xbf16>, vector<32x256xf32> -> vector<32x256xf32>
    %22 = arith.addf %17, %21 : vector<32x256xf32>
    %c0_25 = arith.constant 0 : index
    %c0_26 = arith.constant 0 : index
    %23 = vector.load %arg4[%c0_25, %c0_26] : memref<1x256xf32, #tpu.memory_space<vmem>>, vector<1x256xf32>
    %24 = vector.broadcast %23 : vector<1x256xf32> to vector<32x256xf32>
    %25 = arith.addf %22, %24 : vector<32x256xf32>
    %c0_27 = arith.constant 0 : index
    %c0_28 = arith.constant 0 : index
    %26 = vector.load %arg9[%c0_27, %c0_28] : memref<32x256xf32, #tpu.memory_space<vmem>>, vector<32x256xf32>
    %c0_29 = arith.constant 0 : index
    %c0_30 = arith.constant 0 : index
    %27 = vector.load %arg10[%c0_29, %c0_30] : memref<32x256xf32, #tpu.memory_space<vmem>>, vector<32x256xf32>
    %cst_31 = arith.constant 0.000000e+00 : f32
    %28 = vector.broadcast %cst_31 : f32 to vector<32x256xf32>
    %29 = arith.subf %28, %26 : vector<32x256xf32>
    %30 = arith.addf %29, %27 : vector<32x256xf32>
    %cst_32 = arith.constant 1.000000e-01 : f32
    %31 = vector.broadcast %cst_32 : f32 to vector<32x256xf32>
    %32 = arith.mulf %31, %30 : vector<32x256xf32>
    %33 = arith.addf %26, %32 : vector<32x256xf32>
    %cst_33 = arith.constant 8.000000e-01 : f32
    %34 = vector.broadcast %cst_33 : f32 to vector<32x256xf32>
    %35 = arith.mulf %27, %34 : vector<32x256xf32>
    %cst_34 = arith.constant 1.000000e+00 : f32
    %36 = vector.broadcast %cst_34 : f32 to vector<32x256xf32>
    %37 = arith.subf %33, %36 : vector<32x256xf32>
    %cst_35 = arith.constant 0.000000e+00 : f32
    %38 = vector.broadcast %cst_35 : f32 to vector<32x256xf32>
    %39 = arith.cmpf ogt, %37, %38 : vector<32x256xf32>
    %40 = arith.extui %39 : vector<32x256xi1> to vector<32x256xi32>
    %41 = arith.sitofp %40 : vector<32x256xi32> to vector<32x256xf32>
    %cst_36 = arith.constant 1.000000e+00 : f32
    %42 = vector.broadcast %cst_36 : f32 to vector<32x256xf32>
    %43 = arith.subf %42, %41 : vector<32x256xf32>
    %44 = arith.mulf %43, %33 : vector<32x256xf32>
    %cst_37 = arith.constant 0.000000e+00 : f32
    %45 = vector.broadcast %cst_37 : f32 to vector<32x256xf32>
    %46 = arith.mulf %41, %45 : vector<32x256xf32>
    %47 = arith.addf %44, %46 : vector<32x256xf32>
    %c0_38 = arith.constant 0 : index
    %c0_39 = arith.constant 0 : index
    %48 = vector.load %arg9[%c0_38, %c0_39] : memref<32x256xf32, #tpu.memory_space<vmem>>, vector<32x256xf32>
    tpu.vector_store %arg9[%c0_38, %c0_39], %47 {strides = array<i32>} : memref<32x256xf32, #tpu.memory_space<vmem>>, vector<32x256xf32>,
    %49 = arith.addf %35, %25 : vector<32x256xf32>
    %c0_40 = arith.constant 0 : index
    %c0_41 = arith.constant 0 : index
    %50 = vector.load %arg10[%c0_40, %c0_41] : memref<32x256xf32, #tpu.memory_space<vmem>>, vector<32x256xf32>
    tpu.vector_store %arg10[%c0_40, %c0_41], %49 {strides = array<i32>} : memref<32x256xf32, #tpu.memory_space<vmem>>, vector<32x256xf32>,
    %51 = arith.truncf %41 : vector<32x256xf32> to vector<32x256xbf16>
    %c0_42 = arith.constant 0 : index
    %c0_43 = arith.constant 0 : index
    %52 = vector.load %arg5[%c0_42, %c0_43] : memref<256x128xbf16, #tpu.memory_space<vmem>>, vector<256x128xbf16>
    %cst_44 = arith.constant dense<0.000000e+00> : vector<32x128xf32>
    %53 = tpu.matmul %51, %52, %cst_44 {dimension_numbers = #tpu.dot_dimension_numbers<[1], [0], [0], [1], [0, 0, 1, 1], [], []>} : vector<32x256xbf16>, vector<256x128xbf16>, vector<32x128xf32> -> vector<32x128xf32>
    %c0_45 = arith.constant 0 : index
    %c0_46 = arith.constant 0 : index
    %54 = vector.load %arg6[%c0_45, %c0_46] : memref<16x32xbf16, #tpu.memory_space<vmem>>, vector<16x32xbf16>
    %55 = arith.truncf %53 : vector<32x128xf32> to vector<32x128xbf16>
    %cst_47 = arith.constant dense<0.000000e+00> : vector<16x128xf32>
    %56 = tpu.matmul %54, %55, %cst_47 {dimension_numbers = #tpu.dot_dimension_numbers<[1], [0], [0], [1], [0, 0, 1, 1], [], []>} : vector<16x32xbf16>, vector<32x128xbf16>, vector<16x128xf32> -> vector<16x128xf32>
    %cst_48 = arith.constant 5.000000e-01 : f32
    %57 = vector.broadcast %cst_48 : f32 to vector<16x128xf32>
    %58 = arith.cmpf ogt, %56, %57 : vector<16x128xf32>
    %59 = arith.extui %58 : vector<16x128xi1> to vector<16x128xi32>
    %60 = arith.sitofp %59 : vector<16x128xi32> to vector<16x128xf32>
    %61 = arith.truncf %60 : vector<16x128xf32> to vector<16x128xbf16>
    %c0_49 = arith.constant 0 : index
    %c0_50 = arith.constant 0 : index
    %c0_51 = arith.constant 0 : index
    %c0_52 = arith.constant 0 : index
    %62 = vector.load %arg7[%c0_49, %c0_50, %c0_51, %c0_52] : memref<1x1x16x128xbf16, #tpu.memory_space<vmem>>, vector<1x1x16x128xbf16>
    %63 = vector.shape_cast %62 : vector<1x1x16x128xbf16> to vector<16x128xbf16>
    %64 = vector.shape_cast %61 : vector<16x128xbf16> to vector<1x1x16x128xbf16>
    tpu.vector_store %arg7[%c0_49, %c0_50, %c0_51, %c0_52], %64 {strides = array<i32>} : memref<1x1x16x128xbf16, #tpu.memory_space<vmem>>, vector<1x1x16x128xbf16>,
    return
  }
  func.func @transform_0(%arg0: i32, %arg1: i32) -> (i32, i32, i32, i32) {
    %c0_i32 = arith.constant 0 : i32
    %c0_i32_0 = arith.constant 0 : i32
    %c0_i32_1 = arith.constant 0 : i32
    return %arg1, %arg0, %c0_i32, %c0_i32_0 : i32, i32, i32, i32
  }
  func.func @transform_1(%arg0: i32, %arg1: i32) -> (i32, i32, i32) {
    %c0_i32 = arith.constant 0 : i32
    %c0_i32_0 = arith.constant 0 : i32
    %c0_i32_1 = arith.constant 0 : i32
    %c0_i32_2 = arith.constant 0 : i32
    return %c0_i32, %c0_i32_0, %c0_i32_1 : i32, i32, i32
  }
  func.func @transform_2(%arg0: i32, %arg1: i32) -> (i32, i32) {
    %c0_i32 = arith.constant 0 : i32
    %c0_i32_0 = arith.constant 0 : i32
    %c0_i32_1 = arith.constant 0 : i32
    return %c0_i32, %c0_i32_0 : i32, i32
  }
  func.func @transform_3(%arg0: i32, %arg1: i32) -> (i32, i32) {
    %c0_i32 = arith.constant 0 : i32
    %c0_i32_0 = arith.constant 0 : i32
    %c0_i32_1 = arith.constant 0 : i32
    return %c0_i32, %c0_i32_0 : i32, i32
  }
  func.func @transform_4(%arg0: i32, %arg1: i32) -> (i32, i32) {
    %c0_i32 = arith.constant 0 : i32
    %c0_i32_0 = arith.constant 0 : i32
    %c0_i32_1 = arith.constant 0 : i32
    return %c0_i32, %c0_i32_0 : i32, i32
  }
  func.func @transform_5(%arg0: i32, %arg1: i32) -> (i32, i32, i32, i32) {
    %c0_i32 = arith.constant 0 : i32
    %c0_i32_0 = arith.constant 0 : i32
    %c0_i32_1 = arith.constant 0 : i32
    return %arg1, %arg0, %c0_i32, %c0_i32_0 : i32, i32, i32, i32
  }
}

module attributes {stable_mosaic.version = 11 : i64} {
  func.func @_fused_conv_lif_pool_kernel(%arg0: i32, %arg1: i32, %arg2: memref<1x1x16x128xbf16, #tpu.memory_space<vmem>>, %arg3: memref<3x128x512xbf16, #tpu.memory_space<vmem>>, %arg4: memref<1x512xf32, #tpu.memory_space<vmem>>, %arg5: memref<512x256xbf16, #tpu.memory_space<vmem>>, %arg6: memref<8x16xbf16, #tpu.memory_space<vmem>>, %arg7: memref<1x1x8x256xbf16, #tpu.memory_space<vmem>>, %arg8: memref<18x128xbf16, #tpu.memory_space<vmem>>, %arg9: memref<16x512xf32, #tpu.memory_space<vmem>>, %arg10: memref<16x512xf32, #tpu.memory_space<vmem>>) attributes {dimension_semantics = [#tpu.dimension_semantics<parallel>, #tpu.dimension_semantics<arbitrary>], iteration_bounds = array<i64: 2, 3>, scalar_prefetch = 0 : i64, scratch_operands = 3 : i64, tpu.core_type = #tpu.core_type<tc>, window_params = [{transform_indices = @transform_0, window_bounds = array<i64: 1, 1, 16, 128>}, {pipeline_mode = #tpu.pipeline_mode<synchronous>, transform_indices = @transform_1, window_bounds = array<i64: 3, 128, 512>}, {pipeline_mode = #tpu.pipeline_mode<synchronous>, transform_indices = @transform_2, window_bounds = array<i64: 1, 512>}, {pipeline_mode = #tpu.pipeline_mode<synchronous>, transform_indices = @transform_3, window_bounds = array<i64: 512, 256>}, {pipeline_mode = #tpu.pipeline_mode<synchronous>, transform_indices = @transform_4, window_bounds = array<i64: 8, 16>}, {transform_indices = @transform_5, window_bounds = array<i64: 1, 1, 8, 256>}]} {
    %cst = arith.constant 0.000000e+00 : bf16
    %0 = vector.broadcast %cst : bf16 to vector<1x128xbf16>
    %c0 = arith.constant 0 : index
    %c0_0 = arith.constant 0 : index
    %1 = vector.load %arg8[%c0, %c0_0] : memref<18x128xbf16, #tpu.memory_space<vmem>>, vector<1x128xbf16>
    tpu.vector_store %arg8[%c0, %c0_0], %0 {strides = array<i32>} : memref<18x128xbf16, #tpu.memory_space<vmem>>, vector<1x128xbf16>,
    %c0_1 = arith.constant 0 : index
    %c0_2 = arith.constant 0 : index
    %c0_3 = arith.constant 0 : index
    %c0_4 = arith.constant 0 : index
    %2 = vector.load %arg2[%c0_1, %c0_2, %c0_3, %c0_4] : memref<1x1x16x128xbf16, #tpu.memory_space<vmem>>, vector<1x1x16x128xbf16>
    %3 = vector.shape_cast %2 : vector<1x1x16x128xbf16> to vector<16x128xbf16>
    %c1 = arith.constant 1 : index
    %c0_5 = arith.constant 0 : index
    %4 = vector.load %arg8[%c1, %c0_5] : memref<18x128xbf16, #tpu.memory_space<vmem>>, vector<16x128xbf16>
    tpu.vector_store %arg8[%c1, %c0_5], %3 {strides = array<i32>} : memref<18x128xbf16, #tpu.memory_space<vmem>>, vector<16x128xbf16>,
    %c17 = arith.constant 17 : index
    %c0_6 = arith.constant 0 : index
    %5 = vector.load %arg8[%c17, %c0_6] : memref<18x128xbf16, #tpu.memory_space<vmem>>, vector<1x128xbf16>
    tpu.vector_store %arg8[%c17, %c0_6], %0 {strides = array<i32>} : memref<18x128xbf16, #tpu.memory_space<vmem>>, vector<1x128xbf16>,
    %c0_i32 = arith.constant 0 : i32
    %6 = arith.cmpi eq, %arg1, %c0_i32 : i32
    %7 = arith.extui %6 : i1 to i32
    %c0_i32_7 = arith.constant 0 : i32
    %8 = arith.cmpi ne, %7, %c0_i32_7 : i32
    scf.if %8 {
      %cst_53 = arith.constant 0.000000e+00 : f32
      %65 = vector.broadcast %cst_53 : f32 to vector<16x512xf32>
      %c0_54 = arith.constant 0 : index
      %c0_55 = arith.constant 0 : index
      %66 = vector.load %arg9[%c0_54, %c0_55] : memref<16x512xf32, #tpu.memory_space<vmem>>, vector<16x512xf32>
      tpu.vector_store %arg9[%c0_54, %c0_55], %65 {strides = array<i32>} : memref<16x512xf32, #tpu.memory_space<vmem>>, vector<16x512xf32>,
      %cst_56 = arith.constant 0.000000e+00 : f32
      %67 = vector.broadcast %cst_56 : f32 to vector<16x512xf32>
      %c0_57 = arith.constant 0 : index
      %c0_58 = arith.constant 0 : index
      %68 = vector.load %arg10[%c0_57, %c0_58] : memref<16x512xf32, #tpu.memory_space<vmem>>, vector<16x512xf32>
      tpu.vector_store %arg10[%c0_57, %c0_58], %67 {strides = array<i32>} : memref<16x512xf32, #tpu.memory_space<vmem>>, vector<16x512xf32>,
    } else {
    }
    %c0_8 = arith.constant 0 : index
    %c0_9 = arith.constant 0 : index
    %9 = vector.load %arg8[%c0_8, %c0_9] : memref<18x128xbf16, #tpu.memory_space<vmem>>, vector<16x128xbf16>
    %c0_10 = arith.constant 0 : index
    %c0_11 = arith.constant 0 : index
    %c0_12 = arith.constant 0 : index
    %10 = vector.load %arg3[%c0_10, %c0_11, %c0_12] : memref<3x128x512xbf16, #tpu.memory_space<vmem>>, vector<1x128x512xbf16>
    %11 = vector.shape_cast %10 : vector<1x128x512xbf16> to vector<128x512xbf16>
    %cst_13 = arith.constant dense<0.000000e+00> : vector<16x512xf32>
    %12 = tpu.matmul %9, %11, %cst_13 {dimension_numbers = #tpu.dot_dimension_numbers<[1], [0], [0], [1], [0, 0, 1, 1], [], []>} : vector<16x128xbf16>, vector<128x512xbf16>, vector<16x512xf32> -> vector<16x512xf32>
    %c1_14 = arith.constant 1 : index
    %c0_15 = arith.constant 0 : index
    %13 = vector.load %arg8[%c1_14, %c0_15] : memref<18x128xbf16, #tpu.memory_space<vmem>>, vector<16x128xbf16>
    %c1_16 = arith.constant 1 : index
    %c0_17 = arith.constant 0 : index
    %c0_18 = arith.constant 0 : index
    %14 = vector.load %arg3[%c1_16, %c0_17, %c0_18] : memref<3x128x512xbf16, #tpu.memory_space<vmem>>, vector<1x128x512xbf16>
    %15 = vector.shape_cast %14 : vector<1x128x512xbf16> to vector<128x512xbf16>
    %cst_19 = arith.constant dense<0.000000e+00> : vector<16x512xf32>
    %16 = tpu.matmul %13, %15, %cst_19 {dimension_numbers = #tpu.dot_dimension_numbers<[1], [0], [0], [1], [0, 0, 1, 1], [], []>} : vector<16x128xbf16>, vector<128x512xbf16>, vector<16x512xf32> -> vector<16x512xf32>
    %17 = arith.addf %12, %16 : vector<16x512xf32>
    %c2 = arith.constant 2 : index
    %c0_20 = arith.constant 0 : index
    %18 = vector.load %arg8[%c2, %c0_20] : memref<18x128xbf16, #tpu.memory_space<vmem>>, vector<16x128xbf16>
    %c2_21 = arith.constant 2 : index
    %c0_22 = arith.constant 0 : index
    %c0_23 = arith.constant 0 : index
    %19 = vector.load %arg3[%c2_21, %c0_22, %c0_23] : memref<3x128x512xbf16, #tpu.memory_space<vmem>>, vector<1x128x512xbf16>
    %20 = vector.shape_cast %19 : vector<1x128x512xbf16> to vector<128x512xbf16>
    %cst_24 = arith.constant dense<0.000000e+00> : vector<16x512xf32>
    %21 = tpu.matmul %18, %20, %cst_24 {dimension_numbers = #tpu.dot_dimension_numbers<[1], [0], [0], [1], [0, 0, 1, 1], [], []>} : vector<16x128xbf16>, vector<128x512xbf16>, vector<16x512xf32> -> vector<16x512xf32>
    %22 = arith.addf %17, %21 : vector<16x512xf32>
    %c0_25 = arith.constant 0 : index
    %c0_26 = arith.constant 0 : index
    %23 = vector.load %arg4[%c0_25, %c0_26] : memref<1x512xf32, #tpu.memory_space<vmem>>, vector<1x512xf32>
    %24 = vector.broadcast %23 : vector<1x512xf32> to vector<16x512xf32>
    %25 = arith.addf %22, %24 : vector<16x512xf32>
    %c0_27 = arith.constant 0 : index
    %c0_28 = arith.constant 0 : index
    %26 = vector.load %arg9[%c0_27, %c0_28] : memref<16x512xf32, #tpu.memory_space<vmem>>, vector<16x512xf32>
    %c0_29 = arith.constant 0 : index
    %c0_30 = arith.constant 0 : index
    %27 = vector.load %arg10[%c0_29, %c0_30] : memref<16x512xf32, #tpu.memory_space<vmem>>, vector<16x512xf32>
    %cst_31 = arith.constant 0.000000e+00 : f32
    %28 = vector.broadcast %cst_31 : f32 to vector<16x512xf32>
    %29 = arith.subf %28, %26 : vector<16x512xf32>
    %30 = arith.addf %29, %27 : vector<16x512xf32>
    %cst_32 = arith.constant 1.000000e-01 : f32
    %31 = vector.broadcast %cst_32 : f32 to vector<16x512xf32>
    %32 = arith.mulf %31, %30 : vector<16x512xf32>
    %33 = arith.addf %26, %32 : vector<16x512xf32>
    %cst_33 = arith.constant 8.000000e-01 : f32
    %34 = vector.broadcast %cst_33 : f32 to vector<16x512xf32>
    %35 = arith.mulf %27, %34 : vector<16x512xf32>
    %cst_34 = arith.constant 1.000000e+00 : f32
    %36 = vector.broadcast %cst_34 : f32 to vector<16x512xf32>
    %37 = arith.subf %33, %36 : vector<16x512xf32>
    %cst_35 = arith.constant 0.000000e+00 : f32
    %38 = vector.broadcast %cst_35 : f32 to vector<16x512xf32>
    %39 = arith.cmpf ogt, %37, %38 : vector<16x512xf32>
    %40 = arith.extui %39 : vector<16x512xi1> to vector<16x512xi32>
    %41 = arith.sitofp %40 : vector<16x512xi32> to vector<16x512xf32>
    %cst_36 = arith.constant 1.000000e+00 : f32
    %42 = vector.broadcast %cst_36 : f32 to vector<16x512xf32>
    %43 = arith.subf %42, %41 : vector<16x512xf32>
    %44 = arith.mulf %43, %33 : vector<16x512xf32>
    %cst_37 = arith.constant 0.000000e+00 : f32
    %45 = vector.broadcast %cst_37 : f32 to vector<16x512xf32>
    %46 = arith.mulf %41, %45 : vector<16x512xf32>
    %47 = arith.addf %44, %46 : vector<16x512xf32>
    %c0_38 = arith.constant 0 : index
    %c0_39 = arith.constant 0 : index
    %48 = vector.load %arg9[%c0_38, %c0_39] : memref<16x512xf32, #tpu.memory_space<vmem>>, vector<16x512xf32>
    tpu.vector_store %arg9[%c0_38, %c0_39], %47 {strides = array<i32>} : memref<16x512xf32, #tpu.memory_space<vmem>>, vector<16x512xf32>,
    %49 = arith.addf %35, %25 : vector<16x512xf32>
    %c0_40 = arith.constant 0 : index
    %c0_41 = arith.constant 0 : index
    %50 = vector.load %arg10[%c0_40, %c0_41] : memref<16x512xf32, #tpu.memory_space<vmem>>, vector<16x512xf32>
    tpu.vector_store %arg10[%c0_40, %c0_41], %49 {strides = array<i32>} : memref<16x512xf32, #tpu.memory_space<vmem>>, vector<16x512xf32>,
    %51 = arith.truncf %41 : vector<16x512xf32> to vector<16x512xbf16>
    %c0_42 = arith.constant 0 : index
    %c0_43 = arith.constant 0 : index
    %52 = vector.load %arg5[%c0_42, %c0_43] : memref<512x256xbf16, #tpu.memory_space<vmem>>, vector<512x256xbf16>
    %cst_44 = arith.constant dense<0.000000e+00> : vector<16x256xf32>
    %53 = tpu.matmul %51, %52, %cst_44 {dimension_numbers = #tpu.dot_dimension_numbers<[1], [0], [0], [1], [0, 0, 1, 1], [], []>} : vector<16x512xbf16>, vector<512x256xbf16>, vector<16x256xf32> -> vector<16x256xf32>
    %c0_45 = arith.constant 0 : index
    %c0_46 = arith.constant 0 : index
    %54 = vector.load %arg6[%c0_45, %c0_46] : memref<8x16xbf16, #tpu.memory_space<vmem>>, vector<8x16xbf16>
    %55 = arith.truncf %53 : vector<16x256xf32> to vector<16x256xbf16>
    %cst_47 = arith.constant dense<0.000000e+00> : vector<8x256xf32>
    %56 = tpu.matmul %54, %55, %cst_47 {dimension_numbers = #tpu.dot_dimension_numbers<[1], [0], [0], [1], [0, 0, 1, 1], [], []>} : vector<8x16xbf16>, vector<16x256xbf16>, vector<8x256xf32> -> vector<8x256xf32>
    %cst_48 = arith.constant 5.000000e-01 : f32
    %57 = vector.broadcast %cst_48 : f32 to vector<8x256xf32>
    %58 = arith.cmpf ogt, %56, %57 : vector<8x256xf32>
    %59 = arith.extui %58 : vector<8x256xi1> to vector<8x256xi32>
    %60 = arith.sitofp %59 : vector<8x256xi32> to vector<8x256xf32>
    %61 = arith.truncf %60 : vector<8x256xf32> to vector<8x256xbf16>
    %c0_49 = arith.constant 0 : index
    %c0_50 = arith.constant 0 : index
    %c0_51 = arith.constant 0 : index
    %c0_52 = arith.constant 0 : index
    %62 = vector.load %arg7[%c0_49, %c0_50, %c0_51, %c0_52] : memref<1x1x8x256xbf16, #tpu.memory_space<vmem>>, vector<1x1x8x256xbf16>
    %63 = vector.shape_cast %62 : vector<1x1x8x256xbf16> to vector<8x256xbf16>
    %64 = vector.shape_cast %61 : vector<8x256xbf16> to vector<1x1x8x256xbf16>
    tpu.vector_store %arg7[%c0_49, %c0_50, %c0_51, %c0_52], %64 {strides = array<i32>} : memref<1x1x8x256xbf16, #tpu.memory_space<vmem>>, vector<1x1x8x256xbf16>,
    return
  }
  func.func @transform_0(%arg0: i32, %arg1: i32) -> (i32, i32, i32, i32) {
    %c0_i32 = arith.constant 0 : i32
    %c0_i32_0 = arith.constant 0 : i32
    %c0_i32_1 = arith.constant 0 : i32
    return %arg1, %arg0, %c0_i32, %c0_i32_0 : i32, i32, i32, i32
  }
  func.func @transform_1(%arg0: i32, %arg1: i32) -> (i32, i32, i32) {
    %c0_i32 = arith.constant 0 : i32
    %c0_i32_0 = arith.constant 0 : i32
    %c0_i32_1 = arith.constant 0 : i32
    %c0_i32_2 = arith.constant 0 : i32
    return %c0_i32, %c0_i32_0, %c0_i32_1 : i32, i32, i32
  }
  func.func @transform_2(%arg0: i32, %arg1: i32) -> (i32, i32) {
    %c0_i32 = arith.constant 0 : i32
    %c0_i32_0 = arith.constant 0 : i32
    %c0_i32_1 = arith.constant 0 : i32
    return %c0_i32, %c0_i32_0 : i32, i32
  }
  func.func @transform_3(%arg0: i32, %arg1: i32) -> (i32, i32) {
    %c0_i32 = arith.constant 0 : i32
    %c0_i32_0 = arith.constant 0 : i32
    %c0_i32_1 = arith.constant 0 : i32
    return %c0_i32, %c0_i32_0 : i32, i32
  }
  func.func @transform_4(%arg0: i32, %arg1: i32) -> (i32, i32) {
    %c0_i32 = arith.constant 0 : i32
    %c0_i32_0 = arith.constant 0 : i32
    %c0_i32_1 = arith.constant 0 : i32
    return %c0_i32, %c0_i32_0 : i32, i32
  }
  func.func @transform_5(%arg0: i32, %arg1: i32) -> (i32, i32, i32, i32) {
    %c0_i32 = arith.constant 0 : i32
    %c0_i32_0 = arith.constant 0 : i32
    %c0_i32_1 = arith.constant 0 : i32
    return %arg1, %arg0, %c0_i32, %c0_i32_0 : i32, i32, i32, i32
  }
}

module attributes {stable_mosaic.version = 11 : i64} {
  func.func @_fused_conv_lif_pool_kernel(%arg0: i32, %arg1: i32, %arg2: memref<1x1x8x256xbf16, #tpu.memory_space<vmem>>, %arg3: memref<3x256x512xbf16, #tpu.memory_space<vmem>>, %arg4: memref<1x512xf32, #tpu.memory_space<vmem>>, %arg5: memref<512x256xbf16, #tpu.memory_space<vmem>>, %arg6: memref<4x8xbf16, #tpu.memory_space<vmem>>, %arg7: memref<1x1x4x256xbf16, #tpu.memory_space<vmem>>, %arg8: memref<10x256xbf16, #tpu.memory_space<vmem>>, %arg9: memref<8x512xf32, #tpu.memory_space<vmem>>, %arg10: memref<8x512xf32, #tpu.memory_space<vmem>>) attributes {dimension_semantics = [#tpu.dimension_semantics<parallel>, #tpu.dimension_semantics<arbitrary>], iteration_bounds = array<i64: 2, 3>, scalar_prefetch = 0 : i64, scratch_operands = 3 : i64, tpu.core_type = #tpu.core_type<tc>, window_params = [{transform_indices = @transform_0, window_bounds = array<i64: 1, 1, 8, 256>}, {pipeline_mode = #tpu.pipeline_mode<synchronous>, transform_indices = @transform_1, window_bounds = array<i64: 3, 256, 512>}, {pipeline_mode = #tpu.pipeline_mode<synchronous>, transform_indices = @transform_2, window_bounds = array<i64: 1, 512>}, {pipeline_mode = #tpu.pipeline_mode<synchronous>, transform_indices = @transform_3, window_bounds = array<i64: 512, 256>}, {pipeline_mode = #tpu.pipeline_mode<synchronous>, transform_indices = @transform_4, window_bounds = array<i64: 4, 8>}, {transform_indices = @transform_5, window_bounds = array<i64: 1, 1, 4, 256>}]} {
    %cst = arith.constant 0.000000e+00 : bf16
    %0 = vector.broadcast %cst : bf16 to vector<1x256xbf16>
    %c0 = arith.constant 0 : index
    %c0_0 = arith.constant 0 : index
    %1 = vector.load %arg8[%c0, %c0_0] : memref<10x256xbf16, #tpu.memory_space<vmem>>, vector<1x256xbf16>
    tpu.vector_store %arg8[%c0, %c0_0], %0 {strides = array<i32>} : memref<10x256xbf16, #tpu.memory_space<vmem>>, vector<1x256xbf16>,
    %c0_1 = arith.constant 0 : index
    %c0_2 = arith.constant 0 : index
    %c0_3 = arith.constant 0 : index
    %c0_4 = arith.constant 0 : index
    %2 = vector.load %arg2[%c0_1, %c0_2, %c0_3, %c0_4] : memref<1x1x8x256xbf16, #tpu.memory_space<vmem>>, vector<1x1x8x256xbf16>
    %3 = vector.shape_cast %2 : vector<1x1x8x256xbf16> to vector<8x256xbf16>
    %c1 = arith.constant 1 : index
    %c0_5 = arith.constant 0 : index
    %4 = vector.load %arg8[%c1, %c0_5] : memref<10x256xbf16, #tpu.memory_space<vmem>>, vector<8x256xbf16>
    tpu.vector_store %arg8[%c1, %c0_5], %3 {strides = array<i32>} : memref<10x256xbf16, #tpu.memory_space<vmem>>, vector<8x256xbf16>,
    %c9 = arith.constant 9 : index
    %c0_6 = arith.constant 0 : index
    %5 = vector.load %arg8[%c9, %c0_6] : memref<10x256xbf16, #tpu.memory_space<vmem>>, vector<1x256xbf16>
    tpu.vector_store %arg8[%c9, %c0_6], %0 {strides = array<i32>} : memref<10x256xbf16, #tpu.memory_space<vmem>>, vector<1x256xbf16>,
    %c0_i32 = arith.constant 0 : i32
    %6 = arith.cmpi eq, %arg1, %c0_i32 : i32
    %7 = arith.extui %6 : i1 to i32
    %c0_i32_7 = arith.constant 0 : i32
    %8 = arith.cmpi ne, %7, %c0_i32_7 : i32
    scf.if %8 {
      %cst_53 = arith.constant 0.000000e+00 : f32
      %65 = vector.broadcast %cst_53 : f32 to vector<8x512xf32>
      %c0_54 = arith.constant 0 : index
      %c0_55 = arith.constant 0 : index
      %66 = vector.load %arg9[%c0_54, %c0_55] : memref<8x512xf32, #tpu.memory_space<vmem>>, vector<8x512xf32>
      tpu.vector_store %arg9[%c0_54, %c0_55], %65 {strides = array<i32>} : memref<8x512xf32, #tpu.memory_space<vmem>>, vector<8x512xf32>,
      %cst_56 = arith.constant 0.000000e+00 : f32
      %67 = vector.broadcast %cst_56 : f32 to vector<8x512xf32>
      %c0_57 = arith.constant 0 : index
      %c0_58 = arith.constant 0 : index
      %68 = vector.load %arg10[%c0_57, %c0_58] : memref<8x512xf32, #tpu.memory_space<vmem>>, vector<8x512xf32>
      tpu.vector_store %arg10[%c0_57, %c0_58], %67 {strides = array<i32>} : memref<8x512xf32, #tpu.memory_space<vmem>>, vector<8x512xf32>,
    } else {
    }
    %c0_8 = arith.constant 0 : index
    %c0_9 = arith.constant 0 : index
    %9 = vector.load %arg8[%c0_8, %c0_9] : memref<10x256xbf16, #tpu.memory_space<vmem>>, vector<8x256xbf16>
    %c0_10 = arith.constant 0 : index
    %c0_11 = arith.constant 0 : index
    %c0_12 = arith.constant 0 : index
    %10 = vector.load %arg3[%c0_10, %c0_11, %c0_12] : memref<3x256x512xbf16, #tpu.memory_space<vmem>>, vector<1x256x512xbf16>
    %11 = vector.shape_cast %10 : vector<1x256x512xbf16> to vector<256x512xbf16>
    %cst_13 = arith.constant dense<0.000000e+00> : vector<8x512xf32>
    %12 = tpu.matmul %9, %11, %cst_13 {dimension_numbers = #tpu.dot_dimension_numbers<[1], [0], [0], [1], [0, 0, 1, 1], [], []>} : vector<8x256xbf16>, vector<256x512xbf16>, vector<8x512xf32> -> vector<8x512xf32>
    %c1_14 = arith.constant 1 : index
    %c0_15 = arith.constant 0 : index
    %13 = vector.load %arg8[%c1_14, %c0_15] : memref<10x256xbf16, #tpu.memory_space<vmem>>, vector<8x256xbf16>
    %c1_16 = arith.constant 1 : index
    %c0_17 = arith.constant 0 : index
    %c0_18 = arith.constant 0 : index
    %14 = vector.load %arg3[%c1_16, %c0_17, %c0_18] : memref<3x256x512xbf16, #tpu.memory_space<vmem>>, vector<1x256x512xbf16>
    %15 = vector.shape_cast %14 : vector<1x256x512xbf16> to vector<256x512xbf16>
    %cst_19 = arith.constant dense<0.000000e+00> : vector<8x512xf32>
    %16 = tpu.matmul %13, %15, %cst_19 {dimension_numbers = #tpu.dot_dimension_numbers<[1], [0], [0], [1], [0, 0, 1, 1], [], []>} : vector<8x256xbf16>, vector<256x512xbf16>, vector<8x512xf32> -> vector<8x512xf32>
    %17 = arith.addf %12, %16 : vector<8x512xf32>
    %c2 = arith.constant 2 : index
    %c0_20 = arith.constant 0 : index
    %18 = vector.load %arg8[%c2, %c0_20] : memref<10x256xbf16, #tpu.memory_space<vmem>>, vector<8x256xbf16>
    %c2_21 = arith.constant 2 : index
    %c0_22 = arith.constant 0 : index
    %c0_23 = arith.constant 0 : index
    %19 = vector.load %arg3[%c2_21, %c0_22, %c0_23] : memref<3x256x512xbf16, #tpu.memory_space<vmem>>, vector<1x256x512xbf16>
    %20 = vector.shape_cast %19 : vector<1x256x512xbf16> to vector<256x512xbf16>
    %cst_24 = arith.constant dense<0.000000e+00> : vector<8x512xf32>
    %21 = tpu.matmul %18, %20, %cst_24 {dimension_numbers = #tpu.dot_dimension_numbers<[1], [0], [0], [1], [0, 0, 1, 1], [], []>} : vector<8x256xbf16>, vector<256x512xbf16>, vector<8x512xf32> -> vector<8x512xf32>
    %22 = arith.addf %17, %21 : vector<8x512xf32>
    %c0_25 = arith.constant 0 : index
    %c0_26 = arith.constant 0 : index
    %23 = vector.load %arg4[%c0_25, %c0_26] : memref<1x512xf32, #tpu.memory_space<vmem>>, vector<1x512xf32>
    %24 = vector.broadcast %23 : vector<1x512xf32> to vector<8x512xf32>
    %25 = arith.addf %22, %24 : vector<8x512xf32>
    %c0_27 = arith.constant 0 : index
    %c0_28 = arith.constant 0 : index
    %26 = vector.load %arg9[%c0_27, %c0_28] : memref<8x512xf32, #tpu.memory_space<vmem>>, vector<8x512xf32>
    %c0_29 = arith.constant 0 : index
    %c0_30 = arith.constant 0 : index
    %27 = vector.load %arg10[%c0_29, %c0_30] : memref<8x512xf32, #tpu.memory_space<vmem>>, vector<8x512xf32>
    %cst_31 = arith.constant 0.000000e+00 : f32
    %28 = vector.broadcast %cst_31 : f32 to vector<8x512xf32>
    %29 = arith.subf %28, %26 : vector<8x512xf32>
    %30 = arith.addf %29, %27 : vector<8x512xf32>
    %cst_32 = arith.constant 1.000000e-01 : f32
    %31 = vector.broadcast %cst_32 : f32 to vector<8x512xf32>
    %32 = arith.mulf %31, %30 : vector<8x512xf32>
    %33 = arith.addf %26, %32 : vector<8x512xf32>
    %cst_33 = arith.constant 8.000000e-01 : f32
    %34 = vector.broadcast %cst_33 : f32 to vector<8x512xf32>
    %35 = arith.mulf %27, %34 : vector<8x512xf32>
    %cst_34 = arith.constant 1.000000e+00 : f32
    %36 = vector.broadcast %cst_34 : f32 to vector<8x512xf32>
    %37 = arith.subf %33, %36 : vector<8x512xf32>
    %cst_35 = arith.constant 0.000000e+00 : f32
    %38 = vector.broadcast %cst_35 : f32 to vector<8x512xf32>
    %39 = arith.cmpf ogt, %37, %38 : vector<8x512xf32>
    %40 = arith.extui %39 : vector<8x512xi1> to vector<8x512xi32>
    %41 = arith.sitofp %40 : vector<8x512xi32> to vector<8x512xf32>
    %cst_36 = arith.constant 1.000000e+00 : f32
    %42 = vector.broadcast %cst_36 : f32 to vector<8x512xf32>
    %43 = arith.subf %42, %41 : vector<8x512xf32>
    %44 = arith.mulf %43, %33 : vector<8x512xf32>
    %cst_37 = arith.constant 0.000000e+00 : f32
    %45 = vector.broadcast %cst_37 : f32 to vector<8x512xf32>
    %46 = arith.mulf %41, %45 : vector<8x512xf32>
    %47 = arith.addf %44, %46 : vector<8x512xf32>
    %c0_38 = arith.constant 0 : index
    %c0_39 = arith.constant 0 : index
    %48 = vector.load %arg9[%c0_38, %c0_39] : memref<8x512xf32, #tpu.memory_space<vmem>>, vector<8x512xf32>
    tpu.vector_store %arg9[%c0_38, %c0_39], %47 {strides = array<i32>} : memref<8x512xf32, #tpu.memory_space<vmem>>, vector<8x512xf32>,
    %49 = arith.addf %35, %25 : vector<8x512xf32>
    %c0_40 = arith.constant 0 : index
    %c0_41 = arith.constant 0 : index
    %50 = vector.load %arg10[%c0_40, %c0_41] : memref<8x512xf32, #tpu.memory_space<vmem>>, vector<8x512xf32>
    tpu.vector_store %arg10[%c0_40, %c0_41], %49 {strides = array<i32>} : memref<8x512xf32, #tpu.memory_space<vmem>>, vector<8x512xf32>,
    %51 = arith.truncf %41 : vector<8x512xf32> to vector<8x512xbf16>
    %c0_42 = arith.constant 0 : index
    %c0_43 = arith.constant 0 : index
    %52 = vector.load %arg5[%c0_42, %c0_43] : memref<512x256xbf16, #tpu.memory_space<vmem>>, vector<512x256xbf16>
    %cst_44 = arith.constant dense<0.000000e+00> : vector<8x256xf32>
    %53 = tpu.matmul %51, %52, %cst_44 {dimension_numbers = #tpu.dot_dimension_numbers<[1], [0], [0], [1], [0, 0, 1, 1], [], []>} : vector<8x512xbf16>, vector<512x256xbf16>, vector<8x256xf32> -> vector<8x256xf32>
    %c0_45 = arith.constant 0 : index
    %c0_46 = arith.constant 0 : index
    %54 = vector.load %arg6[%c0_45, %c0_46] : memref<4x8xbf16, #tpu.memory_space<vmem>>, vector<4x8xbf16>
    %55 = arith.truncf %53 : vector<8x256xf32> to vector<8x256xbf16>
    %cst_47 = arith.constant dense<0.000000e+00> : vector<4x256xf32>
    %56 = tpu.matmul %54, %55, %cst_47 {dimension_numbers = #tpu.dot_dimension_numbers<[1], [0], [0], [1], [0, 0, 1, 1], [], []>} : vector<4x8xbf16>, vector<8x256xbf16>, vector<4x256xf32> -> vector<4x256xf32>
    %cst_48 = arith.constant 5.000000e-01 : f32
    %57 = vector.broadcast %cst_48 : f32 to vector<4x256xf32>
    %58 = arith.cmpf ogt, %56, %57 : vector<4x256xf32>
    %59 = arith.extui %58 : vector<4x256xi1> to vector<4x256xi32>
    %60 = arith.sitofp %59 : vector<4x256xi32> to vector<4x256xf32>
    %61 = arith.truncf %60 : vector<4x256xf32> to vector<4x256xbf16>
    %c0_49 = arith.constant 0 : index
    %c0_50 = arith.constant 0 : index
    %c0_51 = arith.constant 0 : index
    %c0_52 = arith.constant 0 : index
    %62 = vector.load %arg7[%c0_49, %c0_50, %c0_51, %c0_52] : memref<1x1x4x256xbf16, #tpu.memory_space<vmem>>, vector<1x1x4x256xbf16>
    %63 = vector.shape_cast %62 : vector<1x1x4x256xbf16> to vector<4x256xbf16>
    %64 = vector.shape_cast %61 : vector<4x256xbf16> to vector<1x1x4x256xbf16>
    tpu.vector_store %arg7[%c0_49, %c0_50, %c0_51, %c0_52], %64 {strides = array<i32>} : memref<1x1x4x256xbf16, #tpu.memory_space<vmem>>, vector<1x1x4x256xbf16>,
    return
  }
  func.func @transform_0(%arg0: i32, %arg1: i32) -> (i32, i32, i32, i32) {
    %c0_i32 = arith.constant 0 : i32
    %c0_i32_0 = arith.constant 0 : i32
    %c0_i32_1 = arith.constant 0 : i32
    return %arg1, %arg0, %c0_i32, %c0_i32_0 : i32, i32, i32, i32
  }
  func.func @transform_1(%arg0: i32, %arg1: i32) -> (i32, i32, i32) {
    %c0_i32 = arith.constant 0 : i32
    %c0_i32_0 = arith.constant 0 : i32
    %c0_i32_1 = arith.constant 0 : i32
    %c0_i32_2 = arith.constant 0 : i32
    return %c0_i32, %c0_i32_0, %c0_i32_1 : i32, i32, i32
  }
  func.func @transform_2(%arg0: i32, %arg1: i32) -> (i32, i32) {
    %c0_i32 = arith.constant 0 : i32
    %c0_i32_0 = arith.constant 0 : i32
    %c0_i32_1 = arith.constant 0 : i32
    return %c0_i32, %c0_i32_0 : i32, i32
  }
  func.func @transform_3(%arg0: i32, %arg1: i32) -> (i32, i32) {
    %c0_i32 = arith.constant 0 : i32
    %c0_i32_0 = arith.constant 0 : i32
    %c0_i32_1 = arith.constant 0 : i32
    return %c0_i32, %c0_i32_0 : i32, i32
  }
  func.func @transform_4(%arg0: i32, %arg1: i32) -> (i32, i32) {
    %c0_i32 = arith.constant 0 : i32
    %c0_i32_0 = arith.constant 0 : i32
    %c0_i32_1 = arith.constant 0 : i32
    return %c0_i32, %c0_i32_0 : i32, i32
  }
  func.func @transform_5(%arg0: i32, %arg1: i32) -> (i32, i32, i32, i32) {
    %c0_i32 = arith.constant 0 : i32
    %c0_i32_0 = arith.constant 0 : i32
    %c0_i32_1 = arith.constant 0 : i32
    return %arg1, %arg0, %c0_i32, %c0_i32_0 : i32, i32, i32, i32
  }
}

</mosaic_0001>

<bundles_post_ra>
// kernel: tile.18
= control target key start
LH: loop header
LB: loop body
LE: loop exit
PB: predicated region body
PF: predicated region fallthrough
CT: control target
= control target key end

     0   :  { %s40_s0 = inlined_call_operand.vmem [shape: f32[8], index: 0, kind: input, shape index: {}]   ;;  %s41_s1 = inlined_call_operand.vmem [shape: f32[32,8], index: 1, kind: output, shape index: {}]  }
   0x1   :  { %v4_v0 = vld [vmem:[%s40_s0] ss:$0 sm:$0xff] }
   0x2   :  { %5 = vst [vmem:[%s41_s1] sm:$0xff] %v4_v0  ;;  %12 = vst [vmem:[%s41_s1 + $0x8] sm:$0xff] %v4_v0 }
   0x3   :  { %13 = vst [vmem:[%s41_s1 + $0x10] sm:$0xff] %v4_v0  ;;  %14 = vst [vmem:[%s41_s1 + $0x18] sm:$0xff] %v4_v0 }

// kernel: tile.19
= control target key start
LH: loop header
LB: loop body
LE: loop exit
PB: predicated region body
PF: predicated region fallthrough
CT: control target
= control target key end

     0   :  { %s7_s6 = smov 3  ;;  %s21_s9 = smov 3  ;;  %vm4_vm0 = vcmask 64512   ;;  %vm11_vm1 = vcmask 1048512   ;;  %vm18_vm2 = vcmask 982912   ;;  %vm25_vm3 = vcmask 917312   ;;  %s235_s0 = inlined_call_operand.vmem [shape: f32[32,8], index: 0, kind: input, shape index: {}]   ;;  %s236_s1 = inlined_call_operand.vmem [shape: f32[1,256], index: 1, kind: output, shape index: {}]  }
   0x1   :  { %v125_v0 = vld [vmem:[%s235_s0 + $0xf] ss:$16 sm:%s7_s6]   ;;  %s156_s10 = smov 120   ;;  %v127_v1 = vld [vmem:[%s235_s0 + $0xd] ss:$16 sm:%s21_s9]   ;;  %s14_s13 = smov 3 }
   0x2   :  { %9 = vrot.lane.b32.xlu0 %v125_v0, %s156_s10  ;;  %s157_s14 = smov 104   ;;  %v126_v2 = vld [vmem:[%s235_s0 + $0xe] ss:$16 sm:%s14_s13]   ;;  %s28_s17 = smov 3  ;;  %vm32_vm4 = vcmask 851712   ;;  %vm39_vm5 = vcmask 786112  }
   0x3   :  { %23 = vrot.lane.b32.xlu1 %v127_v1, %s157_s14  ;;  %v128_v3 = vld [vmem:[%s235_s0 + $0xc] ss:$16 sm:%s28_s17]   ;;  %s35_s20 = smov 3  ;;  %s42_s21 = smov 3  ;;  %vm46_vm6 = vcmask 720512   ;;  %vm53_vm7 = vcmask 654912  }
   0x4   :  { %s158_s22 = smov 112   ;;  %s159_s23 = smov 96   ;;  %v129_v4 = vld [vmem:[%s235_s0 + $0xb] ss:$16 sm:%s35_s20]   ;;  %v130_v5 = vld [vmem:[%s235_s0 + $0xa] ss:$16 sm:%s42_s21]  }
   0x5   :  { %s49_s28 = smov 3  ;;  %s56_s29 = smov 3  ;;  %vm60_vm8 = vcmask 589312   ;;  %vm67_vm9 = vcmask 523712   ;;  %vm74_vm10 = vcmask 458112   ;;  %vm81_vm11 = vcmask 392512  }
   0x6   :  { %16 = vrot.lane.b32.xlu0 %v126_v2, %s158_s22  ;;  %s160_s30 = smov 88   ;;  %s161_s2 = smov 80   ;;  %v131_v6 = vld [vmem:[%s235_s0 + $0x9] ss:$16 sm:%s49_s28]   ;;  %vm88_vm12 = vcmask 326912   ;;  %vm95_vm13 = vcmask 261312  }
   0x7   :  { %30 = vrot.lane.b32.xlu1 %v128_v3, %s159_s23  ;;  %v132_v7 = vld [vmem:[%s235_s0 + $0x8] ss:$16 sm:%s56_s29]   ;;  %s63_s7 = smov 3  ;;  %s70_s8 = smov 3  ;;  %vm102_vm14 = vcmask 195712   ;;  %vm109_vm15 = vcmask 130112  }
   0x8   :  { %s162_s9 = smov 72   ;;  %s163_s10 = smov 64   ;;  %v133_v8 = vld [vmem:[%s235_s0 + $0x7] ss:$16 sm:%s63_s7]   ;;  %v134_v9 = vld [vmem:[%s235_s0 + $0x6] ss:$16 sm:%s70_s8]  }
   0x9   :  { %s2_s13 = smov 3  ;;  %s77_s16 = smov 3 }
   0xa   :  { %37 = vrot.lane.b32.xlu0 %v129_v4, %s160_s30  ;;  %v3_v10 = vld [vmem:[%s235_s0] ss:$16 sm:%s2_s13]   ;;  %s84_s19 = smov 3  ;;  %s164_s20 = smov 56  }
   0xb   :  { %44 = vrot.lane.b32.xlu1 %v130_v5, %s161_s2  ;;  %5 = vst.msk [vmem:[#allocation0] ss:$8 sm:$0x3] %vm4_vm0, %v3_v10   ;;  %s165_s21 = smov 48   ;;  %v135_v11 = vld [vmem:[%s235_s0 + $0x5] ss:$16 sm:%s77_s16]  }
   0xc   :  { %v136_v12 = vld [vmem:[%s235_s0 + $0x4] ss:$16 sm:%s84_s19]   ;;  %s91_s26 = smov 3  ;;  %s98_s27 = smov 3 }
   0xd   :  { %s166_s28 = smov 40   ;;  %s167_s29 = smov 32   ;;  %v137_v13 = vld [vmem:[%s235_s0 + $0x3] ss:$16 sm:%s91_s26]   ;;  %v138_v14 = vld [vmem:[%s235_s0 + $0x2] ss:$16 sm:%s98_s27]  }
   0xe   :  { %51 = vrot.lane.b32.xlu0 %v131_v6, %s162_s9  ;;  %s105_s5 = smov 3  ;;  %s168_s6 = smov 24  }
   0xf   :  { %58 = vrot.lane.b32.xlu1 %v132_v7, %s163_s10  ;;  %s169_s7 = smov 16   ;;  %v139_v15 = vld [vmem:[%s235_s0 + $0x1] ss:$16 sm:%s105_s5]   ;;  %s170_s0 = smov 8  }
  0x12   :  { %65 = vrot.lane.b32.xlu0 %v133_v8, %s164_s20 }
  0x13   :  { %72 = vrot.lane.b32.xlu1 %v134_v9, %s165_s21 }
  0x16   :  { %79 = vrot.lane.b32.xlu0 %v135_v11, %s166_s28 }
  0x17   :  { %86 = vrot.lane.b32.xlu1 %v136_v12, %s167_s29 }
  0x1a   :  { %93 = vrot.lane.b32.xlu0 %v137_v13, %s168_s6 }
  0x1b   :  { %100 = vrot.lane.b32.xlu1 %v138_v14, %s169_s7 }
  0x1e   :  { %107 = vrot.lane.b32.xlu0 %v139_v15, %s170_s0 }
  0x74   :  { %v10_v16 = vpop.permute.xlu0 %9  }
  0x75   :  { %12 = vst.msk [vmem:[#allocation0] ss:$8 sm:$0x3] %vm11_vm1, %v10_v16   ;;  %v24_v17 = vpop.permute.xlu1 %23  }
  0x78   :  { %v17_v18 = vpop.permute.xlu0 %16  }
  0x79   :  { %19 = vst.msk [vmem:[#allocation0] ss:$8 sm:$0x3] %vm18_vm2, %v17_v18   ;;  %v31_v19 = vpop.permute.xlu1 %30  }
  0x7a   :  { %26 = vst.msk [vmem:[#allocation0] ss:$8 sm:$0x3] %vm25_vm3, %v24_v17  }
  0x7b   :  { %33 = vst.msk [vmem:[#allocation0] ss:$8 sm:$0x3] %vm32_vm4, %v31_v19  }
  0x7c   :  { %v38_v20 = vpop.permute.xlu0 %37  }
  0x7d   :  { %40 = vst.msk [vmem:[#allocation0] ss:$8 sm:$0x3] %vm39_vm5, %v38_v20   ;;  %v45_v21 = vpop.permute.xlu1 %44  }
  0x7e   :  { %47 = vst.msk [vmem:[#allocation0] ss:$8 sm:$0x3] %vm46_vm6, %v45_v21  }
  0x80   :  { %v52_v22 = vpop.permute.xlu0 %51  }
  0x81   :  { %54 = vst.msk [vmem:[#allocation0] ss:$8 sm:$0x3] %vm53_vm7, %v52_v22   ;;  %v59_v23 = vpop.permute.xlu1 %58  }
  0x82   :  { %61 = vst.msk [vmem:[#allocation0] ss:$8 sm:$0x3] %vm60_vm8, %v59_v23  }
  0x84   :  { %v66_v24 = vpop.permute.xlu0 %65  }
  0x85   :  { %68 = vst.msk [vmem:[#allocation0] ss:$8 sm:$0x3] %vm67_vm9, %v66_v24   ;;  %v73_v25 = vpop.permute.xlu1 %72  }
  0x86   :  { %75 = vst.msk [vmem:[#allocation0] ss:$8 sm:$0x3] %vm74_vm10, %v73_v25  }
  0x88   :  { %v80_v26 = vpop.permute.xlu0 %79  }
  0x89   :  { %82 = vst.msk [vmem:[#allocation0] ss:$8 sm:$0x3] %vm81_vm11, %v80_v26   ;;  %v87_v27 = vpop.permute.xlu1 %86  }
  0x8a   :  { %89 = vst.msk [vmem:[#allocation0] ss:$8 sm:$0x3] %vm88_vm12, %v87_v27  }
  0x8c   :  { %v94_v28 = vpop.permute.xlu0 %93  }
  0x8d   :  { %96 = vst.msk [vmem:[#allocation0] ss:$8 sm:$0x3] %vm95_vm13, %v94_v28   ;;  %v101_v29 = vpop.permute.xlu1 %100  }
  0x8e   :  { %103 = vst.msk [vmem:[#allocation0] ss:$8 sm:$0x3] %vm102_vm14, %v101_v29  }
  0x90   :  { %v108_v30 = vpop.permute.xlu0 %107  }
  0x91   :  { %110 = vst.msk [vmem:[#allocation0] ss:$8 sm:$0x3] %vm109_vm15, %v108_v30  }
  0x98   :  { %v115_v31 = vld [vmem:[#allocation0] sm:$0x1]  ;;  %v120_v32 = vld [vmem:[#allocation0 + $0x8] sm:$0x1] }
  0x99   :  { %118 = vst [vmem:[%s236_s1] sm:$0x1] %v115_v31  ;;  %140 = vst [vmem:[%s236_s1 + $0x1] sm:$0x1] %v120_v32 }

// kernel: spike_cnn_forward.3
= control target key start
LH: loop header
LB: loop body
LE: loop exit
PB: predicated region body
PF: predicated region fallthrough
CT: control target
= control target key end

     0   :  { %s1571_s18 = smov 0   ;;  %s1573_s19 = smov 0   ;;  %s1864_s0 = inlined_call_operand.vmem [shape: bf16[3,2,32,64], index: 0, kind: input, shape index: {}]   ;;  %s1865_s1 = inlined_call_operand.vmem [shape: bf16[3,64,256], index: 1, kind: input, shape index: {}]   ;;  %s1866_s2 = inlined_call_operand.vmem [shape: f32[1,256], index: 2, kind: input, shape index: {}]   ;;  %s1867_s3 = inlined_call_operand.vmem [shape: bf16[256,128], index: 3, kind: input, shape index: {}]   ;;  %s1868_s4 = inlined_call_operand.vmem [shape: bf16[16,32], index: 4, kind: input, shape index: {}]   ;;  %s1869_s5 = inlined_call_operand.vmem [shape: bf16[3,2,16,128], index: 5, kind: output, shape index: {}]  }
   0x1   :  { %s1575_s20 = smov 0   ;;  %s1577_s21 = smov 0  }
   0x2   :  { %s1579_s22 = smov 0  }
   0x3 LB: > { %s24_s23 = sadd.s32 1, %s1526_s20  ;;  %s27_s24 = sadd.s32 1, %s1530_s21  ;;  %s1534_s22 = sphi %s1579_s22, %s15_s22   ;;  %s1530_s21 = sphi %s1577_s21, %s1877_s21   ;;  %s1526_s20 = sphi %s1575_s20, %s1876_s20   ;;  %s1522_s19 = sphi %s1573_s19, %s1875_s19   ;;  %s1518_s18 = sphi %s1571_s18, %s1874_s18  }
   0x4   : > { %p25_p0 = scmp.ge.s32.totalorder %s24_s23, 3  ;;  %p1244_p1 = scmp.ge.s32.totalorder %s1534_s22, 1 }
   0x5   : > { %p207_p2 = scmp.lt.s32.totalorder %s1534_s22, 7 }
   0x6   : > { %s1879_s23 = smov (%p25_p0, %s24_s23), 0  ;;  %s1881_s24 = smov (!%p25_p0, %s27_s24), %s1530_s21 }
   0x7   : > { %p208_p3 = pnand %p1244_p1, %p207_p2  ;;  %p29_p4 = scmp.ge.s32.totalorder %s1881_s24, 2 }
   0x8   : > { %p243_p5 = scmp.lt.s32.totalorder (!%p208_p3), %s1518_s18, 2  ;;  %p245_p6 = scmp.lt.s32.totalorder (!%p208_p3), %s1522_s19, 1 }
   0x9   : > { %s1883_s24 = smov (%p29_p4, %s1881_s24), 0  ;;  %211 = sbr.rel (%p208_p3) target bundleno = 518 (0x206), region = 40 }
   0xa   : > { %p1251_p7 = scmp.ne.s32.totalorder (!%p208_p3), %s1518_s18, 0 }
   0xe   : > { %vm262_vm0 = vcmask 516096   ;;  %vm263_vm1 = vsmask.f32 256  ;;  %v265_v0 = vld [vmem:[#allocation2] sm:$0x1]  ;;  %s244_s25 = scalar_select %p243_p5, %s1518_s18, 2 }
   0xf   : > { %vm1605_vm2 = vmand %vm262_vm0, %vm263_vm1  ;;  %s1885_s19 = smov (!%p245_p6, %s1522_s19), 1  ;;  %vm315_vm3 = vsmask.f32 7938  ;;  %vm272_vm4 = vsmask.f32 4368  ;;  %vm314_vm5 = vcmask 519168  }
  0x10   : > { %v266_v2 = vsel %vm1605_vm2, 0, %v265_v0  ;;  %s1246_s26 = sshll.u32 %s244_s25, 3  ;;  %s1249_s27 = sshll.u32 %s244_s25, 2  ;;  %vm1623_vm6 = vmand %vm314_vm5, %vm315_vm3  ;;  %v324_v18 = vld [vmem:[#allocation2 + $0x10] sm:$0x1] }
  0x11   : > { %267 = vst [vmem:[#allocation2] sm:$0x1] %v266_v2  ;;  %s1245_s28 = sshll.u32 %s1885_s19, 2  ;;  %s1248_s29 = sshll.u32 %s1885_s19, 1  ;;  %vm273_vm7 = vmor %vm263_vm1, %vm272_vm4 }
  0x12   : > { %s249_s30 = sadd.s32 %s1246_s26, %s1245_s28  ;;  %s258_s6 = sadd.s32 %s1249_s27, %s1248_s29  ;;  %vm327_vm8 = vmand %vm262_vm0, %vm315_vm3 }
  0x13   : > { %s1247_s7 = sshll.u32 %s249_s30, 2  ;;  %s1250_s8 = sshll.u32 %s258_s6, 2 }
  0x14   : > { %s251_s11 = scalar_lea.vmem %s1864_s0, %s1247_s7  ;;  %s1619_s14 = scalar_lea.vmem %s1869_s5, %s1250_s8 }
  0x15   : > { %v271_v3 = vld [vmem:[%s251_s11 + $0xc] sm:$0xf]  ;;  %v268_v4 = vld [vmem:[%s251_s11] sm:$0xf]  ;;  %v269_v8 = vld [vmem:[%s251_s11 + $0x4] sm:$0xf] }
  0x16   : > { %v301_v5 = vshrl.u32 %v271_v3, 16  ;;  %v275_v6 = vshrl.u32 %v268_v4, 16  ;;  %v278_v7 = vshll.u32 %v268_v4, 16  ;;  %v283_v9 = vshrl.u32 %v269_v8, 16  ;;  %v270_v11 = vld [vmem:[%s251_s11 + $0x8] sm:$0xf] }
  0x17   : > { %v286_v10 = vshll.u32 %v269_v8, 16  ;;  %v304_v12 = vshll.u32 %v271_v3, 16  ;;  %v292_v15 = vshrl.u32 %v270_v11, 16  ;;  %v295_v16 = vshll.u32 %v270_v11, 16 }
  0x18   : > { %v303_v13 = vrot.slane %v301_v5, 7  ;;  %v277_v14 = vrot.slane %v275_v6, 7  ;;  %v317_v19 = vld [vmem:[#allocation2] sm:$0xf]  ;;  %v285_v20 = vrot.slane %v283_v9, 7 }
  0x19   : > { %v294_v24 = vrot.slane %v292_v15, 7 }
  0x1a   : > { %v308_v21 = vrot.slane %v303_v13, 4  ;;  %v280_v22 = vor.u32 %v278_v7, %v277_v14  ;;  %v281_v23 = vrot.slane %v277_v14, 4  ;;  %v288_v25 = vor.u32 %v286_v10, %v285_v20 }
  0x1b   : > { %v290_v26 = vrot.slane %v285_v20, 4  ;;  %v306_v27 = vor.u32 %v304_v12, %v303_v13  ;;  %v297_v30 = vor.u32 %v295_v16, %v294_v24  ;;  %v299_v31 = vrot.slane %v294_v24, 4 }
  0x1c   : > { %v325_v28 = vsel %vm1605_vm2, %v308_v21, %v324_v18  ;;  %v318_v29 = vsel %vm1623_vm6, %v280_v22, %v317_v19  ;;  %v289_v32 = vsel %vm273_vm7, %v281_v23, %v288_v25 }
  0x1d   : > { %326 = vst [vmem:[#allocation2 + $0x10] sm:$0x1] %v325_v28  ;;  %319 = vst [vmem:[#allocation2] sm:$0xf] %v318_v29  ;;  %v298_v33 = vsel %vm273_vm7, %v290_v26, %v297_v30  ;;  %v307_v34 = vsel %vm273_vm7, %v299_v31, %v306_v27 }
  0x1e   : > { %321 = vst.msk [vmem:[#allocation2 + $0x4] sm:$0xf] %vm314_vm5, %v289_v32  ;;  %322 = vst.msk [vmem:[#allocation2 + $0x8] sm:$0xf] %vm314_vm5, %v298_v33 }
  0x1f   : > { %323 = vst.msk [vmem:[#allocation2 + $0xc] sm:$0xf] %vm314_vm5, %v307_v34 }
  0x22   : > { %334 = sbr.rel (%p1251_p7) target bundleno = 48 (0x30), region = 44 }
  0x24   : > { %v328_v35 = vld [vmem:[#allocation2 + $0x10] sm:$0x1] }
  0x25   : > { %v329_v36 = vsel %vm327_vm8, 0, %v328_v35 }
  0x26   : > { %330 = vst [vmem:[#allocation2 + $0x10] sm:$0x1] %v329_v36 }
  0x27   : > { %v1536_v37 = vmov 0.0  }
  0x28   : > { %335 = vst [vmem:[#allocation3 + $0x30] sm:$0xff] %v1536_v37  ;;  %336 = vst [vmem:[#allocation3] sm:$0xff] %v1536_v37 }
  0x29   : > { %337 = vst [vmem:[#allocation3 + $0x18] sm:$0xff] %v1536_v37  ;;  %338 = vst [vmem:[#allocation3 + $0x10] sm:$0xff] %v1536_v37 }
  0x2a   : > { %339 = vst [vmem:[#allocation3 + $0x8] sm:$0xff] %v1536_v37  ;;  %340 = vst [vmem:[#allocation3 + $0x20] sm:$0xff] %v1536_v37 }
  0x2b   : > { %341 = vst [vmem:[#allocation3 + $0x28] sm:$0xff] %v1536_v37  ;;  %342 = vst [vmem:[#allocation3 + $0x38] sm:$0xff] %v1536_v37 }
  0x2c   : > { %343 = vst [vmem:[#allocation4] sm:$0xff] %v1536_v37  ;;  %344 = vst [vmem:[#allocation4 + $0x18] sm:$0xff] %v1536_v37 }
  0x2d   : > { %345 = vst [vmem:[#allocation4 + $0x10] sm:$0xff] %v1536_v37  ;;  %346 = vst [vmem:[#allocation4 + $0x20] sm:$0xff] %v1536_v37 }
  0x2e   : > { %347 = vst [vmem:[#allocation4 + $0x28] sm:$0xff] %v1536_v37  ;;  %348 = vst [vmem:[#allocation4 + $0x8] sm:$0xff] %v1536_v37 }
  0x2f   : > { %349 = vst [vmem:[#allocation4 + $0x30] sm:$0xff] %v1536_v37  ;;  %350 = vst [vmem:[#allocation4 + $0x38] sm:$0xff] %v1536_v37 }
  0x30 PF: > { %v1439_v38 = vld [vmem:[%s1865_s1 + $0x74] ss:$8 sps:$4 sm:$0xff]   ;;  %v1537_v40 = vmov 0   ;;  %v1443_v41 = vld [vmem:[%s1865_s1 + $0x70] ss:$8 sps:$4 sm:$0xff]   ;;  %v1692_v58 = vld [vmem:[#allocation2 + $0x8] sm:$0xff]  }
  0x31   : > { %v1441_v39 = vld [vmem:[%s1865_s1 + $0x34] ss:$8 sps:$4 sm:$0xff]   ;;  %486 = vmatprep.mubr.bf16.mxu0 %v1537_v40  ;;  %583 = vmatprep.mubr.bf16.mxu1 %v1537_v40  ;;  %v1444_v42 = vld [vmem:[%s1865_s1 + $0x30] ss:$8 sps:$4 sm:$0xff]   ;;  %v1445_v43 = vld [vmem:[%s1865_s1 + $0x64] ss:$8 sps:$4 sm:$0xff]  }
  0x32   : > { %462 = vmatprep.subr.bf16.mxu0 %v1439_v38  ;;  %559 = vmatprep.subr.bf16.mxu1 %v1441_v39  ;;  %v1447_v44 = vld [vmem:[%s1865_s1 + $0x24] ss:$8 sps:$4 sm:$0xff]   ;;  %v1449_v45 = vld [vmem:[%s1865_s1 + $0x60] ss:$8 sps:$4 sm:$0xff]   ;;  %v1451_v47 = vld [vmem:[%s1865_s1 + $0x54] ss:$8 sps:$4 sm:$0xff]  }
  0x33   : > { %463 = vmatpush1.bf16.msra.mxu0 %v1443_v41  ;;  %560 = vmatpush1.bf16.msra.mxu1 %v1444_v42  ;;  %v1450_v46 = vld [vmem:[%s1865_s1 + $0x20] ss:$8 sps:$4 sm:$0xff]   ;;  %v1453_v48 = vld [vmem:[%s1865_s1 + $0x14] ss:$8 sps:$4 sm:$0xff]   ;;  %v1455_v49 = vld [vmem:[%s1865_s1 + $0x50] ss:$8 sps:$4 sm:$0xff]  }
  0x34   : > { %464 = vmatprep.subr.bf16.mxu0 %v1445_v43  ;;  %561 = vmatprep.subr.bf16.mxu1 %v1447_v44  ;;  %v1456_v50 = vld [vmem:[%s1865_s1 + $0x10] ss:$8 sps:$4 sm:$0xff]   ;;  %v1457_v51 = vld [vmem:[%s1865_s1 + $0x44] ss:$8 sps:$4 sm:$0xff]   ;;  %v1461_v53 = vld [vmem:[%s1865_s1 + $0x40] ss:$8 sps:$4 sm:$0xff]  }
  0x35   : > { %v1459_v52 = vld [vmem:[%s1865_s1 + $0x4] ss:$8 sps:$4 sm:$0xff]   ;;  %v1462_v54 = vld [vmem:[%s1865_s1] ss:$8 sps:$4 sm:$0xff]   ;;  %v1467_v59 = vld [vmem:[%s1865_s1 + $0xb4] ss:$8 sps:$4 sm:$0xff]  }
  0x36   : > { %v351_v55 = vld [vmem:[#allocation2] sm:$0xf]  ;;  %v1689_v56 = vld [vmem:[#allocation2 + $0x4] sm:$0xf]  ;;  %v395_v62 = vshll.u32 %v1692_v58, 16  ;;  %v1468_v63 = vld [vmem:[%s1867_s3 + $0x78] sm:$0xff]  }
  0x37   : > { %465 = vmatpush1.bf16.msra.mxu0 %v1449_v45  ;;  %562 = vmatpush1.bf16.msra.mxu1 %v1450_v46  ;;  %v1260_v57 = vcombine.low %v351_v55, %v1689_v56  ;;  %vm386_vm9 = vsmask.f32 7424  ;;  %vm447_vm10 = vcmask 523264   ;;  %v1465_v2 = vld [vmem:[%s1865_s1 + $0xb0] ss:$8 sps:$4 sm:$0xff]   ;;  %v399_v7 = vshrl.u32 %v1692_v58, 16 }
  0x38   : > { %466 = vmatprep.subr.bf16.mxu0 %v1451_v47  ;;  %563 = vmatprep.subr.bf16.mxu1 %v1453_v48  ;;  %v397_v1 = vrot.slane %v395_v62, 1  ;;  %v1469_v3 = vld [vmem:[%s1867_s3 + $0x38] sm:$0xff]   ;;  %v1472_v4 = vld [vmem:[%s1865_s1 + $0xa4] ss:$8 sps:$4 sm:$0xff]   ;;  %v1473_v6 = vld [vmem:[%s1867_s3 + $0x70] sm:$0xff]   ;;  %v619_v28 = vrot.slane %v1692_v58, 1 }
  0x39   : > { %v388_v60 = vshrl.u32 %v1260_v57, 16  ;;  %v390_v61 = vshll.u32 %v1260_v57, 16  ;;  %v1715_v8 = vld [vmem:[#allocation2 + $0x10] ss:$0 sps:$4 sm:$0x11]   ;;  %v1479_v13 = vld [vmem:[%s1867_s3 + $0x68] sm:$0xff]  }
  0x3a   : > { %v1474_v10 = vld [vmem:[%s1867_s3 + $0x30] sm:$0xff]   ;;  %v1470_v11 = vld [vmem:[%s1865_s1 + $0xa0] ss:$8 sps:$4 sm:$0xff]   ;;  %v403_v12 = vshll.u32 %v1715_v8, 16  ;;  %v401_v14 = vor.u32 %v399_v7, %v397_v1  ;;  %v1483_v22 = vld [vmem:[%s1865_s1 + $0x84] ss:$8 sps:$4 sm:$0xff]  }
  0x3b   : > { %467 = vmatpush1.bf16.msra.mxu0 %v1455_v49  ;;  %564 = vmatpush1.bf16.msra.mxu1 %v1456_v50  ;;  %v392_v0 = vrot.slane %v390_v61, 1  ;;  %v1478_v16 = vld [vmem:[%s1865_s1 + $0x94] ss:$8 sps:$4 sm:$0xff]   ;;  %v1480_v17 = vld [vmem:[%s1867_s3 + $0x28] sm:$0xff]   ;;  %v1484_v18 = vld [vmem:[%s1867_s3 + $0x60] sm:$0xff]   ;;  %vm617_vm11 = vcmask 1046528  }
  0x3c   : > { %468 = vmatprep.subr.bf16.mxu0 %v1457_v51  ;;  %565 = vmatprep.subr.bf16.mxu1 %v1459_v52  ;;  %v405_v15 = vrot.slane %v403_v12, 1  ;;  %v1476_v20 = vld [vmem:[%s1865_s1 + $0x90] ss:$8 sps:$4 sm:$0xff]   ;;  %v604_v21 = vld [vmem:[#allocation2] sm:$0xe]  ;;  %v621_v33 = vrot.slane %v1715_v8, 1 }
  0x3d   : > { %v393_v5 = vor.u32 %v392_v0, %v388_v60  ;;  %v1291_v23 = vcombine.low %v604_v21, %v1689_v56  ;;  %v1481_v24 = vld [vmem:[%s1865_s1 + $0x80] ss:$8 sps:$4 sm:$0xff]   ;;  %v1487_v26 = vld [vmem:[%s1867_s3 + $0x58] sm:$0xff]   ;;  %v1489_v30 = vld [vmem:[%s1867_s3 + $0x50] sm:$0xff]   ;;  %v1538_v38 = vmov 0.0   ;;  %vm1540_vm8 = vmmov 0  }
  0x3e   : > { %v406_v19 = vsel %vm386_vm9, %v401_v14, %v405_v15  ;;  %v1485_v25 = vld [vmem:[%s1867_s3 + $0x20] sm:$0xff]   ;;  %v1488_v29 = vld [vmem:[%s1867_s3 + $0x18] sm:$0xff]   ;;  %v1490_v32 = vld [vmem:[%s1867_s3 + $0x10] sm:$0xff]  }
  0x3f   : > { %469 = vmatpush1.bf16.msra.mxu0 %v1461_v53  ;;  %566 = vmatpush1.bf16.msra.mxu1 %v1462_v54  ;;  %v398_v9 = vsel %vm386_vm9, %v393_v5, %v397_v1  ;;  %v618_v27 = vrot.slane %v1291_v23, 1  ;;  %v1491_v34 = vld [vmem:[%s1867_s3 + $0x48] sm:$0xff]   ;;  %v751_v35 = vld [vmem:[#allocation3] sm:$0xff]  ;;  %v1792_v54 = vld [vmem:[#allocation4 + $0x8] sm:$0xff]  ;;  %vm1084_vm9 = vcmask 261120  }
  0x40   : > { %677 = vmatprep.subr.bf16.mxu0 %v1467_v59  ;;  %1355 = vmatprep.subr.bf16.mxu1 %v1468_v63  ;;  %v753_v36 = vld [vmem:[#allocation3 + $0x10] sm:$0xff]  ;;  %v1776_v37 = vld [vmem:[#allocation4 + $0x18] sm:$0xff]  ;;  %v1779_v39 = vld [vmem:[#allocation4 + $0x20] sm:$0xff]  ;;  %v767_v41 = vsub.f32 0.0, %v751_v35 }
  0x41   : > { %v620_v31 = vsel %vm617_vm11, %v618_v27, %v619_v28  ;;  %v769_v42 = vsub.f32 0.0, %v753_v36  ;;  %v750_v43 = vld [vmem:[#allocation3 + $0x30] sm:$0xff]  ;;  %v752_v44 = vld [vmem:[#allocation3 + $0x18] sm:$0xff]  ;;  %v1782_v45 = vld [vmem:[#allocation4] sm:$0xff] }
  0x42   : > { %1281 = vmatmul.mubr.msk.bf16.vlgmr.msra.gmra.mxu1 %vm447_vm10, %v1260_v57  ;;  %1271 = vmatmul.mubr.msk.bf16.vlgmr.msra.gmra.mxu0 %vm447_vm10, %v398_v9  ;;  %v1784_v46 = vld [vmem:[#allocation4 + $0x10] sm:$0xff]  ;;  %v766_v47 = vsub.f32 0.0, %v750_v43  ;;  %v768_v48 = vsub.f32 0.0, %v752_v44  ;;  %v755_v49 = vld [vmem:[#allocation3 + $0x20] sm:$0xff]  ;;  %v775_v51 = vadd.f32 %v767_v41, %v1776_v37  ;;  %v757_v53 = vld [vmem:[#allocation3 + $0x38] sm:$0xff]  ;;  %v622_v57 = vsel %vm617_vm11, %v619_v28, %v621_v33 }
  0x43   : > { %1356 = vmatpush3.bf16.msra.mxu1 %v1469_v3  ;;  %593 = vmatprep.mubr.bf16.mxu1 %v1537_v40  ;;  %v1492_v50 = vld [vmem:[%s1867_s3 + $0x8] sm:$0xff]   ;;  %v777_v52 = vadd.f32 %v769_v42, %v1779_v39  ;;  %v771_v56 = vsub.f32 0.0, %v755_v49  ;;  %v773_v59 = vsub.f32 0.0, %v757_v53  ;;  %v754_v60 = vld [vmem:[#allocation3 + $0x8] sm:$0xff] }
  0x44   : > { %1357 = vmatprep.subr.bf16.mxu1 %v1473_v6  ;;  %678 = vmatpush1.bf16.msra.mxu0 %v1465_v2  ;;  %v1794_v55 = vld [vmem:[#allocation4 + $0x38] sm:$0xff]  ;;  %v1799_v61 = vld [vmem:[#allocation3 + $0x28] sm:$0xff]  ;;  %v783_v63 = vmul.f32 0.1, %v775_v51  ;;  %v1804_v2 = vld [vmem:[#allocation4 + $0x30] sm:$0xff]  ;;  %v770_v3 = vsub.f32 0.0, %v754_v60 }
  0x45   : > { %496 = vmatprep.mubr.bf16.mxu0 %v1537_v40  ;;  %679 = vmatprep.subr.bf16.mxu0 %v1472_v4  ;;  %v1801_v62 = vld [vmem:[#allocation4 + $0x28] sm:$0xff]  ;;  %v785_v0 = vmul.f32 0.1, %v777_v52  ;;  %v779_v1 = vadd.f32 %v771_v56, %v1792_v54  ;;  %v781_v7 = vadd.f32 %v773_v59, %v1794_v55  ;;  %v772_v8 = vsub.f32 0.0, %v1799_v61 }
  0x46   : > { %v1493_v4 = vld [vmem:[%s1867_s3 + $0x40] sm:$0xff]   ;;  %v791_v9 = vadd.f32 %v783_v63, %v751_v35  ;;  %v778_v12 = vadd.f32 %v770_v3, %v1801_v62 }
  0x47   : > { %1358 = vmatpush3.bf16.msra.mxu1 %v1474_v10  ;;  %v793_v10 = vadd.f32 %v785_v0, %v753_v36  ;;  %v789_v15 = vmul.f32 0.1, %v781_v7 }
  0x48   : > { %1359 = vmatprep.subr.bf16.mxu1 %v1479_v13  ;;  %680 = vmatpush1.bf16.msra.mxu0 %v1470_v11  ;;  %v787_v11 = vmul.f32 0.1, %v779_v1  ;;  %v786_v21 = vmul.f32 0.1, %v778_v12 }
  0x49   : > { %681 = vmatprep.subr.bf16.mxu0 %v1478_v16  ;;  %v780_v16 = vadd.f32 %v772_v8, %v1804_v2 }
  0x4a   : > { %1282 = vmatmul.mubr.msk.bf16.gmra.mxu1 %vm447_vm10, %v1692_v58  ;;  %1272 = vmatmul.mubr.msk.bf16.gmra.mxu0 %vm447_vm10, %v406_v19  ;;  %v774_v58 = vadd.f32 %v766_v47, %v1782_v45  ;;  %v1305_v19 = vadd.f32 -1.0, %v793_v10  ;;  %v1817_v27 = vadd.f32 %v786_v21, %v754_v60  ;;  %v732_v21 = vlaneseq }
  0x4b   : > { %1360 = vmatpush3.bf16.msra.mxu1 %v1480_v17  ;;  %701 = vmatprep.mubr.bf16.mxu0 %v1537_v40  ;;  %v1494_v17 = vld [vmem:[%s1867_s3] sm:$0xff]  }
  0x4c   : > { %1361 = vmatprep.subr.bf16.mxu1 %v1484_v18  ;;  %682 = vmatpush1.bf16.msra.mxu0 %v1476_v20  ;;  %v782_v5 = vmul.f32 0.1, %v774_v58  ;;  %v1303_v18 = vadd.f32 -1.0, %v791_v9  ;;  %v795_v20 = vadd.f32 %v787_v11, %v755_v49  ;;  %vm817_vm13 = vcmp.gt.f32.partialorder %v1305_v19, 0.0 }
  0x4d   : > { %683 = vmatprep.subr.bf16.mxu0 %v1483_v22 }
  0x4e   : > { %v790_v13 = vadd.f32 %v782_v5, %v750_v43  ;;  %vm815_vm12 = vcmp.gt.f32.partialorder %v1303_v18, 0.0 }
  0x4f   : > { %1362 = vmatpush3.bf16.msra.mxu1 %v1485_v25  ;;  %v788_v25 = vmul.f32 0.1, %v780_v16  ;;  %v1311_v28 = vsel %vm815_vm12, 1.0, %v1538_v38  ;;  %vm1334_vm14 = vmpackc.low %vm817_vm13, %vm815_vm12 }
  0x50   : > { %1363 = vmatprep.subr.bf16.mxu1 %v1487_v26  ;;  %684 = vmatpush1.bf16.msra.mxu0 %v1481_v24  ;;  %v1302_v22 = vadd.f32 -1.0, %v790_v13  ;;  %v797_v24 = vadd.f32 %v789_v15, %v757_v53  ;;  %v1307_v26 = vadd.f32 -1.0, %v795_v20 }
  0x51   : > { %1386 = vmatprep.subr.bf16.mxu0 %v1538_v38  ;;  %v796_v59 = vadd.f32 %v788_v25, %v1799_v61  ;;  %v733_v25 = vshrl.u32 %v732_v21, 7 }
  0x52   : > { %vm814_vm15 = vcmp.gt.f32.partialorder %v1302_v22, 0.0  ;;  %v1309_v41 = vadd.f32 -1.0, %v797_v24  ;;  %vm819_vm2 = vcmp.gt.f32.partialorder %v1307_v26, 0.0 }
  0x53   : > { %1364 = vmatpush3.bf16.msra.mxu1 %v1488_v29  ;;  %1300 = vmatmul.mubr.msk.bf16.vlgmr.msra.gmra.mxu0 %vm447_vm10, %v620_v31  ;;  %v1313_v29 = vsel %vm817_vm13, 1.0, %v1538_v38  ;;  %v1310_v35 = vsel %vm814_vm15, 1.0, %v1538_v38  ;;  %v1308_v5 = vadd.f32 -1.0, %v796_v59 }
  0x54   : > { %1365 = vmatprep.subr.bf16.mxu1 %v1489_v30  ;;  %711 = vmatprep.mubr.bf16.mxu0 %v1537_v40  ;;  %v776_v40 = vadd.f32 %v768_v48, %v1784_v46  ;;  %v839_v30 = vsub.f32 1.0, %v1311_v28  ;;  %v841_v31 = vsub.f32 1.0, %v1313_v29  ;;  %v857_v33 = vmul.f32 0.0, %v1313_v29 }
  0x55   : > { %v854_v48 = vmul.f32 0.0, %v1310_v35  ;;  %vm821_vm3 = vcmp.gt.f32.partialorder %v1309_v41, 0.0  ;;  %vm820_vm6 = vcmp.gt.f32.partialorder %v1308_v5, 0.0 }
  0x56   : > { %v784_v6 = vmul.f32 0.1, %v776_v40  ;;  %v847_v42 = vmul.f32 %v839_v30, %v791_v9  ;;  %v849_v43 = vmul.f32 %v841_v31, %v793_v10  ;;  %vm1338_vm4 = vmpackc.low %vm821_vm3, %vm819_vm2  ;;  %v1316_v61 = vsel %vm820_vm6, 1.0, %v1538_v38 }
  0x57   : > { %1366 = vmatpush3.bf16.msra.mxu1 %v1490_v32  ;;  %v855_v32 = vmul.f32 0.0, %v1311_v28  ;;  %v844_v11 = vsub.f32 1.0, %v1316_v61 }
  0x58   : > { %1367 = vmatprep.subr.bf16.mxu1 %v1491_v34  ;;  %v792_v14 = vadd.f32 %v784_v6, %v752_v44  ;;  %v1539_v34 = vmov 1.0|1.0   ;;  %v838_v44 = vsub.f32 1.0, %v1310_v35  ;;  %v865_v52 = vadd.f32 %v857_v33, %v849_v43 }
  0x59   : > { %1335 = vmatprep.mubr.msk.bf16.mxu1 %vm1334_vm14, %v1539_v34  ;;  %v863_v51 = vadd.f32 %v855_v32, %v847_v42  ;;  %v852_v15 = vmul.f32 %v844_v11, %v796_v59  ;;  %v730_v32 = vld [vmem:[%s1866_s2] sm:$0x3]  ;;  %v738_v33 = vsub.s32 1, %v733_v25 }
  0x5a   : > { %v1304_v23 = vadd.f32 -1.0, %v792_v14  ;;  %v846_v53 = vmul.f32 %v838_v44, %v790_v13  ;;  %873 = vst [vmem:[#allocation3 + $0x10] sm:$0xff] %v865_v52  ;;  %v860_v13 = vmul.f32 0.0, %v1316_v61 }
  0x5b   : > { %1368 = vmatpush3.bf16.msra.mxu1 %v1492_v50  ;;  %1301 = vmatmul.mubr.msk.bf16.gmra.mxu0 %vm447_vm10, %v622_v57  ;;  %v1315_v50 = vsel %vm819_vm2, 1.0, %v1538_v38  ;;  %v1317_v57 = vsel %vm821_vm3, 1.0, %v1538_v38  ;;  %871 = vst [vmem:[#allocation3] sm:$0xff] %v863_v51 }
  0x5c   : > { %1369 = vmatprep.subr.bf16.mxu1 %v1493_v4  ;;  %vm816_vm0 = vcmp.gt.f32.partialorder %v1304_v23, 0.0  ;;  %v843_v58 = vsub.f32 1.0, %v1315_v50  ;;  %v859_v40 = vmul.f32 0.0, %v1315_v50  ;;  %v862_v60 = vadd.f32 %v854_v48, %v846_v53  ;;  %1390 = vmatprep.mubr.msk.bf16.mxu0 %vm1540_vm8, %v1538_v38 }
  0x5d   : > { %vm1336_vm1 = vmpackc.low %vm816_vm0, %vm814_vm15  ;;  %v1312_v36 = vsel %vm816_vm0, 1.0, %v1538_v38  ;;  %v845_v0 = vsub.f32 1.0, %v1317_v57  ;;  %v861_v1 = vmul.f32 0.0, %v1317_v57  ;;  %v1306_v4 = vadd.f32 -1.0, %v1817_v27 }
  0x5e   : > { %v840_v47 = vsub.f32 1.0, %v1312_v36  ;;  %v856_v49 = vmul.f32 0.0, %v1312_v36  ;;  %v851_v3 = vmul.f32 %v843_v58, %v795_v20  ;;  %870 = vst [vmem:[#allocation3 + $0x30] sm:$0xff] %v862_v60  ;;  %v739_v48 = vrot.slane %v730_v32, %v738_v33 }
  0x5f   : > { %1370 = vmatpush3.bf16.msra.mxu1 %v1494_v17  ;;  %v853_v6 = vmul.f32 %v845_v0, %v797_v24  ;;  %vm818_vm5 = vcmp.gt.f32.partialorder %v1306_v4, 0.0  ;;  %v868_v17 = vadd.f32 %v860_v13, %v852_v15 }
  0x60   : > { %v848_v56 = vmul.f32 %v840_v47, %v792_v14  ;;  %v867_v7 = vadd.f32 %v859_v40, %v851_v3  ;;  %v1314_v9 = vsel %vm818_vm5, 1.0, %v1538_v38  ;;  %vm1340_vm7 = vmpackc.low %vm820_vm6, %vm818_vm5  ;;  %v798_v47 = vmul.f32 0.8, %v1782_v45 }
  0x61   : > { %v869_v8 = vadd.f32 %v861_v1, %v853_v6  ;;  %v842_v10 = vsub.f32 1.0, %v1314_v9  ;;  %v858_v12 = vmul.f32 0.0, %v1314_v9  ;;  %876 = vst [vmem:[#allocation3 + $0x28] sm:$0xff] %v868_v17  ;;  %v800_v40 = vmul.f32 0.8, %v1784_v46 }
  0x62   : > { %1337 = vmatmul.mubr.msk.bf16.vlgmr.msra.gmra.mxu1 %vm1336_vm1, %v1539_v34  ;;  %v864_v63 = vadd.f32 %v856_v49, %v848_v56  ;;  %875 = vst [vmem:[#allocation3 + $0x20] sm:$0xff] %v867_v7  ;;  %v799_v56 = vmul.f32 0.8, %v1776_v37  ;;  %v801_v45 = vmul.f32 0.8, %v1779_v39 }
  0x63   : > { %1339 = vmatprep.mubr.msk.bf16.mxu1 %vm1338_vm4, %v1539_v34  ;;  %877 = vst [vmem:[#allocation3 + $0x38] sm:$0xff] %v869_v8  ;;  %v850_v14 = vmul.f32 %v842_v10, %v1817_v27  ;;  %v734_v27 = vsub.s32 0, %v733_v25  ;;  %v802_v46 = vmul.f32 0.8, %v1801_v62  ;;  %v804_v17 = vmul.f32 0.8, %v1804_v2 }
  0x64   : > { %872 = vst [vmem:[#allocation3 + $0x18] sm:$0xff] %v864_v63 }
  0x65   : > { %v866_v16 = vadd.f32 %v858_v12, %v850_v14  ;;  %v735_v41 = vrot.slane %v730_v32, %v734_v27  ;;  %v803_v12 = vmul.f32 0.8, %v1792_v54  ;;  %v805_v54 = vmul.f32 0.8, %v1794_v55 }
  0x67   : > { %874 = vst [vmem:[#allocation3 + $0x8] sm:$0xff] %v866_v16 }
  0x6a   : > { %1341 = vmatmul.mubr.msk.bf16.gmra.mxu1 %vm1340_vm7, %v1539_v34 }
 0x102   : > { %v488_v18 = vpop.f32.mrf.mxu0  ;;  %v585_v19 = vpop.f32.mrf.mxu1 }
 0x103   : > { %v586_v36 = vadd.f32 %v585_v19, %v488_v18 }
 0x104   : > { %v490_v20 = vpop.f32.mrf.mxu0  ;;  %v587_v22 = vpop.f32.mrf.mxu1 }
 0x105   : > { %v588_v43 = vadd.f32 %v587_v22, %v490_v20 }
 0x106   : > { %v492_v23 = vpop.f32.mrf.mxu0  ;;  %v589_v26 = vpop.f32.mrf.mxu1 }
 0x107   : > { %v590_v51 = vadd.f32 %v589_v26, %v492_v23 }
 0x108   : > { %v494_v24 = vpop.f32.mrf.mxu0  ;;  %v591_v30 = vpop.f32.mrf.mxu1 }
 0x109   : > { %v592_v57 = vadd.f32 %v591_v30, %v494_v24 }
 0x10a   : > { %v498_v28 = vpop.f32.mrf.mxu0  ;;  %v595_v35 = vpop.f32.mrf.mxu1 }
 0x10b   : > { %v596_v60 = vadd.f32 %v595_v35, %v498_v28 }
 0x10c   : > { %v500_v29 = vpop.f32.mrf.mxu0  ;;  %v597_v50 = vpop.f32.mrf.mxu1 }
 0x10d   : > { %v598_v5 = vadd.f32 %v597_v50, %v500_v29 }
 0x10e   : > { %v502_v31 = vpop.f32.mrf.mxu0  ;;  %v599_v1 = vpop.f32.mrf.mxu1 }
 0x10f   : > { %v600_v13 = vadd.f32 %v599_v1, %v502_v31 }
 0x110   : > { %v504_v34 = vpop.f32.mrf.mxu0  ;;  %v601_v10 = vpop.f32.mrf.mxu1 }
 0x111   : > { %v602_v18 = vadd.f32 %v601_v10, %v504_v34 }
 0x113   : > { %v703_v42 = vpop.f32.mrf.mxu0 }
 0x114   : > { %v722_v44 = vadd.f32 %v703_v42, %v586_v36 }
 0x115   : > { %v705_v49 = vpop.f32.mrf.mxu0 }
 0x116   : > { %v742_v52 = vadd.f32 %v735_v41, %v722_v44  ;;  %v723_v53 = vadd.f32 %v705_v49, %v588_v43  ;;  %v1495_v44 = vld [vmem:[%s1868_s4] sm:$0xff]  }
 0x117   : > { %v707_v58 = vpop.f32.mrf.mxu0 }
 0x118   : > { %v878_v59 = vadd.f32 %v798_v47, %v742_v52  ;;  %v743_v63 = vadd.f32 %v739_v48, %v723_v53  ;;  %v724_v0 = vadd.f32 %v707_v58, %v590_v51 }
 0x119   : > { %v709_v3 = vpop.f32.mrf.mxu0 }
 0x11a   : > { %886 = vst [vmem:[#allocation4] sm:$0xff] %v878_v59  ;;  %v879_v4 = vadd.f32 %v799_v56, %v743_v63  ;;  %v744_v6 = vadd.f32 %v735_v41, %v724_v0  ;;  %v725_v7 = vadd.f32 %v709_v3, %v592_v57 }
 0x11b   : > { %v713_v8 = vpop.f32.mrf.mxu0 }
 0x11c   : > { %887 = vst [vmem:[#allocation4 + $0x18] sm:$0xff] %v879_v4  ;;  %v880_v37 = vadd.f32 %v800_v40, %v744_v6  ;;  %v745_v9 = vadd.f32 %v739_v48, %v725_v7  ;;  %v726_v61 = vadd.f32 %v713_v8, %v596_v60 }
 0x11d   : > { %v715_v11 = vpop.f32.mrf.mxu0 }
 0x11e   : > { %888 = vst [vmem:[#allocation4 + $0x10] sm:$0xff] %v880_v37  ;;  %v881_v14 = vadd.f32 %v801_v45, %v745_v9  ;;  %v746_v39 = vadd.f32 %v735_v41, %v726_v61  ;;  %v727_v15 = vadd.f32 %v715_v11, %v598_v5 }
 0x11f   : > { %v717_v16 = vpop.f32.mrf.mxu0 }
 0x120   : > { %889 = vst [vmem:[#allocation4 + $0x20] sm:$0xff] %v881_v14  ;;  %v882_v19 = vadd.f32 %v802_v46, %v746_v39  ;;  %v747_v20 = vadd.f32 %v739_v48, %v727_v15  ;;  %v728_v21 = vadd.f32 %v717_v16, %v600_v13 }
 0x121   : > { %v719_v22 = vpop.f32.mrf.mxu0 }
 0x122   : > { %v1371_v23 = vpop.f32.mrf.mxu1  ;;  %890 = vst [vmem:[#allocation4 + $0x28] sm:$0xff] %v882_v19  ;;  %v883_v62 = vadd.f32 %v803_v12, %v747_v20  ;;  %v748_v24 = vadd.f32 %v735_v41, %v728_v21  ;;  %v729_v25 = vadd.f32 %v719_v22, %v602_v18 }
 0x124   : > { %v1372_v26 = vpop.f32.mrf.mxu1  ;;  %891 = vst [vmem:[#allocation4 + $0x8] sm:$0xff] %v883_v62  ;;  %v884_v28 = vadd.f32 %v804_v17, %v748_v24  ;;  %v749_v29 = vadd.f32 %v739_v48, %v729_v25 }
 0x125   : > { %v1373_v43 = vadd.f32 %v1372_v26, %v1371_v23 }
 0x126   : > { %v1374_v27 = vpop.f32.mrf.mxu1  ;;  %892 = vst [vmem:[#allocation4 + $0x30] sm:$0xff] %v884_v28  ;;  %v885_v2 = vadd.f32 %v805_v54, %v749_v29 }
 0x128   : > { %v1375_v30 = vpop.f32.mrf.mxu1  ;;  %893 = vst [vmem:[#allocation4 + $0x38] sm:$0xff] %v885_v2 }
 0x129   : > { %v1376_v42 = vadd.f32 %v1375_v30, %v1374_v27 }
 0x12a   : > { %v1377_v31 = vpop.f32.mrf.mxu1 }
 0x12b   : > { %v1077_v55 = vpack.c.bf16 %v1376_v42, %v1373_v43 }
 0x12c   : > { %v1378_v32 = vpop.f32.mrf.mxu1 }
 0x12d   : > { %v1379_v35 = vadd.f32 %v1378_v32, %v1377_v31 }
 0x12e   : > { %v1380_v33 = vpop.f32.mrf.mxu1 }
 0x130   : > { %v1381_v34 = vpop.f32.mrf.mxu1 }
 0x131   : > { %v1382_v36 = vadd.f32 %v1381_v34, %v1380_v33 }
 0x133   : > { %v1078_v41 = vpack.c.bf16 %v1382_v36, %v1379_v35 }
 0x135   : > { %1387 = vmatpush3.bf16.msra.mxu0 %v1078_v41 }
 0x136   : > { %1388 = vmatprep.subr.bf16.mxu0 %v1538_v38 }
 0x139   : > { %1389 = vmatpush3.bf16.msra.mxu0 %v1077_v55 }
 0x13c   : > { %1391 = vmatmul.mubr.msk.bf16.vlgmr.msra.gmra.mxu0 %vm1084_vm9, %v1495_v44 }
 0x1fc   : > { %v1122_v47 = vpop.f32.mrf.mxu0 }
 0x1fd   : > { %vm1129_vm10 = vcmp.gt.f32.partialorder %v1122_v47, 0.5 }
 0x1fe   : > { %v1392_v48 = vpop.f32.mrf.mxu0  ;;  %v1344_v50 = vsel %vm1129_vm10, 1.0, %v1538_v38 }
 0x200   : > { %v1125_v49 = vpop.f32.mrf.mxu0 }
 0x201   : > { %vm1130_vm11 = vcmp.gt.f32.partialorder %v1125_v49, 0.5 }
 0x202   : > { %v1345_v51 = vsel %vm1130_vm11, 1.0, %v1538_v38  ;;  %v1393_v52 = vpop.f32.mrf.mxu0 }
 0x203   : > { %v1353_v53 = vpack.c.bf16 %v1345_v51, %v1344_v50 }
 0x205   : > { %1354 = vst [vmem:[%s1619_s14] sm:$0xff] %v1353_v53  }
 0x206 PF: > { %s15_s22 = sadd.s32 1, %s1534_s22   ;;  %s1874_s18 = smov %s1526_s20 }
 0x207   : > { %p12_p8 = scmp.ge.s32.totalorder %s15_s22, 8   ;;  %s1875_s19 = smov %s1530_s21 }
 0x208   : > { %s1876_s20 = smov %s1879_s23  ;;  %s1877_s21 = smov %s1883_s24 }
 0x209   :  { %14 = sbr.rel (!%p12_p8) target bundleno = 3 (0x3), region = 76 }

// kernel: tile.23
= control target key start
LH: loop header
LB: loop body
LE: loop exit
PB: predicated region body
PF: predicated region fallthrough
CT: control target
= control target key end

     0   :  { %s28_s0 = inlined_call_operand.vmem [shape: f32[32], index: 0, kind: input, shape index: {}]   ;;  %s29_s1 = inlined_call_operand.vmem [shape: f32[16,32], index: 1, kind: output, shape index: {}]  }
   0x1   :  { %v4_v0 = vld [vmem:[%s28_s0] ss:$0 sm:$0xff] }
   0x2   :  { %5 = vst [vmem:[%s29_s1] sm:$0xff] %v4_v0  ;;  %8 = vst [vmem:[%s29_s1 + $0x8] sm:$0xff] %v4_v0 }

// kernel: tile.24
= control target key start
LH: loop header
LB: loop body
LE: loop exit
PB: predicated region body
PF: predicated region fallthrough
CT: control target
= control target key end

     0   :  { %s62_s8 = smov 96   ;;  %vm3_vm0 = vcmask 261120   ;;  %s64_s15 = smov 64   ;;  %vm9_vm1 = vcmask 1048320   ;;  %vm15_vm2 = vcmask 785920   ;;  %vm21_vm3 = vcmask 523520   ;;  %s99_s0 = inlined_call_operand.vmem [shape: f32[16,32], index: 0, kind: input, shape index: {}]   ;;  %s100_s1 = inlined_call_operand.vmem [shape: f32[1,512], index: 1, kind: output, shape index: {}]  }
   0x1   :  { %v53_v0 = vld [vmem:[%s99_s0 + $0x3] ss:$4 sm:$0xf]   ;;  %v54_v1 = vld [vmem:[%s99_s0 + $0x2] ss:$4 sm:$0xf]  }
   0x2   :  { %7 = vrot.lane.b32.xlu0 %v53_v0, %s62_s8  ;;  %v55_v2 = vld [vmem:[%s99_s0 + $0x1] ss:$4 sm:$0xf]   ;;  %v2_v3 = vld [vmem:[%s99_s0] ss:$4 sm:$0xf]  }
   0x3   :  { %s63_s0 = smov 32   ;;  %4 = vst.msk [vmem:[#allocation0] ss:$8 sm:$0xf] %vm3_vm0, %v2_v3  }
   0x4   :  { %19 = vrot.lane.b32.xlu1 %v55_v2, %s63_s0 }
   0x6   :  { %13 = vrot.lane.b32.xlu0 %v54_v1, %s64_s15 }
  0x74   :  { %v8_v4 = vpop.permute.xlu0 %7  }
  0x75   :  { %10 = vst.msk [vmem:[#allocation0] ss:$8 sm:$0xf] %vm9_vm1, %v8_v4  }
  0x76   :  { %v20_v5 = vpop.permute.xlu1 %19  }
  0x78   :  { %v14_v6 = vpop.permute.xlu0 %13  }
  0x79   :  { %16 = vst.msk [vmem:[#allocation0] ss:$8 sm:$0xf] %vm15_vm2, %v14_v6  }
  0x7a   :  { %22 = vst.msk [vmem:[#allocation0] ss:$8 sm:$0xf] %vm21_vm3, %v20_v5  }
  0x81   :  { %v27_v7 = vld [vmem:[#allocation0] sm:$0x1]  ;;  %v32_v8 = vld [vmem:[#allocation0 + $0x8] sm:$0x1]  ;;  %v38_v9 = vld [vmem:[#allocation0 + $0x10] sm:$0x1] }
  0x82   :  { %30 = vst [vmem:[%s100_s1] sm:$0x1] %v27_v7  ;;  %56 = vst [vmem:[%s100_s1 + $0x1] sm:$0x1] %v32_v8  ;;  %v45_v10 = vld [vmem:[#allocation0 + $0x18] sm:$0x1] }
  0x83   :  { %57 = vst [vmem:[%s100_s1 + $0x2] sm:$0x1] %v38_v9  ;;  %58 = vst [vmem:[%s100_s1 + $0x3] sm:$0x1] %v45_v10 }

// kernel: spike_cnn_forward.4
= control target key start
LH: loop header
LB: loop body
LE: loop exit
PB: predicated region body
PF: predicated region fallthrough
CT: control target
= control target key end

     0   :  { %s2642_s18 = smov 0   ;;  %s2644_s19 = smov 0   ;;  %s3323_s0 = inlined_call_operand.vmem [shape: bf16[3,2,16,128], index: 0, kind: input, shape index: {}]   ;;  %s3324_s1 = inlined_call_operand.vmem [shape: bf16[3,128,512], index: 1, kind: input, shape index: {}]   ;;  %s3325_s2 = inlined_call_operand.vmem [shape: f32[1,512], index: 2, kind: input, shape index: {}]   ;;  %s3326_s3 = inlined_call_operand.vmem [shape: bf16[512,256], index: 3, kind: input, shape index: {}]   ;;  %s3327_s4 = inlined_call_operand.vmem [shape: bf16[8,16], index: 4, kind: input, shape index: {}]   ;;  %s3328_s5 = inlined_call_operand.vmem [shape: bf16[3,2,8,256], index: 5, kind: output, shape index: {}]  }
   0x1   :  { %s2646_s20 = smov 0   ;;  %s2648_s21 = smov 0  }
   0x2   :  { %s2650_s22 = smov 0  }
   0x3 LB: > { %s24_s23 = sadd.s32 1, %s2598_s20  ;;  %s27_s24 = sadd.s32 1, %s2602_s21  ;;  %s2606_s22 = sphi %s2650_s22, %s15_s22   ;;  %s2602_s21 = sphi %s2648_s21, %s3336_s21   ;;  %s2598_s20 = sphi %s2646_s20, %s3335_s20   ;;  %s2594_s19 = sphi %s2644_s19, %s3334_s19   ;;  %s2590_s18 = sphi %s2642_s18, %s3333_s18  }
   0x4   : > { %p25_p0 = scmp.ge.s32.totalorder %s24_s23, 3  ;;  %p2015_p1 = scmp.ge.s32.totalorder %s2606_s22, 1 }
   0x5   : > { %p207_p2 = scmp.lt.s32.totalorder %s2606_s22, 7 }
   0x6   : > { %s3338_s23 = smov (%p25_p0, %s24_s23), 0  ;;  %s3340_s24 = smov (!%p25_p0, %s27_s24), %s2602_s21 }
   0x7   : > { %p208_p3 = pnand %p2015_p1, %p207_p2  ;;  %p29_p4 = scmp.ge.s32.totalorder %s3340_s24, 2 }
   0x8   : > { %p243_p5 = scmp.lt.s32.totalorder (!%p208_p3), %s2590_s18, 2  ;;  %p245_p6 = scmp.lt.s32.totalorder (!%p208_p3), %s2594_s19, 1 }
   0x9   : > { %s3342_s24 = smov (%p29_p4, %s3340_s24), 0  ;;  %211 = sbr.rel (%p208_p3) target bundleno = 616 (0x268), region = 40 }
   0xa   : > { %p2022_p7 = scmp.ne.s32.totalorder (!%p208_p3), %s2590_s18, 0 }
   0xe   : > { %vm262_vm0 = vcmask 1040384   ;;  %vm263_vm1 = vsmask.f32 256  ;;  %v265_v0 = vld [vmem:[#allocation2] sm:$0x1]  ;;  %s244_s25 = scalar_select %p243_p5, %s2590_s18, 2 }
   0xf   : > { %vm2676_vm2 = vmand %vm262_vm0, %vm263_vm1  ;;  %s3344_s19 = smov (!%p245_p6, %s2594_s19), 1  ;;  %vm292_vm3 = vcmask 1043456   ;;  %vm293_vm4 = vsmask.f32 7938  ;;  %vm270_vm5 = vsmask.f32 4368 }
  0x10   : > { %v266_v2 = vsel %vm2676_vm2, 0, %v265_v0  ;;  %s2017_s26 = sshll.u32 %s244_s25, 2  ;;  %s2016_s27 = sshll.u32 %s3344_s19, 1  ;;  %vm294_vm6 = vmand %vm292_vm3, %vm293_vm4  ;;  %v299_v11 = vld [vmem:[#allocation2 + $0x8] sm:$0x1] }
  0x11   : > { %267 = vst [vmem:[#allocation2] sm:$0x1] %v266_v2  ;;  %s249_s28 = sadd.s32 %s2017_s26, %s2016_s27  ;;  %vm271_vm7 = vmor %vm263_vm1, %vm270_vm5 }
  0x12   : > { %s2018_s29 = sshll.u32 %s249_s28, 2  ;;  %vm302_vm8 = vmand %vm262_vm0, %vm293_vm4 }
  0x13   : > { %s251_s7 = scalar_lea.vmem %s3323_s0, %s2018_s29  ;;  %s2690_s10 = scalar_lea.vmem %s3328_s5, %s2018_s29 }
  0x14   : > { %v268_v3 = vld [vmem:[%s251_s7] sm:$0xf]  ;;  %v269_v4 = vld [vmem:[%s251_s7 + $0x4] sm:$0xf] }
  0x15   : > { %v281_v5 = vshrl.u32 %v269_v4, 16  ;;  %v273_v6 = vshrl.u32 %v268_v3, 16  ;;  %v276_v7 = vshll.u32 %v268_v3, 16  ;;  %v284_v8 = vshll.u32 %v269_v4, 16 }
  0x17   : > { %v283_v9 = vrot.slane %v281_v5, 7  ;;  %v275_v10 = vrot.slane %v273_v6, 7 }
  0x18   : > { %v295_v12 = vld [vmem:[#allocation2] sm:$0xf] }
  0x19   : > { %v288_v13 = vrot.slane %v283_v9, 4  ;;  %v278_v14 = vor.u32 %v276_v7, %v275_v10  ;;  %v279_v15 = vrot.slane %v275_v10, 4  ;;  %v286_v16 = vor.u32 %v284_v8, %v283_v9 }
  0x1b   : > { %v300_v17 = vsel %vm2676_vm2, %v288_v13, %v299_v11  ;;  %v296_v18 = vsel %vm294_vm6, %v278_v14, %v295_v12  ;;  %v287_v19 = vsel %vm271_vm7, %v279_v15, %v286_v16 }
  0x1c   : > { %301 = vst [vmem:[#allocation2 + $0x8] sm:$0x1] %v300_v17  ;;  %297 = vst [vmem:[#allocation2] sm:$0xf] %v296_v18 }
  0x1d   : > { %298 = vst [vmem:[#allocation2 + $0x4] sm:$0xf] %v287_v19 }
  0x21   : > { %309 = sbr.rel (%p2022_p7) target bundleno = 47 (0x2f), region = 44 }
  0x23   : > { %v303_v20 = vld [vmem:[#allocation2 + $0x8] sm:$0x1] }
  0x24   : > { %v304_v21 = vsel %vm302_vm8, 0, %v303_v20 }
  0x25   : > { %305 = vst [vmem:[#allocation2 + $0x8] sm:$0x1] %v304_v21 }
  0x26   : > { %v2608_v22 = vmov 0.0  }
  0x27   : > { %310 = vst [vmem:[#allocation3 + $0x30] sm:$0xff] %v2608_v22  ;;  %311 = vst [vmem:[#allocation3] sm:$0xff] %v2608_v22 }
  0x28   : > { %312 = vst [vmem:[#allocation3 + $0x18] sm:$0xff] %v2608_v22  ;;  %313 = vst [vmem:[#allocation3 + $0x10] sm:$0xff] %v2608_v22 }
  0x29   : > { %314 = vst [vmem:[#allocation3 + $0x8] sm:$0xff] %v2608_v22  ;;  %315 = vst [vmem:[#allocation3 + $0x20] sm:$0xff] %v2608_v22 }
  0x2a   : > { %316 = vst [vmem:[#allocation3 + $0x28] sm:$0xff] %v2608_v22  ;;  %317 = vst [vmem:[#allocation3 + $0x38] sm:$0xff] %v2608_v22 }
  0x2b   : > { %318 = vst [vmem:[#allocation4] sm:$0xff] %v2608_v22  ;;  %319 = vst [vmem:[#allocation4 + $0x18] sm:$0xff] %v2608_v22 }
  0x2c   : > { %320 = vst [vmem:[#allocation4 + $0x10] sm:$0xff] %v2608_v22  ;;  %321 = vst [vmem:[#allocation4 + $0x20] sm:$0xff] %v2608_v22 }
  0x2d   : > { %322 = vst [vmem:[#allocation4 + $0x28] sm:$0xff] %v2608_v22  ;;  %323 = vst [vmem:[#allocation4 + $0x8] sm:$0xff] %v2608_v22 }
  0x2e   : > { %324 = vst [vmem:[#allocation4 + $0x30] sm:$0xff] %v2608_v22  ;;  %325 = vst [vmem:[#allocation4 + $0x38] sm:$0xff] %v2608_v22 }
  0x2f PF: > { %v2325_v23 = vld [vmem:[%s3324_s1 + $0x1e4] ss:$16 sps:$4 sm:$0xff]   ;;  %v2327_v24 = vld [vmem:[%s3324_s1 + $0x1ec] ss:$16 sps:$4 sm:$0xff]   ;;  %v2609_v25 = vmov 0   ;;  %vm946_vm10 = vcmask 1046528  }
  0x30   : > { %608 = vmatprep.mubr.bf16.mxu0 %v2609_v25  ;;  %651 = vmatprep.mubr.bf16.mxu1 %v2609_v25  ;;  %v2329_v26 = vld [vmem:[%s3324_s1 + $0x1e0] ss:$16 sps:$4 sm:$0xff]   ;;  %v2330_v27 = vld [vmem:[%s3324_s1 + $0x1e8] ss:$16 sps:$4 sm:$0xff]   ;;  %v2331_v28 = vld [vmem:[%s3324_s1 + $0x1c4] ss:$16 sps:$4 sm:$0xff]  }
  0x31   : > { %576 = vmatprep.subr.bf16.mxu0 %v2325_v23  ;;  %619 = vmatprep.subr.bf16.mxu1 %v2327_v24  ;;  %v2333_v29 = vld [vmem:[%s3324_s1 + $0x1cc] ss:$16 sps:$4 sm:$0xff]   ;;  %v2335_v30 = vld [vmem:[%s3324_s1 + $0x1c0] ss:$16 sps:$4 sm:$0xff]   ;;  %v2336_v31 = vld [vmem:[%s3324_s1 + $0x1c8] ss:$16 sps:$4 sm:$0xff]  }
  0x32   : > { %577 = vmatpush1.bf16.msra.mxu0 %v2329_v26  ;;  %620 = vmatpush1.bf16.msra.mxu1 %v2330_v27  ;;  %v2337_v32 = vld [vmem:[%s3324_s1 + $0x1a4] ss:$16 sps:$4 sm:$0xff]   ;;  %v2339_v33 = vld [vmem:[%s3324_s1 + $0x1ac] ss:$16 sps:$4 sm:$0xff]   ;;  %v2341_v34 = vld [vmem:[%s3324_s1 + $0x1a0] ss:$16 sps:$4 sm:$0xff]  }
  0x33   : > { %578 = vmatprep.subr.bf16.mxu0 %v2331_v28  ;;  %621 = vmatprep.subr.bf16.mxu1 %v2333_v29  ;;  %v2342_v35 = vld [vmem:[%s3324_s1 + $0x1a8] ss:$16 sps:$4 sm:$0xff]   ;;  %v2343_v36 = vld [vmem:[%s3324_s1 + $0x184] ss:$16 sps:$4 sm:$0xff]   ;;  %v2345_v37 = vld [vmem:[%s3324_s1 + $0x18c] ss:$16 sps:$4 sm:$0xff]  }
  0x34   : > { %v2347_v38 = vld [vmem:[%s3324_s1 + $0x180] ss:$16 sps:$4 sm:$0xff]   ;;  %v2348_v39 = vld [vmem:[%s3324_s1 + $0x188] ss:$16 sps:$4 sm:$0xff]   ;;  %v2349_v40 = vld [vmem:[%s3324_s1 + $0x164] ss:$16 sps:$4 sm:$0xff]  }
  0x35   : > { %v2351_v41 = vld [vmem:[%s3324_s1 + $0x16c] ss:$16 sps:$4 sm:$0xff]   ;;  %v2353_v42 = vld [vmem:[%s3324_s1 + $0x160] ss:$16 sps:$4 sm:$0xff]   ;;  %v2354_v43 = vld [vmem:[%s3324_s1 + $0x168] ss:$16 sps:$4 sm:$0xff]  }
  0x36   : > { %579 = vmatpush1.bf16.msra.mxu0 %v2335_v30  ;;  %622 = vmatpush1.bf16.msra.mxu1 %v2336_v31  ;;  %v2355_v44 = vld [vmem:[%s3324_s1 + $0x144] ss:$16 sps:$4 sm:$0xff]   ;;  %v2357_v45 = vld [vmem:[%s3324_s1 + $0x14c] ss:$16 sps:$4 sm:$0xff]   ;;  %v2359_v46 = vld [vmem:[%s3324_s1 + $0x140] ss:$16 sps:$4 sm:$0xff]  }
  0x37   : > { %580 = vmatprep.subr.bf16.mxu0 %v2337_v32  ;;  %623 = vmatprep.subr.bf16.mxu1 %v2339_v33  ;;  %v2360_v47 = vld [vmem:[%s3324_s1 + $0x148] ss:$16 sps:$4 sm:$0xff]   ;;  %v2361_v48 = vld [vmem:[%s3324_s1 + $0x124] ss:$16 sps:$4 sm:$0xff]   ;;  %v2363_v49 = vld [vmem:[%s3324_s1 + $0x12c] ss:$16 sps:$4 sm:$0xff]  }
  0x38   : > { %v326_v50 = vld [vmem:[#allocation2] sm:$0xf]  ;;  %v2779_v51 = vld [vmem:[#allocation2 + $0x4] sm:$0xf]  ;;  %v2366_v55 = vld [vmem:[%s3324_s1 + $0x128] ss:$16 sps:$4 sm:$0xff]  }
  0x39   : > { %v2782_v52 = vcombine.low %v326_v50, %v2779_v51  ;;  %v2784_v53 = vld [vmem:[#allocation2 + $0x8] ss:$0 sps:$4 sm:$0x11]   ;;  %v2365_v54 = vld [vmem:[%s3324_s1 + $0x120] ss:$16 sps:$4 sm:$0xff]   ;;  %vm1856_vm7 = vcmask 130048  }
  0x3a   : > { %581 = vmatpush1.bf16.msra.mxu0 %v2341_v34  ;;  %624 = vmatpush1.bf16.msra.mxu1 %v2342_v35  ;;  %v411_v58 = vshll.u32 %v2784_v53, 16  ;;  %v2367_v59 = vld [vmem:[%s3324_s1 + $0x104] ss:$16 sps:$4 sm:$0xff]   ;;  %v2369_v60 = vld [vmem:[%s3324_s1 + $0x10c] ss:$16 sps:$4 sm:$0xff]  }
  0x3b   : > { %582 = vmatprep.subr.bf16.mxu0 %v2343_v36  ;;  %625 = vmatprep.subr.bf16.mxu1 %v2345_v37  ;;  %v404_v56 = vshrl.u32 %v2782_v52, 16  ;;  %v406_v57 = vshll.u32 %v2782_v52, 16  ;;  %v2371_v62 = vld [vmem:[%s3324_s1 + $0x100] ss:$16 sps:$4 sm:$0xff]   ;;  %vm402_vm9 = vsmask.f32 7424 }
  0x3c   : > { %v2372_v63 = vld [vmem:[%s3324_s1 + $0x108] ss:$16 sps:$4 sm:$0xff]   ;;  %v413_v1 = vrot.slane %v411_v58, 1  ;;  %v2377_v2 = vld [vmem:[%s3324_s1 + $0xe4] ss:$16 sps:$4 sm:$0xff]  }
  0x3d   : > { %v408_v61 = vrot.slane %v406_v57, 1  ;;  %v2380_v3 = vld [vmem:[%s3324_s1 + $0xec] ss:$16 sps:$4 sm:$0xff]   ;;  %v2375_v4 = vld [vmem:[%s3324_s1 + $0xe0] ss:$16 sps:$4 sm:$0xff]  }
  0x3e   : > { %583 = vmatpush1.bf16.msra.mxu0 %v2347_v38  ;;  %626 = vmatpush1.bf16.msra.mxu1 %v2348_v39  ;;  %v2378_v6 = vld [vmem:[%s3324_s1 + $0xe8] ss:$16 sps:$4 sm:$0xff]   ;;  %v2383_v7 = vld [vmem:[%s3324_s1 + $0xc4] ss:$16 sps:$4 sm:$0xff]   ;;  %v2386_v8 = vld [vmem:[%s3324_s1 + $0xcc] ss:$16 sps:$4 sm:$0xff]  }
  0x3f   : > { %584 = vmatprep.subr.bf16.mxu0 %v2349_v40  ;;  %627 = vmatprep.subr.bf16.mxu1 %v2351_v41  ;;  %v409_v0 = vor.u32 %v408_v61, %v404_v56  ;;  %v2381_v9 = vld [vmem:[%s3324_s1 + $0xc0] ss:$16 sps:$4 sm:$0xff]   ;;  %v2384_v10 = vld [vmem:[%s3324_s1 + $0xc8] ss:$16 sps:$4 sm:$0xff]   ;;  %v2389_v11 = vld [vmem:[%s3324_s1 + $0xa4] ss:$16 sps:$4 sm:$0xff]  }
  0x40   : > { %v2392_v12 = vld [vmem:[%s3324_s1 + $0xac] ss:$16 sps:$4 sm:$0xff]   ;;  %v2387_v13 = vld [vmem:[%s3324_s1 + $0xa0] ss:$16 sps:$4 sm:$0xff]   ;;  %v2390_v14 = vld [vmem:[%s3324_s1 + $0xa8] ss:$16 sps:$4 sm:$0xff]  }
  0x41   : > { %v414_v5 = vsel %vm402_vm9, %v409_v0, %v413_v1  ;;  %v2395_v15 = vld [vmem:[%s3324_s1 + $0x84] ss:$16 sps:$4 sm:$0xff]   ;;  %v2398_v16 = vld [vmem:[%s3324_s1 + $0x8c] ss:$16 sps:$4 sm:$0xff]   ;;  %v2393_v17 = vld [vmem:[%s3324_s1 + $0x80] ss:$16 sps:$4 sm:$0xff]  }
  0x42   : > { %585 = vmatpush1.bf16.msra.mxu0 %v2353_v42  ;;  %628 = vmatpush1.bf16.msra.mxu1 %v2354_v43  ;;  %v2396_v18 = vld [vmem:[%s3324_s1 + $0x88] ss:$16 sps:$4 sm:$0xff]   ;;  %v2401_v19 = vld [vmem:[%s3324_s1 + $0x64] ss:$16 sps:$4 sm:$0xff]   ;;  %v2404_v20 = vld [vmem:[%s3324_s1 + $0x6c] ss:$16 sps:$4 sm:$0xff]  }
  0x43   : > { %586 = vmatprep.subr.bf16.mxu0 %v2355_v44  ;;  %629 = vmatprep.subr.bf16.mxu1 %v2357_v45  ;;  %v2399_v21 = vld [vmem:[%s3324_s1 + $0x60] ss:$16 sps:$4 sm:$0xff]   ;;  %v2402_v22 = vld [vmem:[%s3324_s1 + $0x68] ss:$16 sps:$4 sm:$0xff]   ;;  %v2407_v23 = vld [vmem:[%s3324_s1 + $0x44] ss:$16 sps:$4 sm:$0xff]  }
  0x44   : > { %v2410_v24 = vld [vmem:[%s3324_s1 + $0x4c] ss:$16 sps:$4 sm:$0xff]   ;;  %v2405_v26 = vld [vmem:[%s3324_s1 + $0x40] ss:$16 sps:$4 sm:$0xff]   ;;  %v2408_v27 = vld [vmem:[%s3324_s1 + $0x48] ss:$16 sps:$4 sm:$0xff]  }
  0x45   : > { %v2413_v28 = vld [vmem:[%s3324_s1 + $0x24] ss:$16 sps:$4 sm:$0xff]   ;;  %v2416_v29 = vld [vmem:[%s3324_s1 + $0x2c] ss:$16 sps:$4 sm:$0xff]   ;;  %v2411_v30 = vld [vmem:[%s3324_s1 + $0x20] ss:$16 sps:$4 sm:$0xff]  }
  0x46   : > { %587 = vmatpush1.bf16.msra.mxu0 %v2359_v46  ;;  %630 = vmatpush1.bf16.msra.mxu1 %v2360_v47  ;;  %v2414_v31 = vld [vmem:[%s3324_s1 + $0x28] ss:$16 sps:$4 sm:$0xff]   ;;  %v2419_v32 = vld [vmem:[%s3324_s1 + $0x4] ss:$16 sps:$4 sm:$0xff]   ;;  %v2422_v33 = vld [vmem:[%s3324_s1 + $0xc] ss:$16 sps:$4 sm:$0xff]  }
  0x47   : > { %588 = vmatprep.subr.bf16.mxu0 %v2361_v48  ;;  %631 = vmatprep.subr.bf16.mxu1 %v2363_v49  ;;  %v2417_v34 = vld [vmem:[%s3324_s1] ss:$16 sps:$4 sm:$0xff]   ;;  %v2420_v35 = vld [vmem:[%s3324_s1 + $0x8] ss:$16 sps:$4 sm:$0xff]   ;;  %v2425_v36 = vld [vmem:[%s3324_s1 + $0x2e4] ss:$16 sps:$4 sm:$0xff]  }
  0x48   : > { %v2428_v37 = vld [vmem:[%s3324_s1 + $0x2ec] ss:$16 sps:$4 sm:$0xff]   ;;  %v2423_v38 = vld [vmem:[%s3324_s1 + $0x2e0] ss:$16 sps:$4 sm:$0xff]   ;;  %v2426_v39 = vld [vmem:[%s3324_s1 + $0x2e8] ss:$16 sps:$4 sm:$0xff]  }
  0x49   : > { %v2431_v40 = vld [vmem:[%s3324_s1 + $0x2c4] ss:$16 sps:$4 sm:$0xff]   ;;  %v2434_v41 = vld [vmem:[%s3324_s1 + $0x2cc] ss:$16 sps:$4 sm:$0xff]   ;;  %v909_v42 = vld [vmem:[#allocation2] sm:$0xe] }
  0x4a   : > { %589 = vmatpush1.bf16.msra.mxu0 %v2365_v54  ;;  %632 = vmatpush1.bf16.msra.mxu1 %v2366_v55  ;;  %v2153_v43 = vcombine.low %v909_v42, %v2779_v51  ;;  %v948_v44 = vrot.slane %v2784_v53, 1  ;;  %v2429_v45 = vld [vmem:[%s3324_s1 + $0x2c0] ss:$16 sps:$4 sm:$0xff]   ;;  %v2432_v46 = vld [vmem:[%s3324_s1 + $0x2c8] ss:$16 sps:$4 sm:$0xff]  }
  0x4b   : > { %590 = vmatprep.subr.bf16.mxu0 %v2367_v59  ;;  %633 = vmatprep.subr.bf16.mxu1 %v2369_v60  ;;  %v2437_v48 = vld [vmem:[%s3324_s1 + $0x2a4] ss:$16 sps:$4 sm:$0xff]   ;;  %v2440_v49 = vld [vmem:[%s3324_s1 + $0x2ac] ss:$16 sps:$4 sm:$0xff]   ;;  %v2435_v51 = vld [vmem:[%s3324_s1 + $0x2a0] ss:$16 sps:$4 sm:$0xff]  }
  0x4c   : > { %v947_v47 = vrot.slane %v2153_v43, 1  ;;  %v2443_v53 = vld [vmem:[%s3324_s1 + $0x284] ss:$16 sps:$4 sm:$0xff]   ;;  %v2446_v54 = vld [vmem:[%s3324_s1 + $0x28c] ss:$16 sps:$4 sm:$0xff]  }
  0x4d   : > { %v2441_v55 = vld [vmem:[%s3324_s1 + $0x280] ss:$16 sps:$4 sm:$0xff]   ;;  %v2444_v56 = vld [vmem:[%s3324_s1 + $0x288] ss:$16 sps:$4 sm:$0xff]   ;;  %v2449_v57 = vld [vmem:[%s3324_s1 + $0x264] ss:$16 sps:$4 sm:$0xff]  }
  0x4e   : > { %591 = vmatpush1.bf16.msra.mxu0 %v2371_v62  ;;  %634 = vmatpush1.bf16.msra.mxu1 %v2372_v63  ;;  %v949_v50 = vsel %vm946_vm10, %v947_v47, %v948_v44  ;;  %v2452_v58 = vld [vmem:[%s3324_s1 + $0x26c] ss:$16 sps:$4 sm:$0xff]   ;;  %v2447_v59 = vld [vmem:[%s3324_s1 + $0x260] ss:$16 sps:$4 sm:$0xff]   ;;  %v2450_v60 = vld [vmem:[%s3324_s1 + $0x268] ss:$16 sps:$4 sm:$0xff]  }
  0x4f   : > { %823 = vmatprep.subr.bf16.mxu0 %v2377_v2  ;;  %866 = vmatprep.subr.bf16.mxu1 %v2380_v3  ;;  %v2455_v61 = vld [vmem:[%s3324_s1 + $0x244] ss:$16 sps:$4 sm:$0xff]   ;;  %v2458_v62 = vld [vmem:[%s3324_s1 + $0x24c] ss:$16 sps:$4 sm:$0xff]   ;;  %v2453_v63 = vld [vmem:[%s3324_s1 + $0x240] ss:$16 sps:$4 sm:$0xff]  }
  0x50   : > { %v2456_v0 = vld [vmem:[%s3324_s1 + $0x248] ss:$16 sps:$4 sm:$0xff]   ;;  %v2461_v1 = vld [vmem:[%s3324_s1 + $0x224] ss:$16 sps:$4 sm:$0xff]   ;;  %v2464_v2 = vld [vmem:[%s3324_s1 + $0x22c] ss:$16 sps:$4 sm:$0xff]  }
  0x51   : > { %609 = vmatmul.mubr.bf16.vlgmr.msra.gmra.mxu0 %v414_v5  ;;  %652 = vmatmul.mubr.bf16.vlgmr.msra.gmra.mxu1 %v414_v5  ;;  %v2459_v3 = vld [vmem:[%s3324_s1 + $0x220] ss:$16 sps:$4 sm:$0xff]   ;;  %v2467_v5 = vld [vmem:[%s3324_s1 + $0x204] ss:$16 sps:$4 sm:$0xff]  }
  0x52   : > { %824 = vmatpush1.bf16.msra.mxu0 %v2375_v4  ;;  %867 = vmatpush1.bf16.msra.mxu1 %v2378_v6  ;;  %v2462_v4 = vld [vmem:[%s3324_s1 + $0x228] ss:$16 sps:$4 sm:$0xff]   ;;  %v2470_v6 = vld [vmem:[%s3324_s1 + $0x20c] ss:$16 sps:$4 sm:$0xff]  }
  0x53   : > { %825 = vmatprep.subr.bf16.mxu0 %v2383_v7  ;;  %868 = vmatprep.subr.bf16.mxu1 %v2386_v8  ;;  %v2465_v7 = vld [vmem:[%s3324_s1 + $0x200] ss:$16 sps:$4 sm:$0xff]   ;;  %v2468_v8 = vld [vmem:[%s3324_s1 + $0x208] ss:$16 sps:$4 sm:$0xff]  }
  0x54   : > { %855 = vmatprep.mubr.bf16.mxu0 %v2609_v25  ;;  %898 = vmatprep.mubr.bf16.mxu1 %v2609_v25  ;;  %v3080_v42 = vld [vmem:[#allocation4 + $0x38] sm:$0xff] }
  0x56   : > { %826 = vmatpush1.bf16.msra.mxu0 %v2381_v9  ;;  %869 = vmatpush1.bf16.msra.mxu1 %v2384_v10  ;;  %v2474_v9 = vld [vmem:[%s3326_s3 + $0x74] ss:$8 sps:$4 sm:$0xff]  }
  0x57   : > { %827 = vmatprep.subr.bf16.mxu0 %v2389_v11  ;;  %870 = vmatprep.subr.bf16.mxu1 %v2392_v12  ;;  %v2477_v10 = vld [vmem:[%s3326_s3 + $0x174] ss:$8 sps:$4 sm:$0xff]   ;;  %v2472_v11 = vld [vmem:[%s3326_s3 + $0x70] ss:$8 sps:$4 sm:$0xff]  }
  0x58   : > { %v2475_v12 = vld [vmem:[%s3326_s3 + $0x170] ss:$8 sps:$4 sm:$0xff]  }
  0x5a   : > { %828 = vmatpush1.bf16.msra.mxu0 %v2387_v13  ;;  %871 = vmatpush1.bf16.msra.mxu1 %v2390_v14  ;;  %v2480_v13 = vld [vmem:[%s3326_s3 + $0x64] ss:$8 sps:$4 sm:$0xff]  }
  0x5b   : > { %829 = vmatprep.subr.bf16.mxu0 %v2395_v15  ;;  %872 = vmatprep.subr.bf16.mxu1 %v2398_v16  ;;  %v2483_v14 = vld [vmem:[%s3326_s3 + $0x164] ss:$8 sps:$4 sm:$0xff]   ;;  %v2478_v15 = vld [vmem:[%s3326_s3 + $0x60] ss:$8 sps:$4 sm:$0xff]  }
  0x5c   : > { %v2481_v16 = vld [vmem:[%s3326_s3 + $0x160] ss:$8 sps:$4 sm:$0xff]  }
  0x5e   : > { %830 = vmatpush1.bf16.msra.mxu0 %v2393_v17  ;;  %873 = vmatpush1.bf16.msra.mxu1 %v2396_v18  ;;  %v2486_v17 = vld [vmem:[%s3326_s3 + $0x54] ss:$8 sps:$4 sm:$0xff]  }
  0x5f   : > { %831 = vmatprep.subr.bf16.mxu0 %v2401_v19  ;;  %874 = vmatprep.subr.bf16.mxu1 %v2404_v20  ;;  %v2489_v18 = vld [vmem:[%s3326_s3 + $0x154] ss:$8 sps:$4 sm:$0xff]   ;;  %v2484_v19 = vld [vmem:[%s3326_s3 + $0x50] ss:$8 sps:$4 sm:$0xff]  }
  0x60   : > { %v2487_v20 = vld [vmem:[%s3326_s3 + $0x150] ss:$8 sps:$4 sm:$0xff]  }
  0x62   : > { %832 = vmatpush1.bf16.msra.mxu0 %v2399_v21  ;;  %875 = vmatpush1.bf16.msra.mxu1 %v2402_v22  ;;  %v2492_v21 = vld [vmem:[%s3326_s3 + $0x44] ss:$8 sps:$4 sm:$0xff]  }
  0x63   : > { %833 = vmatprep.subr.bf16.mxu0 %v2407_v23  ;;  %876 = vmatprep.subr.bf16.mxu1 %v2410_v24  ;;  %v2495_v22 = vld [vmem:[%s3326_s3 + $0x144] ss:$8 sps:$4 sm:$0xff]   ;;  %v2490_v23 = vld [vmem:[%s3326_s3 + $0x40] ss:$8 sps:$4 sm:$0xff]  }
  0x64   : > { %v2493_v24 = vld [vmem:[%s3326_s3 + $0x140] ss:$8 sps:$4 sm:$0xff]  }
  0x66   : > { %834 = vmatpush1.bf16.msra.mxu0 %v2405_v26  ;;  %877 = vmatpush1.bf16.msra.mxu1 %v2408_v27  ;;  %v2498_v26 = vld [vmem:[%s3326_s3 + $0x34] ss:$8 sps:$4 sm:$0xff]  }
  0x67   : > { %835 = vmatprep.subr.bf16.mxu0 %v2413_v28  ;;  %878 = vmatprep.subr.bf16.mxu1 %v2416_v29  ;;  %v2501_v27 = vld [vmem:[%s3326_s3 + $0x134] ss:$8 sps:$4 sm:$0xff]   ;;  %v1236_v28 = vld [vmem:[#allocation3] sm:$0xff] }
  0x68   : > { %v1240_v29 = vld [vmem:[#allocation3 + $0x20] sm:$0xff] }
  0x6a   : > { %836 = vmatpush1.bf16.msra.mxu0 %v2411_v30  ;;  %879 = vmatpush1.bf16.msra.mxu1 %v2414_v31  ;;  %v3061_v30 = vld [vmem:[#allocation4 + $0x18] sm:$0xff]  ;;  %v3063_v31 = vld [vmem:[#allocation4 + $0x8] sm:$0xff] }
  0x6b   : > { %837 = vmatprep.subr.bf16.mxu0 %v2419_v32  ;;  %880 = vmatprep.subr.bf16.mxu1 %v2422_v33  ;;  %v1252_v32 = vsub.f32 0.0, %v1236_v28  ;;  %v2496_v33 = vld [vmem:[%s3326_s3 + $0x30] ss:$8 sps:$4 sm:$0xff]  }
  0x6e   : > { %838 = vmatpush1.bf16.msra.mxu0 %v2417_v34  ;;  %881 = vmatpush1.bf16.msra.mxu1 %v2420_v35  ;;  %v2499_v34 = vld [vmem:[%s3326_s3 + $0x130] ss:$8 sps:$4 sm:$0xff]   ;;  %v1256_v35 = vsub.f32 0.0, %v1240_v29 }
  0x6f   : > { %1111 = vmatprep.subr.bf16.mxu0 %v2425_v36  ;;  %1154 = vmatprep.subr.bf16.mxu1 %v2428_v37  ;;  %v1238_v36 = vld [vmem:[#allocation3 + $0x10] sm:$0xff]  ;;  %v1242_v37 = vld [vmem:[#allocation3 + $0x38] sm:$0xff] }
  0x70   : > { %v1254_v43 = vsub.f32 0.0, %v1238_v36  ;;  %v1258_v44 = vsub.f32 0.0, %v1242_v37  ;;  %v1264_v47 = vadd.f32 %v1256_v35, %v3063_v31 }
  0x71   : > { %856 = vmatmul.mubr.bf16.vlgmr.msra.gmra.mxu0 %v2782_v52  ;;  %899 = vmatmul.mubr.bf16.vlgmr.msra.gmra.mxu1 %v2782_v52  ;;  %v2438_v52 = vld [vmem:[%s3324_s1 + $0x2a8] ss:$16 sps:$4 sm:$0xff]  }
  0x72   : > { %1112 = vmatpush1.bf16.msra.mxu0 %v2423_v38  ;;  %1155 = vmatpush1.bf16.msra.mxu1 %v2426_v39  ;;  %v3071_v38 = vld [vmem:[#allocation4 + $0x20] sm:$0xff] }
  0x73   : > { %1113 = vmatprep.subr.bf16.mxu0 %v2431_v40  ;;  %1156 = vmatprep.subr.bf16.mxu1 %v2434_v41  ;;  %v2504_v39 = vld [vmem:[%s3326_s3 + $0x24] ss:$8 sps:$4 sm:$0xff]   ;;  %v1260_v41 = vadd.f32 %v1252_v32, %v3061_v30 }
  0x74   : > { %1143 = vmatprep.mubr.bf16.mxu0 %v2609_v25  ;;  %1186 = vmatprep.mubr.bf16.mxu1 %v2609_v25  ;;  %v2507_v40 = vld [vmem:[%s3326_s3 + $0x124] ss:$8 sps:$4 sm:$0xff]  }
  0x76   : > { %1114 = vmatpush1.bf16.msra.mxu0 %v2429_v45  ;;  %1157 = vmatpush1.bf16.msra.mxu1 %v2432_v46  ;;  %v1235_v45 = vld [vmem:[#allocation3 + $0x30] sm:$0xff]  ;;  %v1239_v46 = vld [vmem:[#allocation3 + $0x8] sm:$0xff] }
  0x77   : > { %1115 = vmatprep.subr.bf16.mxu0 %v2437_v48  ;;  %1158 = vmatprep.subr.bf16.mxu1 %v2440_v49  ;;  %v3083_v48 = vld [vmem:[#allocation4] sm:$0xff]  ;;  %v3085_v49 = vld [vmem:[#allocation4 + $0x28] sm:$0xff] }
  0x7a   : > { %1116 = vmatpush1.bf16.msra.mxu0 %v2435_v51  ;;  %1159 = vmatpush1.bf16.msra.mxu1 %v2438_v52  ;;  %v1255_v51 = vsub.f32 0.0, %v1239_v46  ;;  %v1237_v52 = vld [vmem:[#allocation3 + $0x18] sm:$0xff] }
  0x7b   : > { %1117 = vmatprep.subr.bf16.mxu0 %v2443_v53  ;;  %1160 = vmatprep.subr.bf16.mxu1 %v2446_v54  ;;  %v1268_v53 = vmul.f32 0.1, %v1260_v41  ;;  %v1262_v54 = vadd.f32 %v1254_v43, %v3071_v38  ;;  %v2514_v43 = vld [vmem:[%s3326_s3] ss:$8 sps:$4 sm:$0xff]  }
  0x7e   : > { %1118 = vmatpush1.bf16.msra.mxu0 %v2441_v55  ;;  %1161 = vmatpush1.bf16.msra.mxu1 %v2444_v56  ;;  %v1266_v55 = vadd.f32 %v1258_v44, %v3080_v42  ;;  %v3089_v56 = vld [vmem:[#allocation3 + $0x28] sm:$0xff] }
  0x7f   : > { %1119 = vmatprep.subr.bf16.mxu0 %v2449_v57  ;;  %1162 = vmatprep.subr.bf16.mxu1 %v2452_v58  ;;  %v3091_v57 = vld [vmem:[#allocation4 + $0x10] sm:$0xff] }
  0x80   : > { %v3093_v58 = vld [vmem:[#allocation4 + $0x30] sm:$0xff] }
  0x82   : > { %1120 = vmatpush1.bf16.msra.mxu0 %v2447_v59  ;;  %1163 = vmatpush1.bf16.msra.mxu1 %v2450_v60  ;;  %v1253_v59 = vsub.f32 0.0, %v1237_v52  ;;  %v2502_v60 = vld [vmem:[%s3326_s3 + $0x20] ss:$8 sps:$4 sm:$0xff]  }
  0x83   : > { %1121 = vmatprep.subr.bf16.mxu0 %v2455_v61  ;;  %1164 = vmatprep.subr.bf16.mxu1 %v2458_v62  ;;  %v1272_v61 = vmul.f32 0.1, %v1264_v47 }
  0x86   : > { %1122 = vmatpush1.bf16.msra.mxu0 %v2453_v63  ;;  %1165 = vmatpush1.bf16.msra.mxu1 %v2456_v0  ;;  %v1263_v63 = vadd.f32 %v1255_v51, %v3085_v49  ;;  %v1257_v0 = vsub.f32 0.0, %v3089_v56  ;;  %v2517_v51 = vld [vmem:[%s3326_s3 + $0x100] ss:$8 sps:$4 sm:$0xff]  }
  0x87   : > { %1123 = vmatprep.subr.bf16.mxu0 %v2461_v1  ;;  %1166 = vmatprep.subr.bf16.mxu1 %v2464_v2  ;;  %v2505_v1 = vld [vmem:[%s3326_s3 + $0x120] ss:$8 sps:$4 sm:$0xff]   ;;  %v1276_v2 = vadd.f32 %v1268_v53, %v1236_v28 }
  0x8a   : > { %1124 = vmatpush1.bf16.msra.mxu0 %v2459_v3  ;;  %1167 = vmatpush1.bf16.msra.mxu1 %v2462_v4  ;;  %v1270_v3 = vmul.f32 0.1, %v1262_v54  ;;  %v1274_v4 = vmul.f32 0.1, %v1266_v55  ;;  %v2522_v55 = vld [vmem:[%s3326_s3 + $0xf4] ss:$8 sps:$4 sm:$0xff]  }
  0x8b   : > { %1125 = vmatprep.subr.bf16.mxu0 %v2467_v5  ;;  %1168 = vmatprep.subr.bf16.mxu1 %v2470_v6  ;;  %v1261_v5 = vadd.f32 %v1253_v59, %v3091_v57  ;;  %v2510_v6 = vld [vmem:[%s3326_s3 + $0x14] ss:$8 sps:$4 sm:$0xff]  }
  0x8c   : > { %v2525_v59 = vld [vmem:[%s3326_s3 + $0x1f4] ss:$8 sps:$4 sm:$0xff]  }
  0x8e   : > { %1126 = vmatpush1.bf16.msra.mxu0 %v2465_v7  ;;  %1169 = vmatpush1.bf16.msra.mxu1 %v2468_v8  ;;  %v1280_v7 = vadd.f32 %v1272_v61, %v1240_v29 }
  0x8f   : > { %1767 = vmatprep.subr.bf16.mxu0 %v2474_v9  ;;  %1810 = vmatprep.subr.bf16.mxu1 %v2477_v10  ;;  %v1271_v9 = vmul.f32 0.1, %v1263_v63  ;;  %v1265_v10 = vadd.f32 %v1257_v0, %v3093_v58 }
  0x91   : > { %1144 = vmatmul.mubr.bf16.vlgmr.msra.gmra.mxu0 %v949_v50  ;;  %1187 = vmatmul.mubr.bf16.vlgmr.msra.gmra.mxu1 %v949_v50  ;;  %v1251_v50 = vsub.f32 0.0, %v1235_v45 }
  0x92   : > { %1768 = vmatpush1.bf16.msra.mxu0 %v2472_v11  ;;  %1811 = vmatpush1.bf16.msra.mxu1 %v2475_v12  ;;  %v2513_v11 = vld [vmem:[%s3326_s3 + $0x114] ss:$8 sps:$4 sm:$0xff]   ;;  %v2187_v12 = vadd.f32 -1.0, %v1276_v2 }
  0x93   : > { %1769 = vmatprep.subr.bf16.mxu0 %v2480_v13  ;;  %1812 = vmatprep.subr.bf16.mxu1 %v2483_v14  ;;  %v1259_v62 = vadd.f32 %v1251_v50, %v3083_v48  ;;  %v1278_v13 = vadd.f32 %v1270_v3, %v1238_v36  ;;  %v1282_v14 = vadd.f32 %v1274_v4, %v1242_v37  ;;  %v2549_v50 = vld [vmem:[%s3326_s3 + $0x1b4] ss:$8 sps:$4 sm:$0xff]  }
  0x94   : > { %vm1300_vm11 = vcmp.gt.f32.partialorder %v2187_v12, 0.0 }
  0x95   : > { %v1267_v8 = vmul.f32 0.1, %v1259_v62 }
  0x96   : > { %1770 = vmatpush1.bf16.msra.mxu0 %v2478_v15  ;;  %1813 = vmatpush1.bf16.msra.mxu1 %v2481_v16  ;;  %v1269_v15 = vmul.f32 0.1, %v1261_v5  ;;  %v2508_v16 = vld [vmem:[%s3326_s3 + $0x10] ss:$8 sps:$4 sm:$0xff]  }
  0x97   : > { %1771 = vmatprep.subr.bf16.mxu0 %v2486_v17  ;;  %1814 = vmatprep.subr.bf16.mxu1 %v2489_v18  ;;  %v2191_v17 = vadd.f32 -1.0, %v1280_v7  ;;  %v3115_v18 = vadd.f32 %v1267_v8, %v1235_v45  ;;  %v2523_v8 = vld [vmem:[%s3326_s3 + $0x1f0] ss:$8 sps:$4 sm:$0xff]  }
  0x99   : > { %vm1304_vm12 = vcmp.gt.f32.partialorder %v2191_v17, 0.0  ;;  %v3132_v29 = vadd.f32 -1.0, %v3115_v18 }
  0x9a   : > { %1772 = vmatpush1.bf16.msra.mxu0 %v2484_v19  ;;  %1815 = vmatpush1.bf16.msra.mxu1 %v2487_v20  ;;  %v3117_v19 = vadd.f32 %v1271_v9, %v1239_v46  ;;  %v3119_v20 = vmul.f32 0.1, %v1265_v10  ;;  %vm2266_vm13 = vmpackc.low %vm1304_vm12, %vm1300_vm11 }
  0x9b   : > { %1773 = vmatprep.subr.bf16.mxu0 %v2492_v21  ;;  %1816 = vmatprep.subr.bf16.mxu1 %v2495_v22  ;;  %v2511_v21 = vld [vmem:[%s3326_s3 + $0x110] ss:$8 sps:$4 sm:$0xff]   ;;  %v2189_v22 = vadd.f32 -1.0, %v1278_v13  ;;  %vm1299_vm1 = vcmp.gt.f32.partialorder %v3132_v29, 0.0 }
  0x9c   : > { %v3135_v32 = vadd.f32 -1.0, %v3117_v19 }
  0x9d   : > { %vm1302_vm14 = vcmp.gt.f32.partialorder %v2189_v22, 0.0 }
  0x9e   : > { %1774 = vmatpush1.bf16.msra.mxu0 %v2490_v23  ;;  %1817 = vmatpush1.bf16.msra.mxu1 %v2493_v24  ;;  %v2193_v23 = vadd.f32 -1.0, %v1282_v14  ;;  %v3124_v24 = vadd.f32 %v1269_v15, %v1237_v52  ;;  %vm1303_vm2 = vcmp.gt.f32.partialorder %v3135_v32, 0.0 }
  0x9f   : > { %1775 = vmatprep.subr.bf16.mxu0 %v2498_v26  ;;  %1818 = vmatprep.subr.bf16.mxu1 %v2501_v27  ;;  %v2516_v26 = vld [vmem:[%s3326_s3 + $0x4] ss:$8 sps:$4 sm:$0xff]   ;;  %v2610_v27 = vmov 0.0   ;;  %vm2268_vm5 = vmpackc.low %vm1303_vm2, %vm1299_vm1 }
  0xa0   : > { %v2195_v28 = vsel %vm1300_vm11, 1.0, %v2610_v27  ;;  %vm1306_vm15 = vcmp.gt.f32.partialorder %v2193_v23, 0.0  ;;  %v2197_v41 = vsel %vm1302_vm14, 1.0, %v2610_v27  ;;  %v2194_v62 = vsel %vm1299_vm1, 1.0, %v2610_v27  ;;  %v2534_v23 = vld [vmem:[%s3326_s3 + $0xd4] ss:$8 sps:$4 sm:$0xff]  }
  0xa1   : > { %v1324_v35 = vsub.f32 1.0, %v2195_v28  ;;  %v1340_v36 = vmul.f32 0.0, %v2195_v28  ;;  %v2201_v45 = vsel %vm1306_vm15, 1.0, %v2610_v27  ;;  %v1326_v46 = vsub.f32 1.0, %v2197_v41  ;;  %vm3148_vm0 = vmpackc.low %vm1306_vm15, %vm1302_vm14 }
  0xa2   : > { %1776 = vmatpush1.bf16.msra.mxu0 %v2496_v33  ;;  %1819 = vmatpush1.bf16.msra.mxu1 %v2499_v34  ;;  %v2519_v33 = vld [vmem:[%s3326_s3 + $0x104] ss:$8 sps:$4 sm:$0xff]   ;;  %v2199_v34 = vsel %vm1304_vm12, 1.0, %v2610_v27  ;;  %v1342_v47 = vmul.f32 0.0, %v2197_v41  ;;  %v1330_v53 = vsub.f32 1.0, %v2201_v45  ;;  %v1346_v54 = vmul.f32 0.0, %v2201_v45 }
  0xa3   : > { %1777 = vmatprep.subr.bf16.mxu0 %v2504_v39  ;;  %1820 = vmatprep.subr.bf16.mxu1 %v2507_v40  ;;  %v1328_v37 = vsub.f32 1.0, %v2199_v34  ;;  %v1344_v39 = vmul.f32 0.0, %v2199_v34  ;;  %v2611_v40 = vmov 1.0|1.0   ;;  %v1332_v44 = vmul.f32 %v1324_v35, %v1276_v2  ;;  %v2538_v45 = vld [vmem:[%s3326_s3 + $0xc0] ss:$8 sps:$4 sm:$0xff]  }
  0xa4   : > { %2267 = vmatprep.mubr.msk.bf16.mxu0 %vm2266_vm13, %v2611_v40  ;;  %v1334_v61 = vmul.f32 %v1326_v46, %v1278_v13  ;;  %v1338_v0 = vmul.f32 %v1330_v53, %v1282_v14  ;;  %2271 = vmatprep.mubr.msk.bf16.mxu1 %vm3148_vm0, %v2611_v40  ;;  %v1323_v2 = vsub.f32 1.0, %v2194_v62  ;;  %v1339_v5 = vmul.f32 0.0, %v2194_v62  ;;  %v2528_v13 = vld [vmem:[%s3326_s3 + $0xe4] ss:$8 sps:$4 sm:$0xff]   ;;  %v2541_v46 = vld [vmem:[%s3326_s3 + $0x1c0] ss:$8 sps:$4 sm:$0xff]  }
  0xa5   : > { %v1336_v52 = vmul.f32 %v1328_v37, %v1280_v7  ;;  %v2520_v7 = vld [vmem:[%s3326_s3 + $0xf0] ss:$8 sps:$4 sm:$0xff]   ;;  %v3182_v12 = vadd.f32 -1.0, %v3124_v24  ;;  %v2531_v14 = vld [vmem:[%s3326_s3 + $0x1e4] ss:$8 sps:$4 sm:$0xff]  }
  0xa6   : > { %1778 = vmatpush1.bf16.msra.mxu0 %v2502_v60  ;;  %1821 = vmatpush1.bf16.msra.mxu1 %v2505_v1  ;;  %v1348_v60 = vadd.f32 %v1340_v36, %v1332_v44  ;;  %v2198_v1 = vsel %vm1303_vm2, 1.0, %v2610_v27  ;;  %v1350_v3 = vadd.f32 %v1342_v47, %v1334_v61  ;;  %v1354_v9 = vadd.f32 %v1346_v54, %v1338_v0  ;;  %v2532_v36 = vld [vmem:[%s3326_s3 + $0xd0] ss:$8 sps:$4 sm:$0xff]   ;;  %v2546_v47 = vld [vmem:[%s3326_s3 + $0xb4] ss:$8 sps:$4 sm:$0xff]  }
  0xa7   : > { %1779 = vmatprep.subr.bf16.mxu0 %v2510_v6  ;;  %1822 = vmatprep.subr.bf16.mxu1 %v2513_v11  ;;  %v1352_v63 = vadd.f32 %v1344_v39, %v1336_v52  ;;  %v1327_v4 = vsub.f32 1.0, %v2198_v1  ;;  %v1343_v6 = vmul.f32 0.0, %v2198_v1  ;;  %v1331_v10 = vmul.f32 %v1323_v2, %v3115_v18  ;;  %v2535_v37 = vld [vmem:[%s3326_s3 + $0x1d0] ss:$8 sps:$4 sm:$0xff]   ;;  %v2552_v53 = vld [vmem:[%s3326_s3 + $0xa4] ss:$8 sps:$4 sm:$0xff]  }
  0xa8   : > { %1356 = vst [vmem:[#allocation3] sm:$0xff] %v1348_v60  ;;  %v1281_v11 = vadd.f32 %v3119_v20, %v3089_v56  ;;  %1358 = vst [vmem:[#allocation3 + $0x10] sm:$0xff] %v1350_v3  ;;  %vm1301_vm3 = vcmp.gt.f32.partialorder %v3182_v12, 0.0  ;;  %v2526_v56 = vld [vmem:[%s3326_s3 + $0xe0] ss:$8 sps:$4 sm:$0xff]   ;;  %v1207_v12 = vlaneseq }
  0xa9   : > { %1360 = vst [vmem:[#allocation3 + $0x20] sm:$0xff] %v1352_v63  ;;  %v1335_v15 = vmul.f32 %v1327_v4, %v3117_v19  ;;  %1362 = vst [vmem:[#allocation3 + $0x38] sm:$0xff] %v1354_v9  ;;  %v2196_v20 = vsel %vm1301_vm3, 1.0, %v2610_v27  ;;  %v2529_v19 = vld [vmem:[%s3326_s3 + $0x1e0] ss:$8 sps:$4 sm:$0xff]  }
  0xaa   : > { %1780 = vmatpush1.bf16.msra.mxu0 %v2508_v16  ;;  %1823 = vmatpush1.bf16.msra.mxu1 %v2511_v21  ;;  %v1347_v16 = vadd.f32 %v1339_v5, %v1331_v10  ;;  %v3191_v17 = vadd.f32 -1.0, %v1281_v11  ;;  %v1325_v21 = vsub.f32 1.0, %v2196_v20  ;;  %v1341_v22 = vmul.f32 0.0, %v2196_v20  ;;  %v2547_v52 = vld [vmem:[%s3326_s3 + $0x1b0] ss:$8 sps:$4 sm:$0xff]  }
  0xab   : > { %1781 = vmatprep.subr.bf16.mxu0 %v2516_v26  ;;  %1824 = vmatprep.subr.bf16.mxu1 %v2519_v33  ;;  %v1351_v18 = vadd.f32 %v1343_v6, %v1335_v15  ;;  %v2537_v26 = vld [vmem:[%s3326_s3 + $0x1d4] ss:$8 sps:$4 sm:$0xff]   ;;  %v2555_v54 = vld [vmem:[%s3326_s3 + $0x1a4] ss:$8 sps:$4 sm:$0xff]   ;;  %v2556_v62 = vld [vmem:[%s3326_s3 + $0x90] ss:$8 sps:$4 sm:$0xff]  }
  0xac   : > { %1355 = vst [vmem:[#allocation3 + $0x30] sm:$0xff] %v1347_v16  ;;  %vm1305_vm4 = vcmp.gt.f32.partialorder %v3191_v17, 0.0  ;;  %v1333_v34 = vmul.f32 %v1325_v21, %v3124_v24  ;;  %v2543_v24 = vld [vmem:[%s3326_s3 + $0x1c4] ss:$8 sps:$4 sm:$0xff]   ;;  %v2558_v60 = vld [vmem:[%s3326_s3 + $0x94] ss:$8 sps:$4 sm:$0xff]  }
  0xad   : > { %1359 = vst [vmem:[#allocation3 + $0x8] sm:$0xff] %v1351_v18  ;;  %v2200_v28 = vsel %vm1305_vm4, 1.0, %v2610_v27  ;;  %v2561_v61 = vld [vmem:[%s3326_s3 + $0x194] ss:$8 sps:$4 sm:$0xff]   ;;  %v2559_v63 = vld [vmem:[%s3326_s3 + $0x190] ss:$8 sps:$4 sm:$0xff]   ;;  %vm2272_vm6 = vmpackc.low %vm1305_vm4, %vm1301_vm3 }
  0xae   : > { %1782 = vmatpush1.bf16.msra.mxu0 %v2514_v43  ;;  %1825 = vmatpush1.bf16.msra.mxu1 %v2517_v51  ;;  %v1329_v33 = vsub.f32 1.0, %v2200_v28  ;;  %v1345_v35 = vmul.f32 0.0, %v2200_v28  ;;  %v1349_v41 = vadd.f32 %v1341_v22, %v1333_v34  ;;  %v2540_v43 = vld [vmem:[%s3326_s3 + $0xc4] ss:$8 sps:$4 sm:$0xff]   ;;  %v2544_v51 = vld [vmem:[%s3326_s3 + $0xb0] ss:$8 sps:$4 sm:$0xff]  }
  0xaf   : > { %1783 = vmatprep.subr.bf16.mxu0 %v2522_v55  ;;  %1826 = vmatprep.subr.bf16.mxu1 %v2525_v59  ;;  %v2550_v55 = vld [vmem:[%s3326_s3 + $0xa0] ss:$8 sps:$4 sm:$0xff]   ;;  %v2564_v0 = vld [vmem:[%s3326_s3 + $0x84] ss:$8 sps:$4 sm:$0xff]   ;;  %v1208_v15 = vshrl.u32 %v1207_v12, 7 }
  0xb0   : > { %v1337_v39 = vmul.f32 %v1329_v33, %v1281_v11  ;;  %1357 = vst [vmem:[#allocation3 + $0x18] sm:$0xff] %v1349_v41  ;;  %v2553_v59 = vld [vmem:[%s3326_s3 + $0x1a0] ss:$8 sps:$4 sm:$0xff]   ;;  %v2567_v1 = vld [vmem:[%s3326_s3 + $0x184] ss:$8 sps:$4 sm:$0xff]  }
  0xb1   : > { %v2562_v2 = vld [vmem:[%s3326_s3 + $0x80] ss:$8 sps:$4 sm:$0xff]   ;;  %v1213_v18 = vsub.s32 1, %v1208_v15  ;;  %v1221_v20 = vsub.s32 3, %v1208_v15  ;;  %v1283_v28 = vmul.f32 0.8, %v3083_v48 }
  0xb2   : > { %1784 = vmatpush2.bf16.msra.mxu0 %v2520_v7  ;;  %1827 = vmatpush2.bf16.msra.mxu1 %v2523_v8  ;;  %v1353_v44 = vadd.f32 %v1345_v35, %v1337_v39  ;;  %v2565_v3 = vld [vmem:[%s3326_s3 + $0x180] ss:$8 sps:$4 sm:$0xff]   ;;  %v1284_v39 = vmul.f32 0.8, %v3061_v30  ;;  %v1289_v48 = vmul.f32 0.8, %v3093_v58 }
  0xb3   : > { %1785 = vmatprep.subr.bf16.mxu0 %v2528_v13  ;;  %1828 = vmatprep.subr.bf16.mxu1 %v2531_v14 }
  0xb4   : > { %1361 = vst [vmem:[#allocation3 + $0x28] sm:$0xff] %v1353_v44 }
  0xb6   : > { %1786 = vmatpush2.bf16.msra.mxu0 %v2526_v56  ;;  %1829 = vmatpush2.bf16.msra.mxu1 %v2529_v19  ;;  %v1209_v56 = vsub.s32 0, %v1208_v15 }
  0xb7   : > { %1787 = vmatprep.subr.bf16.mxu0 %v2534_v23  ;;  %1830 = vmatprep.subr.bf16.mxu1 %v2537_v26 }
  0xba   : > { %1788 = vmatpush2.bf16.msra.mxu0 %v2532_v36  ;;  %1831 = vmatpush2.bf16.msra.mxu1 %v2535_v37  ;;  %v1285_v36 = vmul.f32 0.8, %v3091_v57 }
  0xbb   : > { %1789 = vmatprep.subr.bf16.mxu0 %v2540_v43  ;;  %1832 = vmatprep.subr.bf16.mxu1 %v2543_v24 }
  0xbe   : > { %1790 = vmatpush2.bf16.msra.mxu0 %v2538_v45  ;;  %1833 = vmatpush2.bf16.msra.mxu1 %v2541_v46 }
  0xbf   : > { %1791 = vmatprep.subr.bf16.mxu0 %v2546_v47  ;;  %1834 = vmatprep.subr.bf16.mxu1 %v2549_v50  ;;  %v1286_v50 = vmul.f32 0.8, %v3071_v38 }
  0xc2   : > { %1792 = vmatpush2.bf16.msra.mxu0 %v2544_v51  ;;  %1835 = vmatpush2.bf16.msra.mxu1 %v2547_v52  ;;  %v1287_v51 = vmul.f32 0.8, %v3085_v49  ;;  %v1288_v49 = vmul.f32 0.8, %v3063_v31 }
  0xc3   : > { %1793 = vmatprep.subr.bf16.mxu0 %v2552_v53  ;;  %1836 = vmatprep.subr.bf16.mxu1 %v2555_v54 }
  0xc6   : > { %1794 = vmatpush2.bf16.msra.mxu0 %v2550_v55  ;;  %1837 = vmatpush2.bf16.msra.mxu1 %v2553_v59 }
  0xc7   : > { %1795 = vmatprep.subr.bf16.mxu0 %v2558_v60  ;;  %1838 = vmatprep.subr.bf16.mxu1 %v2561_v61 }
  0xca   : > { %1796 = vmatpush2.bf16.msra.mxu0 %v2556_v62  ;;  %1839 = vmatpush2.bf16.msra.mxu1 %v2559_v63 }
  0xcb   : > { %1797 = vmatprep.subr.bf16.mxu0 %v2564_v0  ;;  %1840 = vmatprep.subr.bf16.mxu1 %v2567_v1 }
  0xce   : > { %1798 = vmatpush2.bf16.msra.mxu0 %v2562_v2  ;;  %1841 = vmatpush2.bf16.msra.mxu1 %v2565_v3 }
  0xd1   : > { %2269 = vmatmul.mubr.msk.bf16.vlgmr.msra.gmra.mxu0 %vm2268_vm5, %v2611_v40  ;;  %2273 = vmatmul.mubr.msk.bf16.vlgmr.msra.gmra.mxu1 %vm2272_vm6, %v2611_v40  ;;  %v1217_v40 = vsub.s32 2, %v1208_v15 }
  0xd2   : > { %1892 = vmatprep.mubr.bf16.mxu0 %v2609_v25  ;;  %v1205_v25 = vld [vmem:[%s3325_s2] sm:$0xf] }
  0xd3   : > { %v1210_v22 = vrot.slane %v1205_v25, %v1209_v56  ;;  %v1218_v33 = vrot.slane %v1205_v25, %v1217_v40  ;;  %v1214_v37 = vrot.slane %v1205_v25, %v1213_v18  ;;  %v1222_v41 = vrot.slane %v1205_v25, %v1221_v20 }
 0x111   : > { %v610_v4 = vpop.f32.mrf.mxu0  ;;  %v653_v5 = vpop.f32.mrf.mxu1 }
 0x113   : > { %v612_v6 = vpop.f32.mrf.mxu0  ;;  %v655_v29 = vpop.f32.mrf.mxu1 }
 0x115   : > { %v614_v7 = vpop.f32.mrf.mxu0  ;;  %v657_v32 = vpop.f32.mrf.mxu1 }
 0x117   : > { %v616_v8 = vpop.f32.mrf.mxu0  ;;  %v659_v9 = vpop.f32.mrf.mxu1 }
 0x131   : > { %v857_v10 = vpop.f32.mrf.mxu0  ;;  %v900_v11 = vpop.f32.mrf.mxu1 }
 0x132   : > { %v858_v23 = vadd.f32 %v857_v10, %v610_v4  ;;  %v901_v26 = vadd.f32 %v900_v11, %v653_v5  ;;  %v1290_v5 = vmul.f32 0.8, %v3080_v42 }
 0x133   : > { %v859_v13 = vpop.f32.mrf.mxu0  ;;  %v902_v14 = vpop.f32.mrf.mxu1 }
 0x134   : > { %v860_v43 = vadd.f32 %v859_v13, %v612_v6  ;;  %v903_v24 = vadd.f32 %v902_v14, %v655_v29 }
 0x135   : > { %v861_v16 = vpop.f32.mrf.mxu0  ;;  %v904_v17 = vpop.f32.mrf.mxu1 }
 0x136   : > { %v862_v55 = vadd.f32 %v861_v16, %v614_v7  ;;  %v905_v59 = vadd.f32 %v904_v17, %v657_v32 }
 0x137   : > { %v863_v19 = vpop.f32.mrf.mxu0  ;;  %v906_v21 = vpop.f32.mrf.mxu1 }
 0x138   : > { %v864_v30 = vadd.f32 %v863_v19, %v616_v8  ;;  %v907_v60 = vadd.f32 %v906_v21, %v659_v9 }
 0x151   : > { %v1145_v34 = vpop.f32.mrf.mxu0  ;;  %v1188_v35 = vpop.f32.mrf.mxu1 }
 0x152   : > { %v1197_v44 = vadd.f32 %v1145_v34, %v858_v23  ;;  %v1199_v45 = vadd.f32 %v1188_v35, %v901_v26 }
 0x153   : > { %v1147_v46 = vpop.f32.mrf.mxu0  ;;  %v1190_v47 = vpop.f32.mrf.mxu1 }
 0x154   : > { %v1227_v52 = vadd.f32 %v1210_v22, %v1197_v44  ;;  %v1229_v53 = vadd.f32 %v1218_v33, %v1199_v45  ;;  %v1198_v54 = vadd.f32 %v1147_v46, %v860_v43  ;;  %v1200_v57 = vadd.f32 %v1190_v47, %v903_v24 }
 0x155   : > { %v1149_v61 = vpop.f32.mrf.mxu0  ;;  %v1192_v62 = vpop.f32.mrf.mxu1 }
 0x156   : > { %v1363_v63 = vadd.f32 %v1283_v28, %v1227_v52  ;;  %v1365_v0 = vadd.f32 %v1285_v36, %v1229_v53  ;;  %v1228_v1 = vadd.f32 %v1214_v37, %v1198_v54  ;;  %v1230_v2 = vadd.f32 %v1222_v41, %v1200_v57  ;;  %v1853_v28 = vld [vmem:[%s3327_s4] sm:$0xf] }
 0x157   : > { %v1201_v3 = vadd.f32 %v1149_v61, %v862_v55  ;;  %v1203_v38 = vadd.f32 %v1192_v62, %v905_v59  ;;  %v1151_v4 = vpop.f32.mrf.mxu0  ;;  %v1194_v58 = vpop.f32.mrf.mxu1 }
 0x158   : > { %1371 = vst [vmem:[#allocation4] sm:$0xff] %v1363_v63  ;;  %1373 = vst [vmem:[#allocation4 + $0x10] sm:$0xff] %v1365_v0  ;;  %v1364_v6 = vadd.f32 %v1284_v39, %v1228_v1  ;;  %v1366_v29 = vadd.f32 %v1286_v50, %v1230_v2  ;;  %v1202_v7 = vadd.f32 %v1151_v4, %v864_v30 }
 0x159   : > { %v1204_v32 = vadd.f32 %v1194_v58, %v907_v60  ;;  %v1231_v8 = vadd.f32 %v1210_v22, %v1201_v3  ;;  %v1233_v9 = vadd.f32 %v1218_v33, %v1203_v38 }
 0x15a   : > { %1372 = vst [vmem:[#allocation4 + $0x18] sm:$0xff] %v1364_v6  ;;  %1374 = vst [vmem:[#allocation4 + $0x20] sm:$0xff] %v1366_v29  ;;  %v1232_v10 = vadd.f32 %v1214_v37, %v1202_v7 }
 0x15b   : > { %v1234_v11 = vadd.f32 %v1222_v41, %v1204_v32  ;;  %v1367_v12 = vadd.f32 %v1287_v51, %v1231_v8  ;;  %v1369_v13 = vadd.f32 %v1289_v48, %v1233_v9 }
 0x15c   : > { %v1368_v14 = vadd.f32 %v1288_v49, %v1232_v10 }
 0x15d   : > { %v1370_v15 = vadd.f32 %v1290_v5, %v1234_v11  ;;  %1375 = vst [vmem:[#allocation4 + $0x28] sm:$0xff] %v1367_v12  ;;  %1377 = vst [vmem:[#allocation4 + $0x30] sm:$0xff] %v1369_v13 }
 0x15e   : > { %1376 = vst [vmem:[#allocation4 + $0x8] sm:$0xff] %v1368_v14 }
 0x15f   : > { %1378 = vst [vmem:[#allocation4 + $0x38] sm:$0xff] %v1370_v15 }
 0x191   : > { %v1801_v31 = vpop.f32.mrf.mxu0  ;;  %v1844_v42 = vpop.f32.mrf.mxu1 }
 0x192   : > { %v1845_v22 = vadd.f32 %v1844_v42, %v1801_v31 }
 0x193   : > { %v1803_v16 = vpop.f32.mrf.mxu0  ;;  %v1846_v17 = vpop.f32.mrf.mxu1 }
 0x194   : > { %v1847_v19 = vadd.f32 %v1846_v17, %v1803_v16 }
 0x195   : > { %v1805_v56 = vpop.f32.mrf.mxu0  ;;  %v1848_v25 = vpop.f32.mrf.mxu1 }
 0x196   : > { %v1849_v40 = vadd.f32 %v1848_v25, %v1805_v56 }
 0x197   : > { %v1807_v18 = vpop.f32.mrf.mxu0  ;;  %v1850_v20 = vpop.f32.mrf.mxu1 }
 0x198   : > { %v1851_v21 = vadd.f32 %v1850_v20, %v1807_v18  ;;  %v1854_v26 = vpack.c.bf16 %v1849_v40, %v1845_v22 }
 0x19a   : > { %v1855_v23 = vpack.c.bf16 %v1851_v21, %v1847_v19 }
 0x19c   : > { %1874 = vmatprep.subr.bf16.mxu0 %v1855_v23 }
 0x19d   : > { %1875 = vmatpush1.bf16.msra.mxu0 %v1854_v26 }
 0x1a0   : > { %2274 = vmatmul.mubr.msk.bf16.vlgmr.msra.gmra.mxu0 %vm1856_vm7, %v1853_v28 }
 0x260   : > { %v1894_v33 = vpop.f32.mrf.mxu0 }
 0x261   : > { %vm1901_vm8 = vcmp.gt.f32.partialorder %v1894_v33, 0.5 }
 0x262   : > { %v1896_v34 = vpop.f32.mrf.mxu0  ;;  %v2275_v35 = vsel %vm1901_vm8, 1.0, %v2610_v27 }
 0x263   : > { %vm1902_vm9 = vcmp.gt.f32.partialorder %v1896_v34, 0.5 }
 0x264   : > { %v2276_v36 = vsel %vm1902_vm9, 1.0, %v2610_v27  ;;  %v1898_v37 = vpop.f32.mrf.mxu0 }
 0x265   : > { %v2280_v39 = vpack.c.bf16 %v2276_v36, %v2275_v35 }
 0x266   : > { %v1899_v41 = vpop.f32.mrf.mxu0 }
 0x267   : > { %1915 = vst [vmem:[%s2690_s10] sm:$0xff] %v2280_v39 }
 0x268 PF: > { %s15_s22 = sadd.s32 1, %s2606_s22   ;;  %s3333_s18 = smov %s2598_s20 }
 0x269   : > { %p12_p8 = scmp.ge.s32.totalorder %s15_s22, 8   ;;  %s3334_s19 = smov %s2602_s21 }
 0x26a   : > { %s3335_s20 = smov %s3338_s23  ;;  %s3336_s21 = smov %s3342_s24 }
 0x26b   :  { %14 = sbr.rel (!%p12_p8) target bundleno = 3 (0x3), region = 76 }

// kernel: tile.28
= control target key start
LH: loop header
LB: loop body
LE: loop exit
PB: predicated region body
PF: predicated region fallthrough
CT: control target
= control target key end

     0   :  { %s22_s0 = inlined_call_operand.vmem [shape: f32[64], index: 0, kind: input, shape index: {}]   ;;  %s23_s1 = inlined_call_operand.vmem [shape: f32[8,64], index: 1, kind: output, shape index: {}]  }
   0x1   :  { %v4_v0 = vld [vmem:[%s22_s0] ss:$0 sm:$0xff] }
   0x2   :  { %5 = vst [vmem:[%s23_s1] sm:$0xff] %v4_v0 }

// kernel: tile.29
= control target key start
LH: loop header
LB: loop body
LE: loop exit
PB: predicated region body
PF: predicated region fallthrough
CT: control target
= control target key end

     0   :  { %vm3_vm0 = vcmask 523264   ;;  %s46_s8 = smov 64   ;;  %vm9_vm1 = vcmask 1048064   ;;  %s75_s0 = inlined_call_operand.vmem [shape: f32[8,64], index: 0, kind: input, shape index: {}]   ;;  %s76_s1 = inlined_call_operand.vmem [shape: f32[1,512], index: 1, kind: output, shape index: {}]  }
   0x1   :  { %v41_v0 = vld [vmem:[%s75_s0 + $0x1] ss:$2 sm:$0xf]   ;;  %v2_v1 = vld [vmem:[%s75_s0] ss:$2 sm:$0xf]  }
   0x2   :  { %7 = vrot.lane.b32.xlu0 %v41_v0, %s46_s8  ;;  %4 = vst.msk [vmem:[#allocation0] ss:$8 sm:$0xf] %vm3_vm0, %v2_v1  }
  0x74   :  { %v8_v2 = vpop.permute.xlu0 %7  }
  0x75   :  { %10 = vst.msk [vmem:[#allocation0] ss:$8 sm:$0xf] %vm9_vm1, %v8_v2  }
  0x7c   :  { %v15_v3 = vld [vmem:[#allocation0] sm:$0x1]  ;;  %v20_v4 = vld [vmem:[#allocation0 + $0x8] sm:$0x1]  ;;  %v26_v5 = vld [vmem:[#allocation0 + $0x10] sm:$0x1] }
  0x7d   :  { %18 = vst [vmem:[%s76_s1] sm:$0x1] %v15_v3  ;;  %42 = vst [vmem:[%s76_s1 + $0x1] sm:$0x1] %v20_v4  ;;  %v33_v6 = vld [vmem:[#allocation0 + $0x18] sm:$0x1] }
  0x7e   :  { %43 = vst [vmem:[%s76_s1 + $0x2] sm:$0x1] %v26_v5  ;;  %44 = vst [vmem:[%s76_s1 + $0x3] sm:$0x1] %v33_v6 }

// kernel: spike_cnn_forward.5
= control target key start
LH: loop header
LB: loop body
LE: loop exit
PB: predicated region body
PF: predicated region fallthrough
CT: control target
= control target key end

     0   :  { %s3431_s18 = smov 0   ;;  %s3433_s19 = smov 0   ;;  %s4362_s0 = inlined_call_operand.vmem [shape: bf16[3,2,8,256], index: 0, kind: input, shape index: {}]   ;;  %s4363_s1 = inlined_call_operand.vmem [shape: bf16[3,256,512], index: 1, kind: input, shape index: {}]   ;;  %s4364_s2 = inlined_call_operand.vmem [shape: f32[1,512], index: 2, kind: input, shape index: {}]   ;;  %s4365_s3 = inlined_call_operand.vmem [shape: bf16[512,256], index: 3, kind: input, shape index: {}]   ;;  %s4366_s4 = inlined_call_operand.vmem [shape: bf16[4,8], index: 4, kind: input, shape index: {}]   ;;  %s4367_s5 = inlined_call_operand.vmem [shape: bf16[3,2,4,256], index: 5, kind: output, shape index: {}]  }
   0x1   :  { %s3435_s20 = smov 0   ;;  %s3437_s21 = smov 0  }
   0x2   :  { %s3439_s22 = smov 0  }
   0x3 LB: > { %s24_s23 = sadd.s32 1, %s3387_s20  ;;  %s27_s24 = sadd.s32 1, %s3391_s21  ;;  %s3395_s22 = sphi %s3439_s22, %s15_s22   ;;  %s3391_s21 = sphi %s3437_s21, %s4375_s21   ;;  %s3387_s20 = sphi %s3435_s20, %s4374_s20   ;;  %s3383_s19 = sphi %s3433_s19, %s4373_s19   ;;  %s3379_s18 = sphi %s3431_s18, %s4372_s18  }
   0x4   : > { %p25_p0 = scmp.ge.s32.totalorder %s24_s23, 3  ;;  %p2500_p1 = scmp.ge.s32.totalorder %s3395_s22, 1 }
   0x5   : > { %p207_p2 = scmp.lt.s32.totalorder %s3395_s22, 7 }
   0x6   : > { %s4377_s23 = smov (%p25_p0, %s24_s23), 0  ;;  %s4379_s24 = smov (!%p25_p0, %s27_s24), %s3391_s21 }
   0x7   : > { %p208_p3 = pnand %p2500_p1, %p207_p2  ;;  %p29_p4 = scmp.ge.s32.totalorder %s4379_s24, 2 }
   0x8   : > { %p243_p5 = scmp.lt.s32.totalorder (!%p208_p3), %s3379_s18, 2  ;;  %p245_p6 = scmp.lt.s32.totalorder (!%p208_p3), %s3383_s19, 1 }
   0x9   : > { %s4381_s24 = smov (%p29_p4, %s4379_s24), 0  ;;  %211 = sbr.rel (%p208_p3) target bundleno = 704 (0x2c0), region = 40 }
   0xa   : > { %p2507_p7 = scmp.ne.s32.totalorder (!%p208_p3), %s3379_s18, 0 }
   0xe   : > { %vm262_vm0 = vcmask 1040384   ;;  %vm263_vm1 = vsmask.f32 256  ;;  %vm265_vm2 = vcmask 1044484   ;;  %vm266_vm3 = vsmask.f32 4352 }
   0xf   : > { %vm3464_vm4 = vmand %vm262_vm0, %vm263_vm1  ;;  %v269_v1 = vld [vmem:[#allocation2] sm:$0x11]  ;;  %s244_s25 = scalar_select %p243_p5, %s3379_s18, 2  ;;  %vm283_vm7 = vcmask 1043456   ;;  %vm284_vm8 = vsmask.f32 7938 }
  0x10   : > { %vm3469_vm5 = vmand %vm265_vm2, %vm266_vm3  ;;  %s4383_s19 = smov (!%p245_p6, %s3383_s19), 1  ;;  %vm286_vm9 = vcmask 1047556   ;;  %vm287_vm10 = vsmask.f32 7954  ;;  %v293_v8 = vld [vmem:[#allocation2 + $0x8] sm:$0x11] }
  0x11   : > { %vm268_vm6 = vmor %vm3469_vm5, %vm3464_vm4  ;;  %s2502_s26 = sshll.u32 %s244_s25, 2  ;;  %s2501_s27 = sshll.u32 %s4383_s19, 1 }
  0x12   : > { %v270_v3 = vsel %vm268_vm6, 0, %v269_v1  ;;  %s249_s28 = sadd.s32 %s2502_s26, %s2501_s27  ;;  %vm285_vm11 = vmand %vm283_vm7, %vm284_vm8 }
  0x13   : > { %271 = vst [vmem:[#allocation2] sm:$0x11] %v270_v3  ;;  %s2503_s29 = sshll.u32 %s249_s28, 2  ;;  %s2506_s30 = sshll.u32 %s249_s28, 1  ;;  %vm288_vm12 = vmand %vm286_vm9, %vm287_vm10 }
  0x14   : > { %s251_s8 = scalar_lea.vmem %s4362_s0, %s2503_s29  ;;  %s3490_s11 = scalar_lea.vmem %s4367_s5, %s2506_s30  ;;  %vm289_vm13 = vmor %vm288_vm12, %vm285_vm11 }
  0x15   : > { %v272_v4 = vld [vmem:[%s251_s8] sm:$0xff]  ;;  %vm296_vm14 = vmand %vm262_vm0, %vm284_vm8 }
  0x16   : > { %v274_v5 = vshrl.u32 %v272_v4, 16  ;;  %v277_v6 = vshll.u32 %v272_v4, 16  ;;  %vm297_vm15 = vmand %vm265_vm2, %vm287_vm10 }
  0x17   : > { %vm298_vm1 = vmor %vm297_vm15, %vm296_vm14 }
  0x18   : > { %v276_v7 = vrot.slane %v274_v5, 7 }
  0x1a   : > { %v290_v9 = vld [vmem:[#allocation2] sm:$0xff]  ;;  %v280_v10 = vrot.slane %v276_v7, 4  ;;  %v279_v11 = vor.u32 %v277_v6, %v276_v7 }
  0x1c   : > { %v294_v12 = vsel %vm268_vm6, %v280_v10, %v293_v8  ;;  %v291_v13 = vsel %vm289_vm13, %v279_v11, %v290_v9 }
  0x1d   : > { %295 = vst [vmem:[#allocation2 + $0x8] sm:$0x11] %v294_v12  ;;  %292 = vst [vmem:[#allocation2] sm:$0xff] %v291_v13 }
  0x22   : > { %305 = sbr.rel (%p2507_p7) target bundleno = 44 (0x2c), region = 44 }
  0x24   : > { %v299_v14 = vld [vmem:[#allocation2 + $0x8] sm:$0x11] }
  0x25   : > { %v300_v15 = vsel %vm298_vm1, 0, %v299_v14 }
  0x26   : > { %301 = vst [vmem:[#allocation2 + $0x8] sm:$0x11] %v300_v15 }
  0x27   : > { %v3397_v16 = vmov 0.0  }
  0x28   : > { %306 = vst [vmem:[#allocation3 + $0x8] sm:$0xff] %v3397_v16  ;;  %307 = vst [vmem:[#allocation3 + $0x10] sm:$0xff] %v3397_v16 }
  0x29   : > { %308 = vst [vmem:[#allocation3] sm:$0xff] %v3397_v16  ;;  %309 = vst [vmem:[#allocation3 + $0x18] sm:$0xff] %v3397_v16 }
  0x2a   : > { %310 = vst [vmem:[#allocation4 + $0x10] sm:$0xff] %v3397_v16  ;;  %311 = vst [vmem:[#allocation4] sm:$0xff] %v3397_v16 }
  0x2b   : > { %312 = vst [vmem:[#allocation4 + $0x8] sm:$0xff] %v3397_v16  ;;  %313 = vst [vmem:[#allocation4 + $0x18] sm:$0xff] %v3397_v16 }
  0x2c PF: > { %v2966_v17 = vld [vmem:[%s4363_s1 + $0x2e4] ss:$16 sps:$4 sm:$0xff]   ;;  %v2968_v18 = vld [vmem:[%s4363_s1 + $0x2ec] ss:$16 sps:$4 sm:$0xff]   ;;  %v2970_v19 = vld [vmem:[%s4363_s1 + $0x2e0] ss:$16 sps:$4 sm:$0xff]  }
  0x2d   : > { %789 = vmatprep.subr.bf16.mxu0 %v2966_v17  ;;  %v2971_v20 = vld [vmem:[%s4363_s1 + $0x2e8] ss:$16 sps:$4 sm:$0xff]   ;;  %830 = vmatprep.subr.bf16.mxu1 %v2968_v18  ;;  %v2972_v21 = vld [vmem:[%s4363_s1 + $0x2c4] ss:$16 sps:$4 sm:$0xff]   ;;  %v2974_v22 = vld [vmem:[%s4363_s1 + $0x2cc] ss:$16 sps:$4 sm:$0xff]  }
  0x2e   : > { %790 = vmatpush1.bf16.msra.mxu0 %v2970_v19  ;;  %831 = vmatpush1.bf16.msra.mxu1 %v2971_v20  ;;  %v2976_v23 = vld [vmem:[%s4363_s1 + $0x2c0] ss:$16 sps:$4 sm:$0xff]   ;;  %v2977_v24 = vld [vmem:[%s4363_s1 + $0x2c8] ss:$16 sps:$4 sm:$0xff]   ;;  %v2978_v25 = vld [vmem:[%s4363_s1 + $0x2a4] ss:$16 sps:$4 sm:$0xff]  }
  0x2f   : > { %791 = vmatprep.subr.bf16.mxu0 %v2972_v21  ;;  %832 = vmatprep.subr.bf16.mxu1 %v2974_v22  ;;  %v2980_v26 = vld [vmem:[%s4363_s1 + $0x2ac] ss:$16 sps:$4 sm:$0xff]   ;;  %v2982_v27 = vld [vmem:[%s4363_s1 + $0x2a0] ss:$16 sps:$4 sm:$0xff]   ;;  %v2983_v28 = vld [vmem:[%s4363_s1 + $0x2a8] ss:$16 sps:$4 sm:$0xff]  }
  0x30   : > { %v2984_v29 = vld [vmem:[%s4363_s1 + $0x284] ss:$16 sps:$4 sm:$0xff]   ;;  %v2986_v30 = vld [vmem:[%s4363_s1 + $0x28c] ss:$16 sps:$4 sm:$0xff]   ;;  %v2988_v31 = vld [vmem:[%s4363_s1 + $0x280] ss:$16 sps:$4 sm:$0xff]  }
  0x31   : > { %v2989_v32 = vld [vmem:[%s4363_s1 + $0x288] ss:$16 sps:$4 sm:$0xff]   ;;  %v2990_v33 = vld [vmem:[%s4363_s1 + $0x264] ss:$16 sps:$4 sm:$0xff]   ;;  %v2992_v34 = vld [vmem:[%s4363_s1 + $0x26c] ss:$16 sps:$4 sm:$0xff]  }
  0x32   : > { %792 = vmatpush1.bf16.msra.mxu0 %v2976_v23  ;;  %833 = vmatpush1.bf16.msra.mxu1 %v2977_v24  ;;  %v2994_v35 = vld [vmem:[%s4363_s1 + $0x260] ss:$16 sps:$4 sm:$0xff]   ;;  %v2995_v36 = vld [vmem:[%s4363_s1 + $0x268] ss:$16 sps:$4 sm:$0xff]   ;;  %v2996_v37 = vld [vmem:[%s4363_s1 + $0x244] ss:$16 sps:$4 sm:$0xff]  }
  0x33   : > { %793 = vmatprep.subr.bf16.mxu0 %v2978_v25  ;;  %834 = vmatprep.subr.bf16.mxu1 %v2980_v26  ;;  %v2998_v38 = vld [vmem:[%s4363_s1 + $0x24c] ss:$16 sps:$4 sm:$0xff]   ;;  %v3000_v39 = vld [vmem:[%s4363_s1 + $0x240] ss:$16 sps:$4 sm:$0xff]   ;;  %v3001_v40 = vld [vmem:[%s4363_s1 + $0x248] ss:$16 sps:$4 sm:$0xff]  }
  0x34   : > { %v3002_v41 = vld [vmem:[%s4363_s1 + $0x224] ss:$16 sps:$4 sm:$0xff]   ;;  %v3004_v42 = vld [vmem:[%s4363_s1 + $0x22c] ss:$16 sps:$4 sm:$0xff]   ;;  %v3006_v43 = vld [vmem:[%s4363_s1 + $0x220] ss:$16 sps:$4 sm:$0xff]  }
  0x35   : > { %v3007_v44 = vld [vmem:[%s4363_s1 + $0x228] ss:$16 sps:$4 sm:$0xff]   ;;  %v3008_v45 = vld [vmem:[%s4363_s1 + $0x204] ss:$16 sps:$4 sm:$0xff]   ;;  %v3010_v46 = vld [vmem:[%s4363_s1 + $0x20c] ss:$16 sps:$4 sm:$0xff]  }
  0x36   : > { %794 = vmatpush1.bf16.msra.mxu0 %v2982_v27  ;;  %835 = vmatpush1.bf16.msra.mxu1 %v2983_v28  ;;  %v3012_v47 = vld [vmem:[%s4363_s1 + $0x200] ss:$16 sps:$4 sm:$0xff]   ;;  %v3013_v48 = vld [vmem:[%s4363_s1 + $0x208] ss:$16 sps:$4 sm:$0xff]   ;;  %v3014_v49 = vld [vmem:[%s4363_s1 + $0x3e4] ss:$16 sps:$4 sm:$0xff]  }
  0x37   : > { %795 = vmatprep.subr.bf16.mxu0 %v2984_v29  ;;  %836 = vmatprep.subr.bf16.mxu1 %v2986_v30  ;;  %v3016_v50 = vld [vmem:[%s4363_s1 + $0x3ec] ss:$16 sps:$4 sm:$0xff]   ;;  %v3018_v51 = vld [vmem:[%s4363_s1 + $0x3e0] ss:$16 sps:$4 sm:$0xff]   ;;  %v3019_v52 = vld [vmem:[%s4363_s1 + $0x3e8] ss:$16 sps:$4 sm:$0xff]  }
  0x38   : > { %v3020_v53 = vld [vmem:[%s4363_s1 + $0x3c4] ss:$16 sps:$4 sm:$0xff]   ;;  %v3022_v54 = vld [vmem:[%s4363_s1 + $0x3cc] ss:$16 sps:$4 sm:$0xff]   ;;  %v3024_v55 = vld [vmem:[%s4363_s1 + $0x3c0] ss:$16 sps:$4 sm:$0xff]  }
  0x39   : > { %v3025_v56 = vld [vmem:[%s4363_s1 + $0x3c8] ss:$16 sps:$4 sm:$0xff]   ;;  %v3026_v57 = vld [vmem:[%s4363_s1 + $0x3a4] ss:$16 sps:$4 sm:$0xff]   ;;  %v3028_v58 = vld [vmem:[%s4363_s1 + $0x3ac] ss:$16 sps:$4 sm:$0xff]  }
  0x3a   : > { %796 = vmatpush1.bf16.msra.mxu0 %v2988_v31  ;;  %837 = vmatpush1.bf16.msra.mxu1 %v2989_v32  ;;  %v3030_v59 = vld [vmem:[%s4363_s1 + $0x3a0] ss:$16 sps:$4 sm:$0xff]   ;;  %v3031_v60 = vld [vmem:[%s4363_s1 + $0x3a8] ss:$16 sps:$4 sm:$0xff]   ;;  %v3032_v61 = vld [vmem:[%s4363_s1 + $0x384] ss:$16 sps:$4 sm:$0xff]  }
  0x3b   : > { %797 = vmatprep.subr.bf16.mxu0 %v2990_v33  ;;  %838 = vmatprep.subr.bf16.mxu1 %v2992_v34  ;;  %v3034_v62 = vld [vmem:[%s4363_s1 + $0x38c] ss:$16 sps:$4 sm:$0xff]   ;;  %v3643_v63 = vld [vmem:[#allocation2] sm:$0xff]  ;;  %v3037_v2 = vld [vmem:[%s4363_s1 + $0x388] ss:$16 sps:$4 sm:$0xff]   ;;  %vm2329_vm10 = vcmask 64512  }
  0x3c   : > { %v3645_v0 = vld [vmem:[#allocation2 + $0x8] sm:$0x11]  ;;  %v3036_v1 = vld [vmem:[%s4363_s1 + $0x380] ss:$16 sps:$4 sm:$0xff]   ;;  %v3038_v4 = vld [vmem:[%s4363_s1 + $0x364] ss:$16 sps:$4 sm:$0xff]  }
  0x3d   : > { %v2573_v3 = vcombine.high %v3643_v63, %v3645_v0  ;;  %v3040_v5 = vld [vmem:[%s4363_s1 + $0x36c] ss:$16 sps:$4 sm:$0xff]   ;;  %v3042_v8 = vld [vmem:[%s4363_s1 + $0x360] ss:$16 sps:$4 sm:$0xff]   ;;  %v3043_v9 = vld [vmem:[%s4363_s1 + $0x368] ss:$16 sps:$4 sm:$0xff]   ;;  %v2572_v15 = vcombine.low %v3643_v63, %v3645_v0 }
  0x3e   : > { %798 = vmatpush1.bf16.msra.mxu0 %v2994_v35  ;;  %839 = vmatpush1.bf16.msra.mxu1 %v2995_v36  ;;  %v3044_v11 = vld [vmem:[%s4363_s1 + $0x344] ss:$16 sps:$4 sm:$0xff]   ;;  %v3046_v12 = vld [vmem:[%s4363_s1 + $0x34c] ss:$16 sps:$4 sm:$0xff]   ;;  %v3048_v14 = vld [vmem:[%s4363_s1 + $0x340] ss:$16 sps:$4 sm:$0xff]   ;;  %v2639_v35 = vcombine.high %v3643_v63, %v3643_v63 }
  0x3f   : > { %799 = vmatprep.subr.bf16.mxu0 %v2996_v37  ;;  %840 = vmatprep.subr.bf16.mxu1 %v2998_v38  ;;  %v461_v6 = vshrl.u32 %v2573_v3, 16  ;;  %v463_v7 = vshll.u32 %v2573_v3, 16  ;;  %v3049_v16 = vld [vmem:[%s4363_s1 + $0x348] ss:$16 sps:$4 sm:$0xff]   ;;  %v3050_v17 = vld [vmem:[%s4363_s1 + $0x324] ss:$16 sps:$4 sm:$0xff]  }
  0x40   : > { %v3052_v18 = vld [vmem:[%s4363_s1 + $0x32c] ss:$16 sps:$4 sm:$0xff]   ;;  %v3054_v19 = vld [vmem:[%s4363_s1 + $0x320] ss:$16 sps:$4 sm:$0xff]   ;;  %v456_v20 = vshll.u32 %v2572_v15, 16  ;;  %v454_v25 = vshrl.u32 %v2572_v15, 16 }
  0x41   : > { %v465_v10 = vrot.slane %v463_v7, 1  ;;  %v3055_v21 = vld [vmem:[%s4363_s1 + $0x328] ss:$16 sps:$4 sm:$0xff]   ;;  %v3056_v22 = vld [vmem:[%s4363_s1 + $0x304] ss:$16 sps:$4 sm:$0xff]  }
  0x42   : > { %800 = vmatpush1.bf16.msra.mxu0 %v3000_v39  ;;  %841 = vmatpush1.bf16.msra.mxu1 %v3001_v40  ;;  %v3058_v23 = vld [vmem:[%s4363_s1 + $0x30c] ss:$16 sps:$4 sm:$0xff]   ;;  %v3060_v24 = vld [vmem:[%s4363_s1 + $0x300] ss:$16 sps:$4 sm:$0xff]   ;;  %v458_v26 = vrot.slane %v456_v20, 1 }
  0x43   : > { %801 = vmatprep.subr.bf16.mxu0 %v3002_v41  ;;  %842 = vmatprep.subr.bf16.mxu1 %v3004_v42  ;;  %v466_v13 = vor.u32 %v465_v10, %v461_v6  ;;  %v3061_v27 = vld [vmem:[%s4363_s1 + $0x308] ss:$16 sps:$4 sm:$0xff]   ;;  %v3066_v28 = vld [vmem:[%s4363_s1 + $0xe4] ss:$16 sps:$4 sm:$0xff]   ;;  %v3069_v29 = vld [vmem:[%s4363_s1 + $0xec] ss:$16 sps:$4 sm:$0xff]  }
  0x44   : > { %v459_v30 = vor.u32 %v458_v26, %v454_v25  ;;  %v3064_v31 = vld [vmem:[%s4363_s1 + $0xe0] ss:$16 sps:$4 sm:$0xff]   ;;  %v3067_v32 = vld [vmem:[%s4363_s1 + $0xe8] ss:$16 sps:$4 sm:$0xff]   ;;  %v3072_v33 = vld [vmem:[%s4363_s1 + $0xc4] ss:$16 sps:$4 sm:$0xff]  }
  0x45   : > { %821 = vmatprep.mubr.bf16.mxu0 %v466_v13  ;;  %862 = vmatprep.mubr.bf16.mxu1 %v466_v13  ;;  %v3075_v34 = vld [vmem:[%s4363_s1 + $0xcc] ss:$16 sps:$4 sm:$0xff]   ;;  %v3070_v36 = vld [vmem:[%s4363_s1 + $0xc0] ss:$16 sps:$4 sm:$0xff]   ;;  %v3073_v37 = vld [vmem:[%s4363_s1 + $0xc8] ss:$16 sps:$4 sm:$0xff]  }
  0x46   : > { %802 = vmatpush1.bf16.msra.mxu0 %v3006_v43  ;;  %843 = vmatpush1.bf16.msra.mxu1 %v3007_v44  ;;  %v3078_v38 = vld [vmem:[%s4363_s1 + $0xa4] ss:$16 sps:$4 sm:$0xff]   ;;  %v3081_v39 = vld [vmem:[%s4363_s1 + $0xac] ss:$16 sps:$4 sm:$0xff]   ;;  %v3076_v40 = vld [vmem:[%s4363_s1 + $0xa0] ss:$16 sps:$4 sm:$0xff]  }
  0x47   : > { %803 = vmatprep.subr.bf16.mxu0 %v3008_v45  ;;  %844 = vmatprep.subr.bf16.mxu1 %v3010_v46  ;;  %v3079_v41 = vld [vmem:[%s4363_s1 + $0xa8] ss:$16 sps:$4 sm:$0xff]   ;;  %v3084_v42 = vld [vmem:[%s4363_s1 + $0x84] ss:$16 sps:$4 sm:$0xff]   ;;  %v3087_v43 = vld [vmem:[%s4363_s1 + $0x8c] ss:$16 sps:$4 sm:$0xff]  }
  0x48   : > { %v3082_v44 = vld [vmem:[%s4363_s1 + $0x80] ss:$16 sps:$4 sm:$0xff]   ;;  %v3085_v45 = vld [vmem:[%s4363_s1 + $0x88] ss:$16 sps:$4 sm:$0xff]   ;;  %v3090_v46 = vld [vmem:[%s4363_s1 + $0x64] ss:$16 sps:$4 sm:$0xff]  }
  0x49   : > { %v3115_v3 = vld [vmem:[%s4363_s1 + $0x1e8] ss:$16 sps:$4 sm:$0xff]   ;;  %v3118_v6 = vld [vmem:[%s4363_s1 + $0x1c0] ss:$16 sps:$4 sm:$0xff]   ;;  %v3135_v13 = vld [vmem:[%s4363_s1 + $0x18c] ss:$16 sps:$4 sm:$0xff]  }
  0x4a   : > { %804 = vmatpush1.bf16.msra.mxu0 %v3012_v47  ;;  %845 = vmatpush1.bf16.msra.mxu1 %v3013_v48  ;;  %v3093_v47 = vld [vmem:[%s4363_s1 + $0x6c] ss:$16 sps:$4 sm:$0xff]   ;;  %v3088_v48 = vld [vmem:[%s4363_s1 + $0x60] ss:$16 sps:$4 sm:$0xff]   ;;  %v3121_v7 = vld [vmem:[%s4363_s1 + $0x1c8] ss:$16 sps:$4 sm:$0xff]  }
  0x4b   : > { %805 = vmatprep.subr.bf16.mxu0 %v3014_v49  ;;  %846 = vmatprep.subr.bf16.mxu1 %v3016_v50  ;;  %v3091_v49 = vld [vmem:[%s4363_s1 + $0x68] ss:$16 sps:$4 sm:$0xff]   ;;  %v3096_v50 = vld [vmem:[%s4363_s1 + $0x44] ss:$16 sps:$4 sm:$0xff]   ;;  %v3124_v10 = vld [vmem:[%s4363_s1 + $0x1a0] ss:$16 sps:$4 sm:$0xff]  }
  0x4c   : > { %v3133_v15 = vld [vmem:[%s4363_s1 + $0x188] ss:$16 sps:$4 sm:$0xff]   ;;  %v3144_v20 = vld [vmem:[%s4363_s1 + $0x144] ss:$16 sps:$4 sm:$0xff]   ;;  %v3153_v25 = vld [vmem:[%s4363_s1 + $0x12c] ss:$16 sps:$4 sm:$0xff]  }
  0x4d   : > { %v3148_v26 = vld [vmem:[%s4363_s1 + $0x120] ss:$16 sps:$4 sm:$0xff]  }
  0x4e   : > { %806 = vmatpush2.bf16.msra.mxu0 %v3018_v51  ;;  %847 = vmatpush2.bf16.msra.mxu1 %v3019_v52  ;;  %v3099_v51 = vld [vmem:[%s4363_s1 + $0x4c] ss:$16 sps:$4 sm:$0xff]   ;;  %v3094_v52 = vld [vmem:[%s4363_s1 + $0x40] ss:$16 sps:$4 sm:$0xff]  }
  0x4f   : > { %807 = vmatprep.subr.bf16.mxu0 %v3020_v53  ;;  %848 = vmatprep.subr.bf16.mxu1 %v3022_v54  ;;  %v3097_v53 = vld [vmem:[%s4363_s1 + $0x48] ss:$16 sps:$4 sm:$0xff]   ;;  %v3102_v54 = vld [vmem:[%s4363_s1 + $0x24] ss:$16 sps:$4 sm:$0xff]  }
  0x52   : > { %808 = vmatpush2.bf16.msra.mxu0 %v3024_v55  ;;  %849 = vmatpush2.bf16.msra.mxu1 %v3025_v56  ;;  %v3105_v55 = vld [vmem:[%s4363_s1 + $0x2c] ss:$16 sps:$4 sm:$0xff]   ;;  %v3100_v56 = vld [vmem:[%s4363_s1 + $0x20] ss:$16 sps:$4 sm:$0xff]  }
  0x53   : > { %809 = vmatprep.subr.bf16.mxu0 %v3026_v57  ;;  %850 = vmatprep.subr.bf16.mxu1 %v3028_v58  ;;  %v3103_v57 = vld [vmem:[%s4363_s1 + $0x28] ss:$16 sps:$4 sm:$0xff]   ;;  %v3108_v58 = vld [vmem:[%s4363_s1 + $0x4] ss:$16 sps:$4 sm:$0xff]  }
  0x56   : > { %810 = vmatpush2.bf16.msra.mxu0 %v3030_v59  ;;  %851 = vmatpush2.bf16.msra.mxu1 %v3031_v60  ;;  %v3111_v59 = vld [vmem:[%s4363_s1 + $0xc] ss:$16 sps:$4 sm:$0xff]   ;;  %v3106_v60 = vld [vmem:[%s4363_s1] ss:$16 sps:$4 sm:$0xff]  }
  0x57   : > { %811 = vmatprep.subr.bf16.mxu0 %v3032_v61  ;;  %852 = vmatprep.subr.bf16.mxu1 %v3034_v62  ;;  %v3109_v61 = vld [vmem:[%s4363_s1 + $0x8] ss:$16 sps:$4 sm:$0xff]   ;;  %v3114_v62 = vld [vmem:[%s4363_s1 + $0x1e4] ss:$16 sps:$4 sm:$0xff]  }
  0x5a   : > { %812 = vmatpush2.bf16.msra.mxu0 %v3036_v1  ;;  %853 = vmatpush2.bf16.msra.mxu1 %v3037_v2  ;;  %v3117_v1 = vld [vmem:[%s4363_s1 + $0x1ec] ss:$16 sps:$4 sm:$0xff]   ;;  %v3112_v2 = vld [vmem:[%s4363_s1 + $0x1e0] ss:$16 sps:$4 sm:$0xff]  }
  0x5b   : > { %813 = vmatprep.subr.bf16.mxu0 %v3038_v4  ;;  %854 = vmatprep.subr.bf16.mxu1 %v3040_v5  ;;  %v3120_v4 = vld [vmem:[%s4363_s1 + $0x1c4] ss:$16 sps:$4 sm:$0xff]   ;;  %v3123_v5 = vld [vmem:[%s4363_s1 + $0x1cc] ss:$16 sps:$4 sm:$0xff]  }
  0x5e   : > { %814 = vmatpush2.bf16.msra.mxu0 %v3042_v8  ;;  %855 = vmatpush2.bf16.msra.mxu1 %v3043_v9  ;;  %v3126_v8 = vld [vmem:[%s4363_s1 + $0x1a4] ss:$16 sps:$4 sm:$0xff]   ;;  %v3129_v9 = vld [vmem:[%s4363_s1 + $0x1ac] ss:$16 sps:$4 sm:$0xff]  }
  0x5f   : > { %815 = vmatprep.subr.bf16.mxu0 %v3044_v11  ;;  %856 = vmatprep.subr.bf16.mxu1 %v3046_v12  ;;  %v3127_v11 = vld [vmem:[%s4363_s1 + $0x1a8] ss:$16 sps:$4 sm:$0xff]   ;;  %v3132_v12 = vld [vmem:[%s4363_s1 + $0x184] ss:$16 sps:$4 sm:$0xff]  }
  0x62   : > { %816 = vmatpush2.bf16.msra.mxu0 %v3048_v14  ;;  %857 = vmatpush2.bf16.msra.mxu1 %v3049_v16  ;;  %v3130_v14 = vld [vmem:[%s4363_s1 + $0x180] ss:$16 sps:$4 sm:$0xff]   ;;  %v3138_v16 = vld [vmem:[%s4363_s1 + $0x164] ss:$16 sps:$4 sm:$0xff]  }
  0x63   : > { %817 = vmatprep.subr.bf16.mxu0 %v3050_v17  ;;  %858 = vmatprep.subr.bf16.mxu1 %v3052_v18  ;;  %v3141_v17 = vld [vmem:[%s4363_s1 + $0x16c] ss:$16 sps:$4 sm:$0xff]   ;;  %v3136_v18 = vld [vmem:[%s4363_s1 + $0x160] ss:$16 sps:$4 sm:$0xff]  }
  0x66   : > { %818 = vmatpush2.bf16.msra.mxu0 %v3054_v19  ;;  %859 = vmatpush2.bf16.msra.mxu1 %v3055_v21  ;;  %v3139_v19 = vld [vmem:[%s4363_s1 + $0x168] ss:$16 sps:$4 sm:$0xff]   ;;  %v3147_v21 = vld [vmem:[%s4363_s1 + $0x14c] ss:$16 sps:$4 sm:$0xff]  }
  0x67   : > { %819 = vmatprep.subr.bf16.mxu0 %v3056_v22  ;;  %860 = vmatprep.subr.bf16.mxu1 %v3058_v23  ;;  %v3142_v22 = vld [vmem:[%s4363_s1 + $0x140] ss:$16 sps:$4 sm:$0xff]   ;;  %v3145_v23 = vld [vmem:[%s4363_s1 + $0x148] ss:$16 sps:$4 sm:$0xff]  }
  0x6a   : > { %820 = vmatpush2.bf16.msra.mxu0 %v3060_v24  ;;  %861 = vmatpush2.bf16.msra.mxu1 %v3061_v27  ;;  %v3150_v24 = vld [vmem:[%s4363_s1 + $0x124] ss:$16 sps:$4 sm:$0xff]   ;;  %v3151_v27 = vld [vmem:[%s4363_s1 + $0x128] ss:$16 sps:$4 sm:$0xff]  }
  0x6b   : > { %1195 = vmatprep.subr.bf16.mxu0 %v3066_v28  ;;  %1236 = vmatprep.subr.bf16.mxu1 %v3069_v29  ;;  %v3156_v28 = vld [vmem:[%s4363_s1 + $0x104] ss:$16 sps:$4 sm:$0xff]   ;;  %v3159_v29 = vld [vmem:[%s4363_s1 + $0x10c] ss:$16 sps:$4 sm:$0xff]  }
  0x6d   : > { %822 = vmatmul.mubr.bf16.vlgmr.msra.gmra.mxu0 %v459_v30  ;;  %863 = vmatmul.mubr.bf16.vlgmr.msra.gmra.mxu1 %v459_v30  ;;  %v3154_v30 = vld [vmem:[%s4363_s1 + $0x100] ss:$16 sps:$4 sm:$0xff]  }
  0x6e   : > { %1196 = vmatpush1.bf16.msra.mxu0 %v3064_v31  ;;  %1237 = vmatpush1.bf16.msra.mxu1 %v3067_v32  ;;  %v3157_v31 = vld [vmem:[%s4363_s1 + $0x108] ss:$16 sps:$4 sm:$0xff]   ;;  %v3164_v32 = vld [vmem:[%s4363_s1 + $0x4e4] ss:$16 sps:$4 sm:$0xff]  }
  0x6f   : > { %1197 = vmatprep.subr.bf16.mxu0 %v3072_v33  ;;  %1238 = vmatprep.subr.bf16.mxu1 %v3075_v34  ;;  %v3167_v33 = vld [vmem:[%s4363_s1 + $0x4ec] ss:$16 sps:$4 sm:$0xff]   ;;  %v2638_v34 = vcombine.low %v3643_v63, %v3643_v63  ;;  %v3919_v63 = vld [vmem:[#allocation2] sm:$0xee] }
  0x70   : > { %1227 = vmatprep.mubr.bf16.mxu0 %v2639_v35  ;;  %1268 = vmatprep.mubr.bf16.mxu1 %v2639_v35  ;;  %v3162_v35 = vld [vmem:[%s4363_s1 + $0x4e0] ss:$16 sps:$4 sm:$0xff]  }
  0x72   : > { %1198 = vmatpush1.bf16.msra.mxu0 %v3070_v36  ;;  %1239 = vmatpush1.bf16.msra.mxu1 %v3073_v37  ;;  %v3165_v36 = vld [vmem:[%s4363_s1 + $0x4e8] ss:$16 sps:$4 sm:$0xff]   ;;  %v3170_v37 = vld [vmem:[%s4363_s1 + $0x4c4] ss:$16 sps:$4 sm:$0xff]  }
  0x73   : > { %1199 = vmatprep.subr.bf16.mxu0 %v3078_v38  ;;  %1240 = vmatprep.subr.bf16.mxu1 %v3081_v39  ;;  %v3173_v38 = vld [vmem:[%s4363_s1 + $0x4cc] ss:$16 sps:$4 sm:$0xff]   ;;  %v2769_v39 = vcombine.high %v3919_v63, %v3645_v0 }
  0x74   : > { %v3179_v0 = vld [vmem:[%s4363_s1 + $0x4ac] ss:$16 sps:$4 sm:$0xff]  }
  0x76   : > { %1200 = vmatpush1.bf16.msra.mxu0 %v3076_v40  ;;  %1241 = vmatpush1.bf16.msra.mxu1 %v3079_v41  ;;  %v3168_v40 = vld [vmem:[%s4363_s1 + $0x4c0] ss:$16 sps:$4 sm:$0xff]   ;;  %v3171_v41 = vld [vmem:[%s4363_s1 + $0x4c8] ss:$16 sps:$4 sm:$0xff]  }
  0x77   : > { %1201 = vmatprep.subr.bf16.mxu0 %v3084_v42  ;;  %1242 = vmatprep.subr.bf16.mxu1 %v3087_v43  ;;  %v3176_v42 = vld [vmem:[%s4363_s1 + $0x4a4] ss:$16 sps:$4 sm:$0xff]   ;;  %v1349_v43 = vrot.slane %v2769_v39, 1 }
  0x7a   : > { %1202 = vmatpush1.bf16.msra.mxu0 %v3082_v44  ;;  %1243 = vmatpush1.bf16.msra.mxu1 %v3085_v45  ;;  %v3174_v44 = vld [vmem:[%s4363_s1 + $0x4a0] ss:$16 sps:$4 sm:$0xff]   ;;  %v3177_v45 = vld [vmem:[%s4363_s1 + $0x4a8] ss:$16 sps:$4 sm:$0xff]  }
  0x7b   : > { %1203 = vmatprep.subr.bf16.mxu0 %v3090_v46  ;;  %1244 = vmatprep.subr.bf16.mxu1 %v3093_v47  ;;  %v3182_v46 = vld [vmem:[%s4363_s1 + $0x484] ss:$16 sps:$4 sm:$0xff]   ;;  %v3185_v47 = vld [vmem:[%s4363_s1 + $0x48c] ss:$16 sps:$4 sm:$0xff]  }
  0x7e   : > { %1204 = vmatpush1.bf16.msra.mxu0 %v3088_v48  ;;  %1245 = vmatpush1.bf16.msra.mxu1 %v3091_v49  ;;  %v3180_v48 = vld [vmem:[%s4363_s1 + $0x480] ss:$16 sps:$4 sm:$0xff]   ;;  %v3183_v49 = vld [vmem:[%s4363_s1 + $0x488] ss:$16 sps:$4 sm:$0xff]  }
  0x7f   : > { %1205 = vmatprep.subr.bf16.mxu0 %v3096_v50  ;;  %1246 = vmatprep.subr.bf16.mxu1 %v3099_v51  ;;  %v3188_v50 = vld [vmem:[%s4363_s1 + $0x464] ss:$16 sps:$4 sm:$0xff]   ;;  %v3191_v51 = vld [vmem:[%s4363_s1 + $0x46c] ss:$16 sps:$4 sm:$0xff]  }
  0x82   : > { %1206 = vmatpush1.bf16.msra.mxu0 %v3094_v52  ;;  %1247 = vmatpush1.bf16.msra.mxu1 %v3097_v53  ;;  %v3186_v52 = vld [vmem:[%s4363_s1 + $0x460] ss:$16 sps:$4 sm:$0xff]   ;;  %v3189_v53 = vld [vmem:[%s4363_s1 + $0x468] ss:$16 sps:$4 sm:$0xff]  }
  0x83   : > { %1207 = vmatprep.subr.bf16.mxu0 %v3102_v54  ;;  %1248 = vmatprep.subr.bf16.mxu1 %v3105_v55  ;;  %v3194_v54 = vld [vmem:[%s4363_s1 + $0x444] ss:$16 sps:$4 sm:$0xff]   ;;  %v3197_v55 = vld [vmem:[%s4363_s1 + $0x44c] ss:$16 sps:$4 sm:$0xff]  }
  0x86   : > { %1208 = vmatpush1.bf16.msra.mxu0 %v3100_v56  ;;  %1249 = vmatpush1.bf16.msra.mxu1 %v3103_v57  ;;  %v3192_v56 = vld [vmem:[%s4363_s1 + $0x440] ss:$16 sps:$4 sm:$0xff]   ;;  %v3195_v57 = vld [vmem:[%s4363_s1 + $0x448] ss:$16 sps:$4 sm:$0xff]  }
  0x87   : > { %1209 = vmatprep.subr.bf16.mxu0 %v3108_v58  ;;  %1250 = vmatprep.subr.bf16.mxu1 %v3111_v59  ;;  %v3200_v58 = vld [vmem:[%s4363_s1 + $0x424] ss:$16 sps:$4 sm:$0xff]   ;;  %v3203_v59 = vld [vmem:[%s4363_s1 + $0x42c] ss:$16 sps:$4 sm:$0xff]  }
  0x8a   : > { %1210 = vmatpush1.bf16.msra.mxu0 %v3106_v60  ;;  %1251 = vmatpush1.bf16.msra.mxu1 %v3109_v61  ;;  %v3198_v60 = vld [vmem:[%s4363_s1 + $0x420] ss:$16 sps:$4 sm:$0xff]   ;;  %v3201_v61 = vld [vmem:[%s4363_s1 + $0x428] ss:$16 sps:$4 sm:$0xff]  }
  0x8b   : > { %1211 = vmatprep.subr.bf16.mxu0 %v3114_v62  ;;  %1252 = vmatprep.subr.bf16.mxu1 %v3117_v1  ;;  %v3206_v62 = vld [vmem:[%s4363_s1 + $0x404] ss:$16 sps:$4 sm:$0xff]   ;;  %v3209_v1 = vld [vmem:[%s4363_s1 + $0x40c] ss:$16 sps:$4 sm:$0xff]  }
  0x8e   : > { %1212 = vmatpush2.bf16.msra.mxu0 %v3112_v2  ;;  %1253 = vmatpush2.bf16.msra.mxu1 %v3115_v3  ;;  %v3204_v2 = vld [vmem:[%s4363_s1 + $0x400] ss:$16 sps:$4 sm:$0xff]   ;;  %v3207_v3 = vld [vmem:[%s4363_s1 + $0x408] ss:$16 sps:$4 sm:$0xff]  }
  0x8f   : > { %1213 = vmatprep.subr.bf16.mxu0 %v3120_v4  ;;  %1254 = vmatprep.subr.bf16.mxu1 %v3123_v5  ;;  %v3212_v4 = vld [vmem:[%s4363_s1 + $0x5e4] ss:$16 sps:$4 sm:$0xff]   ;;  %v3215_v5 = vld [vmem:[%s4363_s1 + $0x5ec] ss:$16 sps:$4 sm:$0xff]  }
  0x92   : > { %1214 = vmatpush2.bf16.msra.mxu0 %v3118_v6  ;;  %1255 = vmatpush2.bf16.msra.mxu1 %v3121_v7  ;;  %v3210_v6 = vld [vmem:[%s4363_s1 + $0x5e0] ss:$16 sps:$4 sm:$0xff]   ;;  %v3213_v7 = vld [vmem:[%s4363_s1 + $0x5e8] ss:$16 sps:$4 sm:$0xff]  }
  0x93   : > { %1215 = vmatprep.subr.bf16.mxu0 %v3126_v8  ;;  %1256 = vmatprep.subr.bf16.mxu1 %v3129_v9  ;;  %v3218_v8 = vld [vmem:[%s4363_s1 + $0x5c4] ss:$16 sps:$4 sm:$0xff]   ;;  %v3221_v9 = vld [vmem:[%s4363_s1 + $0x5cc] ss:$16 sps:$4 sm:$0xff]  }
  0x96   : > { %1216 = vmatpush2.bf16.msra.mxu0 %v3124_v10  ;;  %1257 = vmatpush2.bf16.msra.mxu1 %v3127_v11  ;;  %v3216_v10 = vld [vmem:[%s4363_s1 + $0x5c0] ss:$16 sps:$4 sm:$0xff]   ;;  %v3219_v11 = vld [vmem:[%s4363_s1 + $0x5c8] ss:$16 sps:$4 sm:$0xff]  }
  0x97   : > { %1217 = vmatprep.subr.bf16.mxu0 %v3132_v12  ;;  %1258 = vmatprep.subr.bf16.mxu1 %v3135_v13  ;;  %v3224_v12 = vld [vmem:[%s4363_s1 + $0x5a4] ss:$16 sps:$4 sm:$0xff]   ;;  %v3227_v13 = vld [vmem:[%s4363_s1 + $0x5ac] ss:$16 sps:$4 sm:$0xff]  }
  0x9a   : > { %1218 = vmatpush2.bf16.msra.mxu0 %v3130_v14  ;;  %1259 = vmatpush2.bf16.msra.mxu1 %v3133_v15  ;;  %v3222_v14 = vld [vmem:[%s4363_s1 + $0x5a0] ss:$16 sps:$4 sm:$0xff]   ;;  %v3225_v15 = vld [vmem:[%s4363_s1 + $0x5a8] ss:$16 sps:$4 sm:$0xff]  }
  0x9b   : > { %1219 = vmatprep.subr.bf16.mxu0 %v3138_v16  ;;  %1260 = vmatprep.subr.bf16.mxu1 %v3141_v17  ;;  %v3230_v16 = vld [vmem:[%s4363_s1 + $0x584] ss:$16 sps:$4 sm:$0xff]   ;;  %v3233_v17 = vld [vmem:[%s4363_s1 + $0x58c] ss:$16 sps:$4 sm:$0xff]  }
  0x9e   : > { %1220 = vmatpush2.bf16.msra.mxu0 %v3136_v18  ;;  %1261 = vmatpush2.bf16.msra.mxu1 %v3139_v19  ;;  %v3228_v18 = vld [vmem:[%s4363_s1 + $0x580] ss:$16 sps:$4 sm:$0xff]   ;;  %v3231_v19 = vld [vmem:[%s4363_s1 + $0x588] ss:$16 sps:$4 sm:$0xff]  }
  0x9f   : > { %1221 = vmatprep.subr.bf16.mxu0 %v3144_v20  ;;  %1262 = vmatprep.subr.bf16.mxu1 %v3147_v21  ;;  %v3236_v20 = vld [vmem:[%s4363_s1 + $0x564] ss:$16 sps:$4 sm:$0xff]   ;;  %v3239_v21 = vld [vmem:[%s4363_s1 + $0x56c] ss:$16 sps:$4 sm:$0xff]  }
  0xa2   : > { %1222 = vmatpush2.bf16.msra.mxu0 %v3142_v22  ;;  %1263 = vmatpush2.bf16.msra.mxu1 %v3145_v23  ;;  %v1785_v22 = vld [vmem:[#allocation3 + $0x10] sm:$0xff]  ;;  %v4055_v23 = vld [vmem:[#allocation4] sm:$0xff] }
  0xa3   : > { %1223 = vmatprep.subr.bf16.mxu0 %v3150_v24  ;;  %1264 = vmatprep.subr.bf16.mxu1 %v3153_v25  ;;  %v1787_v24 = vld [vmem:[#allocation3 + $0x18] sm:$0xff]  ;;  %v1793_v25 = vsub.f32 0.0, %v1785_v22 }
  0xa6   : > { %1224 = vmatpush2.bf16.msra.mxu0 %v3148_v26  ;;  %1265 = vmatpush2.bf16.msra.mxu1 %v3151_v27  ;;  %v4057_v26 = vld [vmem:[#allocation4 + $0x18] sm:$0xff]  ;;  %v1795_v27 = vsub.f32 0.0, %v1787_v24 }
  0xa7   : > { %1225 = vmatprep.subr.bf16.mxu0 %v3156_v28  ;;  %1266 = vmatprep.subr.bf16.mxu1 %v3159_v29  ;;  %v1784_v28 = vld [vmem:[#allocation3 + $0x8] sm:$0xff]  ;;  %v4059_v29 = vld [vmem:[#allocation4 + $0x10] sm:$0xff] }
  0xaa   : > { %1226 = vmatpush2.bf16.msra.mxu0 %v3154_v30  ;;  %1267 = vmatpush2.bf16.msra.mxu1 %v3157_v31  ;;  %v1792_v30 = vsub.f32 0.0, %v1784_v28  ;;  %v1786_v31 = vld [vmem:[#allocation3] sm:$0xff] }
  0xab   : > { %1672 = vmatprep.subr.bf16.mxu0 %v3164_v32  ;;  %1713 = vmatprep.subr.bf16.mxu1 %v3167_v33  ;;  %v4061_v32 = vld [vmem:[#allocation4 + $0x8] sm:$0xff]  ;;  %v1797_v33 = vadd.f32 %v1793_v25, %v4055_v23 }
  0xac   : > { %v1796_v39 = vadd.f32 %v1792_v30, %v4059_v29  ;;  %v3268_v30 = vld [vmem:[%s4365_s3 + $0x64] ss:$8 sps:$4 sm:$0xff]  }
  0xad   : > { %1228 = vmatmul.mubr.bf16.vlgmr.msra.gmra.mxu0 %v2638_v34  ;;  %1269 = vmatmul.mubr.bf16.vlgmr.msra.gmra.mxu1 %v2638_v34  ;;  %v1799_v34 = vadd.f32 %v1795_v27, %v4057_v26  ;;  %v3260_v27 = vld [vmem:[%s4365_s3 + $0x70] ss:$8 sps:$4 sm:$0xff]  }
  0xae   : > { %1673 = vmatpush1.bf16.msra.mxu0 %v3162_v35  ;;  %1714 = vmatpush1.bf16.msra.mxu1 %v3165_v36  ;;  %v1794_v35 = vsub.f32 0.0, %v1786_v31  ;;  %v3234_v36 = vld [vmem:[%s4363_s1 + $0x560] ss:$16 sps:$4 sm:$0xff]  }
  0xaf   : > { %1674 = vmatprep.subr.bf16.mxu0 %v3170_v37  ;;  %1715 = vmatprep.subr.bf16.mxu1 %v3173_v38  ;;  %v3237_v37 = vld [vmem:[%s4363_s1 + $0x568] ss:$16 sps:$4 sm:$0xff]   ;;  %v3242_v38 = vld [vmem:[%s4363_s1 + $0x544] ss:$16 sps:$4 sm:$0xff]  }
  0xb0   : > { %1704 = vmatprep.mubr.bf16.mxu0 %v1349_v43  ;;  %1745 = vmatprep.mubr.bf16.mxu1 %v1349_v43  ;;  %v1798_v43 = vadd.f32 %v1794_v35, %v4061_v32  ;;  %v3269_v35 = vld [vmem:[%s4365_s3 + $0x160] ss:$8 sps:$4 sm:$0xff]  }
  0xb2   : > { %1675 = vmatpush1.bf16.msra.mxu0 %v3168_v40  ;;  %1716 = vmatpush1.bf16.msra.mxu1 %v3171_v41  ;;  %v3245_v40 = vld [vmem:[%s4363_s1 + $0x54c] ss:$16 sps:$4 sm:$0xff]   ;;  %v1801_v41 = vmul.f32 0.1, %v1797_v33 }
  0xb3   : > { %1676 = vmatprep.subr.bf16.mxu0 %v3176_v42  ;;  %1717 = vmatprep.subr.bf16.mxu1 %v3179_v0  ;;  %v1803_v42 = vmul.f32 0.1, %v1799_v34  ;;  %v1800_v0 = vmul.f32 0.1, %v1796_v39  ;;  %v3266_v34 = vld [vmem:[%s4365_s3 + $0x60] ss:$8 sps:$4 sm:$0xff]  }
  0xb4   : > { %v3272_v39 = vld [vmem:[%s4365_s3 + $0x50] ss:$8 sps:$4 sm:$0xff]  }
  0xb6   : > { %1677 = vmatpush1.bf16.msra.mxu0 %v3174_v44  ;;  %1718 = vmatpush1.bf16.msra.mxu1 %v3177_v45  ;;  %v1805_v44 = vadd.f32 %v1801_v41, %v1785_v22  ;;  %v1807_v45 = vadd.f32 %v1803_v42, %v1787_v24  ;;  %v3280_v41 = vld [vmem:[%s4365_s3 + $0x44] ss:$8 sps:$4 sm:$0xff]  }
  0xb7   : > { %1678 = vmatprep.subr.bf16.mxu0 %v3182_v46  ;;  %1719 = vmatprep.subr.bf16.mxu1 %v3185_v47  ;;  %v1802_v46 = vmul.f32 0.1, %v1798_v43  ;;  %v3240_v47 = vld [vmem:[%s4363_s1 + $0x540] ss:$16 sps:$4 sm:$0xff]   ;;  %v3283_v42 = vld [vmem:[%s4365_s3 + $0x144] ss:$8 sps:$4 sm:$0xff]  }
  0xb8   : > { %v3278_v43 = vld [vmem:[%s4365_s3 + $0x40] ss:$8 sps:$4 sm:$0xff]  }
  0xba   : > { %1679 = vmatpush1.bf16.msra.mxu0 %v3180_v48  ;;  %1720 = vmatpush1.bf16.msra.mxu1 %v3183_v49  ;;  %v3243_v48 = vld [vmem:[%s4363_s1 + $0x548] ss:$16 sps:$4 sm:$0xff]   ;;  %v3248_v49 = vld [vmem:[%s4363_s1 + $0x524] ss:$16 sps:$4 sm:$0xff]  }
  0xbb   : > { %1680 = vmatprep.subr.bf16.mxu0 %v3188_v50  ;;  %1721 = vmatprep.subr.bf16.mxu1 %v3191_v51  ;;  %v1804_v50 = vadd.f32 %v1800_v0, %v1784_v28  ;;  %v3251_v51 = vld [vmem:[%s4363_s1 + $0x52c] ss:$16 sps:$4 sm:$0xff]   ;;  %v3263_v28 = vld [vmem:[%s4365_s3 + $0x170] ss:$8 sps:$4 sm:$0xff]   ;;  %v3281_v0 = vld [vmem:[%s4365_s3 + $0x140] ss:$8 sps:$4 sm:$0xff]  }
  0xbe   : > { %1681 = vmatpush1.bf16.msra.mxu0 %v3186_v52  ;;  %1722 = vmatpush1.bf16.msra.mxu1 %v3189_v53  ;;  %v2835_v52 = vadd.f32 -1.0, %v1805_v44  ;;  %v2837_v53 = vadd.f32 -1.0, %v1807_v45 }
  0xbf   : > { %1682 = vmatprep.subr.bf16.mxu0 %v3194_v54  ;;  %1723 = vmatprep.subr.bf16.mxu1 %v3197_v55  ;;  %v1806_v54 = vadd.f32 %v1802_v46, %v1786_v31  ;;  %v3246_v55 = vld [vmem:[%s4363_s1 + $0x520] ss:$16 sps:$4 sm:$0xff]   ;;  %v3271_v31 = vld [vmem:[%s4365_s3 + $0x164] ss:$8 sps:$4 sm:$0xff]  }
  0xc0   : > { %vm1817_vm0 = vcmp.gt.f32.partialorder %v2835_v52, 0.0  ;;  %vm1819_vm2 = vcmp.gt.f32.partialorder %v2837_v53, 0.0  ;;  %v3284_v46 = vld [vmem:[%s4365_s3 + $0x30] ss:$8 sps:$4 sm:$0xff]   ;;  %v3298_v52 = vld [vmem:[%s4365_s3 + $0x14] ss:$8 sps:$4 sm:$0xff]  }
  0xc1   : > { %vm2906_vm5 = vmpackc.low %vm1817_vm0, %vm1817_vm0  ;;  %v3301_v53 = vld [vmem:[%s4365_s3 + $0x114] ss:$8 sps:$4 sm:$0xff]  }
  0xc2   : > { %1683 = vmatpush1.bf16.msra.mxu0 %v3192_v56  ;;  %1724 = vmatpush1.bf16.msra.mxu1 %v3195_v57  ;;  %v4094_v56 = vadd.f32 -1.0, %v1804_v50  ;;  %v3249_v57 = vld [vmem:[%s4363_s1 + $0x528] ss:$16 sps:$4 sm:$0xff]   ;;  %vm2910_vm6 = vmpackc.low %vm1819_vm2, %vm1819_vm2 }
  0xc3   : > { %1684 = vmatprep.subr.bf16.mxu0 %v3200_v58  ;;  %1725 = vmatprep.subr.bf16.mxu1 %v3203_v59  ;;  %v4099_v58 = vadd.f32 -1.0, %v1806_v54  ;;  %v3254_v59 = vld [vmem:[%s4363_s1 + $0x504] ss:$16 sps:$4 sm:$0xff]  }
  0xc4   : > { %vm1816_vm3 = vcmp.gt.f32.partialorder %v4094_v56, 0.0 }
  0xc5   : > { %vm1818_vm4 = vcmp.gt.f32.partialorder %v4099_v58, 0.0  ;;  %vm2908_vm8 = vmpackc.low %vm1816_vm3, %vm1816_vm3 }
  0xc6   : > { %1685 = vmatpush1.bf16.msra.mxu0 %v3198_v60  ;;  %1726 = vmatpush1.bf16.msra.mxu1 %v3201_v61  ;;  %v3398_v60 = vmov 0.0   ;;  %vm2912_vm9 = vmpackc.low %vm1818_vm4, %vm1818_vm4 }
  0xc7   : > { %1686 = vmatprep.subr.bf16.mxu0 %v3206_v62  ;;  %1727 = vmatprep.subr.bf16.mxu1 %v3209_v1  ;;  %v2839_v61 = vsel %vm1817_vm0, 1.0, %v3398_v60  ;;  %v2841_v62 = vsel %vm1819_vm2, 1.0, %v3398_v60  ;;  %v3257_v1 = vld [vmem:[%s4363_s1 + $0x50c] ss:$16 sps:$4 sm:$0xff]  }
  0xca   : > { %1687 = vmatpush1.bf16.msra.mxu0 %v3204_v2  ;;  %1728 = vmatpush1.bf16.msra.mxu1 %v3207_v3  ;;  %v1829_v2 = vsub.f32 1.0, %v2839_v61  ;;  %v1837_v3 = vmul.f32 0.0, %v2839_v61  ;;  %v3302_v61 = vld [vmem:[%s4365_s3] ss:$8 sps:$4 sm:$0xff]  }
  0xcb   : > { %1688 = vmatprep.subr.bf16.mxu0 %v3212_v4  ;;  %1729 = vmatprep.subr.bf16.mxu1 %v3215_v5  ;;  %v1831_v4 = vsub.f32 1.0, %v2841_v62  ;;  %v1839_v5 = vmul.f32 0.0, %v2841_v62  ;;  %v3305_v62 = vld [vmem:[%s4365_s3 + $0x100] ss:$8 sps:$4 sm:$0xff]  }
  0xce   : > { %1689 = vmatpush2.bf16.msra.mxu0 %v3210_v6  ;;  %1730 = vmatpush2.bf16.msra.mxu1 %v3213_v7  ;;  %v3356_v6 = vld [vmem:[#allocation2 + $0x8] sm:$0x11] }
  0xcf   : > { %1690 = vmatprep.subr.bf16.mxu0 %v3218_v8  ;;  %1731 = vmatprep.subr.bf16.mxu1 %v3221_v9  ;;  %v2768_v7 = vcombine.low %v3919_v63, %v3356_v6  ;;  %v2838_v8 = vsel %vm1816_vm3, 1.0, %v3398_v60  ;;  %v1833_v9 = vmul.f32 %v1829_v2, %v1805_v44  ;;  %v3255_v63 = vld [vmem:[%s4363_s1 + $0x508] ss:$16 sps:$4 sm:$0xff]   ;;  %v3286_v44 = vld [vmem:[%s4365_s3 + $0x34] ss:$8 sps:$4 sm:$0xff]  }
  0xd0   : > { %v3313_v2 = vld [vmem:[%s4365_s3 + $0x1f4] ss:$8 sps:$4 sm:$0xff]   ;;  %v3319_v6 = vld [vmem:[%s4365_s3 + $0x1e4] ss:$8 sps:$4 sm:$0xff]  }
  0xd1   : > { %v1348_v22 = vrot.slane %v2768_v7, 1  ;;  %v3314_v7 = vld [vmem:[%s4365_s3 + $0xe0] ss:$8 sps:$4 sm:$0xff]  }
  0xd2   : > { %1691 = vmatpush2.bf16.msra.mxu0 %v3216_v10  ;;  %1732 = vmatpush2.bf16.msra.mxu1 %v3219_v11  ;;  %v1835_v10 = vmul.f32 %v1831_v4, %v1807_v45  ;;  %v1828_v11 = vsub.f32 1.0, %v2838_v8  ;;  %v3289_v45 = vld [vmem:[%s4365_s3 + $0x134] ss:$8 sps:$4 sm:$0xff]   ;;  %v3311_v4 = vld [vmem:[%s4365_s3 + $0x1f0] ss:$8 sps:$4 sm:$0xff]  }
  0xd3   : > { %1692 = vmatprep.subr.bf16.mxu0 %v3224_v12  ;;  %1733 = vmatprep.subr.bf16.mxu1 %v3227_v13  ;;  %v1836_v12 = vmul.f32 0.0, %v2838_v8  ;;  %v3252_v13 = vld [vmem:[%s4363_s1 + $0x500] ss:$16 sps:$4 sm:$0xff]  }
  0xd4   : > { %v3317_v8 = vld [vmem:[%s4365_s3 + $0x1e0] ss:$8 sps:$4 sm:$0xff]  }
  0xd6   : > { %1693 = vmatpush2.bf16.msra.mxu0 %v3222_v14  ;;  %1734 = vmatpush2.bf16.msra.mxu1 %v3225_v15  ;;  %v2840_v14 = vsel %vm1818_vm4, 1.0, %v3398_v60  ;;  %v3262_v15 = vld [vmem:[%s4365_s3 + $0x74] ss:$8 sps:$4 sm:$0xff]  }
  0xd7   : > { %1694 = vmatprep.subr.bf16.mxu0 %v3230_v16  ;;  %1735 = vmatprep.subr.bf16.mxu1 %v3233_v17  ;;  %v3265_v16 = vld [vmem:[%s4365_s3 + $0x174] ss:$8 sps:$4 sm:$0xff]   ;;  %v1841_v17 = vadd.f32 %v1837_v3, %v1833_v9  ;;  %v3308_v3 = vld [vmem:[%s4365_s3 + $0xf0] ss:$8 sps:$4 sm:$0xff]  }
  0xd8   : > { %v3322_v9 = vld [vmem:[%s4365_s3 + $0xd4] ss:$8 sps:$4 sm:$0xff]  }
  0xd9   : > { %1845 = vst [vmem:[#allocation3 + $0x10] sm:$0xff] %v1841_v17  ;;  %v3337_v17 = vld [vmem:[%s4365_s3 + $0x1b4] ss:$8 sps:$4 sm:$0xff]  }
  0xda   : > { %1695 = vmatpush2.bf16.msra.mxu0 %v3228_v18  ;;  %1736 = vmatpush2.bf16.msra.mxu1 %v3231_v19  ;;  %v1843_v18 = vadd.f32 %v1839_v5, %v1835_v10  ;;  %v1832_v19 = vmul.f32 %v1828_v11, %v1804_v50  ;;  %v3290_v50 = vld [vmem:[%s4365_s3 + $0x20] ss:$8 sps:$4 sm:$0xff]   ;;  %v3316_v5 = vld [vmem:[%s4365_s3 + $0xe4] ss:$8 sps:$4 sm:$0xff]   ;;  %v3325_v10 = vld [vmem:[%s4365_s3 + $0x1d4] ss:$8 sps:$4 sm:$0xff]  }
  0xdb   : > { %1696 = vmatprep.subr.bf16.mxu0 %v3236_v20  ;;  %1737 = vmatprep.subr.bf16.mxu1 %v3239_v21  ;;  %v1830_v20 = vsub.f32 1.0, %v2840_v14  ;;  %v1838_v21 = vmul.f32 0.0, %v2840_v14  ;;  %v3320_v11 = vld [vmem:[%s4365_s3 + $0xd0] ss:$8 sps:$4 sm:$0xff]   ;;  %v3326_v14 = vld [vmem:[%s4365_s3 + $0xc0] ss:$8 sps:$4 sm:$0xff]  }
  0xdc   : > { %1847 = vst [vmem:[#allocation3 + $0x18] sm:$0xff] %v1843_v18  ;;  %v1840_v24 = vadd.f32 %v1836_v12, %v1832_v19  ;;  %v3323_v12 = vld [vmem:[%s4365_s3 + $0x1d0] ss:$8 sps:$4 sm:$0xff]  }
  0xdd   : > { %v1834_v25 = vmul.f32 %v1830_v20, %v1806_v54  ;;  %v3296_v54 = vld [vmem:[%s4365_s3 + $0x10] ss:$8 sps:$4 sm:$0xff]   ;;  %v3340_v20 = vld [vmem:[%s4365_s3 + $0xa4] ss:$8 sps:$4 sm:$0xff]  }
  0xde   : > { %1697 = vmatpush2.bf16.msra.mxu0 %v3234_v36  ;;  %1738 = vmatpush2.bf16.msra.mxu1 %v3237_v37  ;;  %1844 = vst [vmem:[#allocation3 + $0x8] sm:$0xff] %v1840_v24  ;;  %v3274_v36 = vld [vmem:[%s4365_s3 + $0x54] ss:$8 sps:$4 sm:$0xff]   ;;  %v3332_v18 = vld [vmem:[%s4365_s3 + $0xb0] ss:$8 sps:$4 sm:$0xff]  }
  0xdf   : > { %1698 = vmatprep.subr.bf16.mxu0 %v3242_v38  ;;  %1739 = vmatprep.subr.bf16.mxu1 %v3245_v40  ;;  %v1842_v33 = vadd.f32 %v1838_v21, %v1834_v25  ;;  %v3277_v37 = vld [vmem:[%s4365_s3 + $0x154] ss:$8 sps:$4 sm:$0xff]   ;;  %v3399_v38 = vmov 1.0|1.0   ;;  %v3275_v40 = vld [vmem:[%s4365_s3 + $0x150] ss:$8 sps:$4 sm:$0xff]  }
  0xe0   : > { %v3335_v19 = vld [vmem:[%s4365_s3 + $0x1b0] ss:$8 sps:$4 sm:$0xff]   ;;  %v3343_v21 = vld [vmem:[%s4365_s3 + $0x1a4] ss:$8 sps:$4 sm:$0xff]   ;;  %v3341_v24 = vld [vmem:[%s4365_s3 + $0x1a0] ss:$8 sps:$4 sm:$0xff]  }
  0xe1   : > { %1846 = vst [vmem:[#allocation3] sm:$0xff] %v1842_v33  ;;  %v3346_v25 = vld [vmem:[%s4365_s3 + $0x94] ss:$8 sps:$4 sm:$0xff]   ;;  %v3355_v33 = vld [vmem:[%s4365_s3 + $0x184] ss:$8 sps:$4 sm:$0xff]  }
  0xe2   : > { %1699 = vmatpush2.bf16.msra.mxu0 %v3240_v47  ;;  %1740 = vmatpush2.bf16.msra.mxu1 %v3243_v48  ;;  %v3287_v47 = vld [vmem:[%s4365_s3 + $0x130] ss:$8 sps:$4 sm:$0xff]   ;;  %v3292_v48 = vld [vmem:[%s4365_s3 + $0x24] ss:$8 sps:$4 sm:$0xff]  }
  0xe3   : > { %1700 = vmatprep.subr.bf16.mxu0 %v3248_v49  ;;  %1741 = vmatprep.subr.bf16.mxu1 %v3251_v51  ;;  %v3295_v49 = vld [vmem:[%s4365_s3 + $0x124] ss:$8 sps:$4 sm:$0xff]   ;;  %v3293_v51 = vld [vmem:[%s4365_s3 + $0x120] ss:$8 sps:$4 sm:$0xff]  }
  0xe6   : > { %1701 = vmatpush2.bf16.msra.mxu0 %v3246_v55  ;;  %1742 = vmatpush2.bf16.msra.mxu1 %v3249_v57  ;;  %v3299_v55 = vld [vmem:[%s4365_s3 + $0x110] ss:$8 sps:$4 sm:$0xff]   ;;  %v3304_v57 = vld [vmem:[%s4365_s3 + $0x4] ss:$8 sps:$4 sm:$0xff]  }
  0xe7   : > { %1702 = vmatprep.subr.bf16.mxu0 %v3254_v59  ;;  %1743 = vmatprep.subr.bf16.mxu1 %v3257_v1  ;;  %v3307_v59 = vld [vmem:[%s4365_s3 + $0x104] ss:$8 sps:$4 sm:$0xff]   ;;  %v3310_v1 = vld [vmem:[%s4365_s3 + $0xf4] ss:$8 sps:$4 sm:$0xff]  }
  0xea   : > { %1703 = vmatpush2.bf16.msra.mxu0 %v3252_v13  ;;  %1744 = vmatpush2.bf16.msra.mxu1 %v3255_v63  ;;  %v3328_v13 = vld [vmem:[%s4365_s3 + $0xc4] ss:$8 sps:$4 sm:$0xff]  }
  0xeb   : > { %2244 = vmatprep.subr.bf16.mxu0 %v3262_v15  ;;  %2285 = vmatprep.subr.bf16.mxu1 %v3265_v16  ;;  %v3331_v63 = vld [vmem:[%s4365_s3 + $0x1c4] ss:$8 sps:$4 sm:$0xff]   ;;  %v3329_v15 = vld [vmem:[%s4365_s3 + $0x1c0] ss:$8 sps:$4 sm:$0xff]   ;;  %v3334_v16 = vld [vmem:[%s4365_s3 + $0xb4] ss:$8 sps:$4 sm:$0xff]  }
  0xed   : > { %1705 = vmatmul.mubr.bf16.vlgmr.msra.gmra.mxu0 %v1348_v22  ;;  %1746 = vmatmul.mubr.bf16.vlgmr.msra.gmra.mxu1 %v1348_v22  ;;  %v3338_v22 = vld [vmem:[%s4365_s3 + $0xa0] ss:$8 sps:$4 sm:$0xff]  }
  0xee   : > { %2245 = vmatpush1.bf16.msra.mxu0 %v3260_v27  ;;  %2286 = vmatpush1.bf16.msra.mxu1 %v3263_v28  ;;  %v3349_v27 = vld [vmem:[%s4365_s3 + $0x194] ss:$8 sps:$4 sm:$0xff]   ;;  %v3344_v28 = vld [vmem:[%s4365_s3 + $0x90] ss:$8 sps:$4 sm:$0xff]  }
  0xef   : > { %2246 = vmatprep.subr.bf16.mxu0 %v3268_v30  ;;  %2287 = vmatprep.subr.bf16.mxu1 %v3271_v31  ;;  %v3347_v30 = vld [vmem:[%s4365_s3 + $0x190] ss:$8 sps:$4 sm:$0xff]   ;;  %v3352_v31 = vld [vmem:[%s4365_s3 + $0x84] ss:$8 sps:$4 sm:$0xff]  }
  0xf0   : > { %2907 = vmatprep.mubr.msk.bf16.mxu0 %vm2906_vm5, %v3399_v38  ;;  %2911 = vmatprep.mubr.msk.bf16.mxu1 %vm2910_vm6, %v3399_v38 }
  0xf2   : > { %2247 = vmatpush1.bf16.msra.mxu0 %v3266_v34  ;;  %2288 = vmatpush1.bf16.msra.mxu1 %v3269_v35  ;;  %v3350_v34 = vld [vmem:[%s4365_s3 + $0x80] ss:$8 sps:$4 sm:$0xff]  }
  0xf3   : > { %2248 = vmatprep.subr.bf16.mxu0 %v3274_v36  ;;  %2289 = vmatprep.subr.bf16.mxu1 %v3277_v37  ;;  %v3353_v35 = vld [vmem:[%s4365_s3 + $0x180] ss:$8 sps:$4 sm:$0xff]  }
  0xf6   : > { %2249 = vmatpush1.bf16.msra.mxu0 %v3272_v39  ;;  %2290 = vmatpush1.bf16.msra.mxu1 %v3275_v40 }
  0xf7   : > { %2250 = vmatprep.subr.bf16.mxu0 %v3280_v41  ;;  %2291 = vmatprep.subr.bf16.mxu1 %v3283_v42 }
  0xfa   : > { %2251 = vmatpush1.bf16.msra.mxu0 %v3278_v43  ;;  %2292 = vmatpush1.bf16.msra.mxu1 %v3281_v0 }
  0xfb   : > { %2252 = vmatprep.subr.bf16.mxu0 %v3286_v44  ;;  %2293 = vmatprep.subr.bf16.mxu1 %v3289_v45 }
  0xfe   : > { %2253 = vmatpush1.bf16.msra.mxu0 %v3284_v46  ;;  %2294 = vmatpush1.bf16.msra.mxu1 %v3287_v47 }
  0xff   : > { %2254 = vmatprep.subr.bf16.mxu0 %v3292_v48  ;;  %2295 = vmatprep.subr.bf16.mxu1 %v3295_v49 }
 0x102   : > { %2255 = vmatpush1.bf16.msra.mxu0 %v3290_v50  ;;  %2296 = vmatpush1.bf16.msra.mxu1 %v3293_v51  ;;  %v3400_v50 = vmov 0   ;;  %v1760_v51 = vlaneseq }
 0x103   : > { %2256 = vmatprep.subr.bf16.mxu0 %v3298_v52  ;;  %2297 = vmatprep.subr.bf16.mxu1 %v3301_v53 }
 0x104   : > { %v1761_v52 = vshrl.u32 %v1760_v51, 7 }
 0x106   : > { %2257 = vmatpush1.bf16.msra.mxu0 %v3296_v54  ;;  %2298 = vmatpush1.bf16.msra.mxu1 %v3299_v55  ;;  %v1762_v53 = vsub.s32 0, %v1761_v52  ;;  %v1758_v54 = vld [vmem:[%s4364_s2] sm:$0xf]  ;;  %v1766_v55 = vsub.s32 1, %v1761_v52 }
 0x107   : > { %2258 = vmatprep.subr.bf16.mxu0 %v3304_v57  ;;  %2299 = vmatprep.subr.bf16.mxu1 %v3307_v59  ;;  %v1774_v57 = vsub.s32 3, %v1761_v52 }
 0x10a   : > { %2259 = vmatpush1.bf16.msra.mxu0 %v3302_v61  ;;  %2300 = vmatpush1.bf16.msra.mxu1 %v3305_v62  ;;  %v1763_v62 = vrot.slane %v1758_v54, %v1762_v53 }
 0x10b   : > { %2260 = vmatprep.subr.bf16.mxu0 %v3310_v1  ;;  %2301 = vmatprep.subr.bf16.mxu1 %v3313_v2 }
 0x10e   : > { %2261 = vmatpush2.bf16.msra.mxu0 %v3308_v3  ;;  %2302 = vmatpush2.bf16.msra.mxu1 %v3311_v4  ;;  %v1808_v3 = vmul.f32 0.8, %v4059_v29 }
 0x10f   : > { %2262 = vmatprep.subr.bf16.mxu0 %v3316_v5  ;;  %2303 = vmatprep.subr.bf16.mxu1 %v3319_v6  ;;  %v1810_v5 = vmul.f32 0.8, %v4061_v32  ;;  %v1767_v6 = vrot.slane %v1758_v54, %v1766_v55 }
 0x112   : > { %2263 = vmatpush2.bf16.msra.mxu0 %v3314_v7  ;;  %2304 = vmatpush2.bf16.msra.mxu1 %v3317_v8  ;;  %v1775_v7 = vrot.slane %v1758_v54, %v1774_v57 }
 0x113   : > { %2264 = vmatprep.subr.bf16.mxu0 %v3322_v9  ;;  %2305 = vmatprep.subr.bf16.mxu1 %v3325_v10 }
 0x116   : > { %2265 = vmatpush2.bf16.msra.mxu0 %v3320_v11  ;;  %2306 = vmatpush2.bf16.msra.mxu1 %v3323_v12 }
 0x117   : > { %2266 = vmatprep.subr.bf16.mxu0 %v3328_v13  ;;  %2307 = vmatprep.subr.bf16.mxu1 %v3331_v63  ;;  %v1809_v13 = vmul.f32 0.8, %v4055_v23 }
 0x11a   : > { %2267 = vmatpush2.bf16.msra.mxu0 %v3326_v14  ;;  %2308 = vmatpush2.bf16.msra.mxu1 %v3329_v15  ;;  %v1811_v14 = vmul.f32 0.8, %v4057_v26 }
 0x11b   : > { %2268 = vmatprep.subr.bf16.mxu0 %v3334_v16  ;;  %2309 = vmatprep.subr.bf16.mxu1 %v3337_v17 }
 0x11e   : > { %2269 = vmatpush2.bf16.msra.mxu0 %v3332_v18  ;;  %2310 = vmatpush2.bf16.msra.mxu1 %v3335_v19 }
 0x11f   : > { %2270 = vmatprep.subr.bf16.mxu0 %v3340_v20  ;;  %2311 = vmatprep.subr.bf16.mxu1 %v3343_v21 }
 0x122   : > { %2271 = vmatpush2.bf16.msra.mxu0 %v3338_v22  ;;  %2312 = vmatpush2.bf16.msra.mxu1 %v3341_v24 }
 0x123   : > { %2272 = vmatprep.subr.bf16.mxu0 %v3346_v25  ;;  %2313 = vmatprep.subr.bf16.mxu1 %v3349_v27 }
 0x126   : > { %2273 = vmatpush2.bf16.msra.mxu0 %v3344_v28  ;;  %2314 = vmatpush2.bf16.msra.mxu1 %v3347_v30 }
 0x127   : > { %2274 = vmatprep.subr.bf16.mxu0 %v3352_v31  ;;  %2315 = vmatprep.subr.bf16.mxu1 %v3355_v33 }
 0x12a   : > { %2275 = vmatpush2.bf16.msra.mxu0 %v3350_v34  ;;  %2316 = vmatpush2.bf16.msra.mxu1 %v3353_v35 }
 0x12d   : > { %v823_v36 = vpop.f32.mrf.mxu0  ;;  %v864_v37 = vpop.f32.mrf.mxu1  ;;  %2909 = vmatmul.mubr.msk.bf16.vlgmr.msra.gmra.mxu0 %vm2908_vm8, %v3399_v38  ;;  %2913 = vmatmul.mubr.msk.bf16.vlgmr.msra.gmra.mxu1 %vm2912_vm9, %v3399_v38  ;;  %v1770_v38 = vsub.s32 2, %v1761_v52 }
 0x12e   : > { %2372 = vmatprep.mubr.bf16.mxu0 %v3400_v50 }
 0x12f   : > { %v825_v39 = vpop.f32.mrf.mxu0  ;;  %v866_v40 = vpop.f32.mrf.mxu1  ;;  %v1771_v1 = vrot.slane %v1758_v54, %v1770_v38 }
 0x131   : > { %v827_v41 = vpop.f32.mrf.mxu0  ;;  %v868_v42 = vpop.f32.mrf.mxu1 }
 0x133   : > { %v828_v43 = vpop.f32.mrf.mxu0  ;;  %v869_v56 = vpop.f32.mrf.mxu1 }
 0x134   : > { %v2326_v43 = vld [vmem:[%s4366_s4] sm:$0x3] }
 0x16d   : > { %v1229_v0 = vpop.f32.mrf.mxu0  ;;  %v1270_v44 = vpop.f32.mrf.mxu1 }
 0x16e   : > { %v1230_v59 = vadd.f32 %v1229_v0, %v823_v36  ;;  %v1271_v61 = vadd.f32 %v1270_v44, %v864_v37 }
 0x16f   : > { %v1231_v45 = vpop.f32.mrf.mxu0  ;;  %v1272_v46 = vpop.f32.mrf.mxu1 }
 0x170   : > { %v1232_v8 = vadd.f32 %v1231_v45, %v825_v39  ;;  %v1273_v9 = vadd.f32 %v1272_v46, %v866_v40 }
 0x171   : > { %v1233_v47 = vpop.f32.mrf.mxu0  ;;  %v1274_v58 = vpop.f32.mrf.mxu1 }
 0x173   : > { %v1234_v48 = vpop.f32.mrf.mxu0  ;;  %v1275_v49 = vpop.f32.mrf.mxu1 }
 0x1ad   : > { %v1706_v2 = vpop.f32.mrf.mxu0  ;;  %v1747_v4 = vpop.f32.mrf.mxu1 }
 0x1ae   : > { %v1754_v10 = vadd.f32 %v1706_v2, %v1230_v59  ;;  %v1756_v11 = vadd.f32 %v1747_v4, %v1271_v61 }
 0x1af   : > { %v1708_v12 = vpop.f32.mrf.mxu0  ;;  %v1749_v63 = vpop.f32.mrf.mxu1 }
 0x1b0   : > { %v1780_v15 = vadd.f32 %v1763_v62, %v1754_v10  ;;  %v1782_v16 = vadd.f32 %v1771_v1, %v1756_v11  ;;  %v1755_v17 = vadd.f32 %v1708_v12, %v1232_v8  ;;  %v1757_v18 = vadd.f32 %v1749_v63, %v1273_v9 }
 0x1b1   : > { %v1710_v29 = vpop.f32.mrf.mxu0  ;;  %v1751_v19 = vpop.f32.mrf.mxu1 }
 0x1b2   : > { %v1848_v20 = vadd.f32 %v1808_v3, %v1780_v15  ;;  %v1850_v32 = vadd.f32 %v1810_v5, %v1782_v16  ;;  %v1781_v21 = vadd.f32 %v1767_v6, %v1755_v17  ;;  %v1783_v22 = vadd.f32 %v1775_v7, %v1757_v18 }
 0x1b3   : > { %v1711_v24 = vpop.f32.mrf.mxu0  ;;  %v1752_v25 = vpop.f32.mrf.mxu1 }
 0x1b4   : > { %1852 = vst [vmem:[#allocation4 + $0x10] sm:$0xff] %v1848_v20  ;;  %1854 = vst [vmem:[#allocation4 + $0x8] sm:$0xff] %v1850_v32  ;;  %v1849_v27 = vadd.f32 %v1809_v13, %v1781_v21  ;;  %v1851_v28 = vadd.f32 %v1811_v14, %v1783_v22 }
 0x1b6   : > { %1853 = vst [vmem:[#allocation4] sm:$0xff] %v1849_v27  ;;  %1855 = vst [vmem:[#allocation4 + $0x18] sm:$0xff] %v1851_v28 }
 0x1ed   : > { %v2278_v23 = vpop.f32.mrf.mxu0  ;;  %v2319_v26 = vpop.f32.mrf.mxu1 }
 0x1ee   : > { %v2320_v30 = vadd.f32 %v2319_v26, %v2278_v23 }
 0x1ef   : > { %v2280_v31 = vpop.f32.mrf.mxu0  ;;  %v2321_v33 = vpop.f32.mrf.mxu1 }
 0x1f0   : > { %v2327_v34 = vpack.c.bf16 %v2320_v30, %v2320_v30  ;;  %v2322_v35 = vadd.f32 %v2321_v33, %v2280_v31 }
 0x1f1   : > { %v2282_v36 = vpop.f32.mrf.mxu0  ;;  %v2323_v37 = vpop.f32.mrf.mxu1 }
 0x1f2   : > { %v2328_v39 = vpack.c.bf16 %v2322_v35, %v2322_v35  ;;  %v2335_v42 = vsel %vm283_vm7, %v2327_v34, 0 }
 0x1f3   : > { %v2283_v40 = vpop.f32.mrf.mxu0  ;;  %v2324_v41 = vpop.f32.mrf.mxu1 }
 0x1f4   : > { %2914 = vmatprep.subr.msk.bf16.mxu0 %vm283_vm7, %v2328_v39 }
 0x1f5   : > { %2355 = vmatpush1.bf16.msra.mxu0 %v2335_v42 }
 0x1f8   : > { %2915 = vmatmul.mubr.msk.bf16.vlgmr.msra.gmra.mxu0 %vm2329_vm10, %v2326_v43 }
 0x2b8   : > { %v2374_v56 = vpop.f32.mrf.mxu0 }
 0x2b9   : > { %vm2381_vm11 = vcmp.gt.f32.partialorder %v2374_v56, 0.5 }
 0x2ba   : > { %v2376_v0 = vpop.f32.mrf.mxu0  ;;  %v2916_v44 = vsel %vm2381_vm11, 1.0, %v3398_v60 }
 0x2bb   : > { %vm2382_vm12 = vcmp.gt.f32.partialorder %v2376_v0, 0.5 }
 0x2bc   : > { %v2917_v45 = vsel %vm2382_vm12, 1.0, %v3398_v60  ;;  %v2378_v46 = vpop.f32.mrf.mxu0 }
 0x2bd   : > { %v2918_v47 = vpack.c.bf16 %v2917_v45, %v2916_v44 }
 0x2be   : > { %v2379_v58 = vpop.f32.mrf.mxu0 }
 0x2bf   : > { %2919 = vst.sshfl [vmem:[%s3490_s11] sm:$0x33 pattern:$0x76325410] %v2918_v47 }
 0x2c0 PF: > { %s15_s22 = sadd.s32 1, %s3395_s22   ;;  %s4372_s18 = smov %s3387_s20 }
 0x2c1   : > { %p12_p8 = scmp.ge.s32.totalorder %s15_s22, 8   ;;  %s4373_s19 = smov %s3391_s21 }
 0x2c2   : > { %s4374_s20 = smov %s4377_s23  ;;  %s4375_s21 = smov %s4381_s24 }
 0x2c3   :  { %14 = sbr.rel (!%p12_p8) target bundleno = 3 (0x3), region = 76 }

</bundles_post_ra>
